<compile_context>
chip_gen: v7x
topology: tpu7x:2x2x1
jax: 0.10.0
libtpu: 0.0.40
codegen_flags: <defaults>
</compile_context>

<pallas_src>
import functools

import jax
import jax.numpy as jnp
from jax.experimental import pallas as pl
from jax.experimental.pallas import tpu as pltpu

EPS = 1e-5
MM_DTYPE = jnp.bfloat16    # matmul operand dtype (f32 accumulation everywhere)
ACT_DTYPE = jnp.bfloat16   # HBM dtype of the inter-pass activations h1 / h2


def _round_up(x, m):
    return (x + m - 1) // m * m


def _vmem_limit_bytes():
    # v7x has only 64 MiB of VMEM per TensorCore -- never request all of it.
    # Keep ~25% headroom for Mosaic-internal scratch; 64 MiB cap is plenty for
    # these tiles and above the 16/32 MiB default scoped limit on v5e/v6e.
    try:
        cap = pltpu.get_tpu_info().vmem_capacity_bytes
    except Exception:
        cap = 64 * 1024 * 1024
    return min(64 * 1024 * 1024, (cap * 3) // 4)


def _compiler_params():
    return pltpu.CompilerParams(
        dimension_semantics=("parallel", "parallel"),
        vmem_limit_bytes=_vmem_limit_bytes(),
    )


def _pick_row_block(H, Wp, target=512):
    # Smallest divisor of H whose tile still has >= ~512 padded pixels: exposes
    # parallel grid steps for both v7x TensorCores / deeper pipelining on
    # v5e/v6e while amortizing the ~0.35 us per-step overhead.
    for th in range(1, H + 1):
        if H % th == 0 and th * Wp >= target:
            return th
    return H


def _scale_shift(stats, gamma, beta, count):
    # stats: (N, G, 2, C) per-tile partial [sum, sum_sq].  Fold training-mode
    # BN (biased variance, eps) into a per-channel FMA: y = x*scale + shift.
    # NOTE: E[x^2]-mean^2 in f32 can cancel for very large N*H*W; acceptable at
    # ResNet sizes (TODO(synk): Welford / shifted second moment if needed).
    s = jnp.sum(stats.astype(jnp.float32), axis=(0, 1))
    mean = s[0] / count
    var = jnp.maximum(s[1] / count - mean * mean, 0.0)
    scale = gamma.astype(jnp.float32) * jax.lax.rsqrt(var + EPS)
    shift = beta.astype(jnp.float32) - mean * scale
    return scale.reshape(1, -1), shift.reshape(1, -1)


def _valid_mask(rows, wp, w):
    # True for real pixels, False for the zero-pad columns (x' == 0 or x' > W).
    col = jax.lax.broadcasted_iota(jnp.int32, (rows, 1), 0) % wp
    return jnp.logical_and(col >= 1, col <= w)


# ---------------- pass 1: conv1 (1x1) + partial BN1 stats ----------------
def _k1_conv1_stats(x_ref, w1_ref, h1_ref, st1_ref):
    x = x_ref[0].astype(MM_DTYPE)                               # (TH*Wp, Cin)
    h = jnp.dot(x, w1_ref[...], preferred_element_type=jnp.float32)
    h1_ref[0] = h.astype(ACT_DTYPE)
    # pad columns of x are exactly zero -> h is zero there -> sums are exact.
    st1_ref[0, 0] = jnp.concatenate(
        [jnp.sum(h, axis=0, keepdims=True),
         jnp.sum(h * h, axis=0, keepdims=True)], axis=0)


# -- pass 2: BN1+ReLU (folded FMA), 3x3 conv as 9 shifted matmuls, BN2 stats --
def _k2_conv3x3_stats(h1_ref, up_ref, dn_ref, s1_ref, t1_ref, w2_ref,
                      h2_ref, st2_ref, pad_ref, *, TH, W, Wp, C):
    hwp = TH * Wp
    s0 = Wp + 8                       # 8-aligned interior start (needs >= Wp+1)
    R = pad_ref.shape[0]              # (TH + 2) * Wp + 16
    g = pl.program_id(1)
    gmax = pl.num_programs(1) - 1

    s1 = s1_ref[...]
    t1 = t1_ref[...]
    valid_main = _valid_mask(hwp, Wp, W)
    valid_row = _valid_mask(Wp, Wp, W)

    def bn1_relu(h):                  # folded training-mode BN1 + ReLU, in f32
        return jnp.maximum(h.astype(jnp.float32) * s1 + t1, 0.0)

    # conv zero-padding applies AFTER bn+relu -> re-zero the pad columns, and
    # zero the out-of-image halo rows of the first / last row group.
    a_main = jnp.where(valid_main, bn1_relu(h1_ref[0]), 0.0)
    a_up = jnp.where(jnp.logical_and(valid_row, g > 0), bn1_relu(up_ref[0]), 0.0)
    a_dn = jnp.where(jnp.logical_and(valid_row, g < gmax), bn1_relu(dn_ref[0]), 0.0)

    # Halo scratch (flattened, row pitch Wp).  All offsets / sizes are
    # multiples of 8, so every store and the kx=1 band load are aligned.
    #   [0, 8)                slack (only feeds masked-out pad pixels)
    #   [8, 8+Wp)             top halo image row (neighbour group or zeros)
    #   [s0, s0+hwp)          this row group after BN1+ReLU
    #   [s0+hwp, s0+hwp+Wp)   bottom halo image row
    #   [s0+hwp+Wp, R)        slack
    pad_ref[0:8, :] = jnp.zeros((8, C), jnp.float32)
    pad_ref[8:s0, :] = a_up
    pad_ref[s0:s0 + hwp, :] = a_main
    pad_ref[s0 + hwp:s0 + hwp + Wp, :] = a_dn
    pad_ref[s0 + hwp + Wp:R, :] = jnp.zeros((8, C), jnp.float32)

    # 3x3 conv = 9 row-shifted matmuls.  One band load per kx tap (only the
    # kx=0/2 bands are off-by-one); the 3 ky taps are aligned slices of it.
    Hh = (TH + 2) * Wp
    acc = jnp.zeros((hwp, C), jnp.float32)
    for kx in range(3):
        start = (s0 - Wp) + (kx - 1)
        band = pad_ref[start:start + Hh, :].astype(MM_DTYPE)
        for ky in range(3):
            lhs = band[ky * Wp:ky * Wp + hwp]
            acc = acc + jnp.dot(lhs, w2_ref[ky * 3 + kx],
                                preferred_element_type=jnp.float32)

    h2 = jnp.where(valid_main, acc, 0.0)   # keep pad columns zero -> exact stats
    h2_ref[0] = h2.astype(ACT_DTYPE)
    st2_ref[0, 0] = jnp.concatenate(
        [jnp.sum(h2, axis=0, keepdims=True),
         jnp.sum(h2 * h2, axis=0, keepdims=True)], axis=0)


# -------- pass 3: BN2+ReLU, conv3 (1x1) -> partial BN3 stats only --------
def _k3_stats3(h2_ref, s2_ref, t2_ref, w3_ref, st3_ref, *, W, Wp):
    hwp = h2_ref.shape[1]
    a2 = jnp.maximum(h2_ref[0].astype(jnp.float32) * s2_ref[...] + t2_ref[...], 0.0)
    a2 = jnp.where(_valid_mask(hwp, Wp, W), a2, 0.0).astype(MM_DTYPE)
    h3 = jnp.dot(a2, w3_ref[...], preferred_element_type=jnp.float32)
    st3_ref[0, 0] = jnp.concatenate(
        [jnp.sum(h3, axis=0, keepdims=True),
         jnp.sum(h3 * h3, axis=0, keepdims=True)], axis=0)


# ---- pass 4: BN2+ReLU, conv3 (recomputed), BN3 (folded), residual, unpad ----
def _k4_finalize(h2_ref, x_ref, s2_ref, t2_ref, w3_ref, s3_ref, t3_ref, o_ref,
                 *, TH, W, Wp):
    a2 = jnp.maximum(h2_ref[0].astype(jnp.float32) * s2_ref[...] + t2_ref[...],
                     0.0).astype(MM_DTYPE)
    h3 = jnp.dot(a2, w3_ref[...], preferred_element_type=jnp.float32)
    y = h3 * s3_ref[...] + t3_ref[...] + x_ref[0]       # BN3 (folded) + identity
    # Drop the W-pad columns in VMEM and emit an unpadded lane-dense output:
    # no HBM write bandwidth on pad pixels, no wrapper-side slice round trip.
    # (Wp is a multiple of the sublane tile -> the reshape is layout-preserving.)
    o_ref[0] = y.reshape(TH, Wp, -1)[:, 1:W + 1, :]


def bottleneck_forward(x_nchw, params, *, row_block=None):
    N, Cin, H, W = x_nchw.shape
    C = params["w1"].shape[0]        # out_channels        (w1: (C, Cin, 1, 1))
    Cout = params["w3"].shape[0]     # out_channels * 4    (w3: (Cout, C, 1, 1))
    assert Cin == Cout, "downsample=None requires in_channels == out_channels*4"

    # W padded to a tile-aligned pitch (>= W+2): keeps every block, scratch
    # access and reshape sublane-aligned for both the f32 and bf16 streams.
    act_tile = 16 if jnp.dtype(ACT_DTYPE).itemsize == 2 else 8
    Wp = _round_up(W + 2, act_tile)
    TH = row_block if row_block is not None else _pick_row_block(H, Wp)
    assert H % TH == 0, "row_block must divide H"
    G = H // TH                      # second ("parallel") grid axis: row groups
    hwp = TH * Wp
    cnt = float(N * H * W)           # true pixel count for BN means

    # NCHW -> NHWC + zero-pad W in one shot; for chained bottleneck blocks keep
    # activations in this layout between blocks and skip the conversions.
    x = jnp.transpose(x_nchw, (0, 2, 3, 1)).astype(jnp.float32)
    xp = jnp.pad(x, ((0, 0), (0, 0), (1, Wp - W - 1), (0, 0))).reshape(N, H * Wp, Cin)

    # Weights reshaped for (pixels, Cin) @ (Cin, Cout) matmuls, bf16 for the MXU.
    w1 = params["w1"].reshape(C, Cin).T.astype(MM_DTYPE)                         # (Cin, C)
    w2 = jnp.transpose(params["w2"], (2, 3, 1, 0)).reshape(9, C, C).astype(MM_DTYPE)
    w3 = params["w3"].reshape(Cout, C).T.astype(MM_DTYPE)                        # (C, Cout)

    # ----------------------------- BlockSpecs -----------------------------
    def img(c):                      # one row group of a flattened activation
        return pl.BlockSpec((1, hwp, c), lambda n, g: (n, g, 0))

    def row_up(c):                   # image row just above the group (clamped)
        return pl.BlockSpec((1, Wp, c),
                            lambda n, g: (n, jnp.maximum(g * TH - 1, 0), 0))

    def row_dn(c):                   # image row just below the group (clamped)
        return pl.BlockSpec((1, Wp, c),
                            lambda n, g: (n, jnp.minimum((g + 1) * TH, H - 1), 0))

    def stat(c):                     # per-(image, row-group) partial BN stats
        return pl.BlockSpec((1, 1, 2, c), lambda n, g: (n, g, 0, 0))

    def const(shape):                # VMEM-resident operand: constant index,
        return pl.BlockSpec(         # single-buffered (never re-fetched).
            shape, lambda n, g: (0,) * len(shape), pipeline_mode=pl.Buffered(1))

    cparams = _compiler_params()

    # ---- pass 1: conv1 + BN1 partial stats ----
    h1, st1 = pl.pallas_call(
        _k1_conv1_stats,
        grid=(N, G),
        in_specs=[img(Cin), const((Cin, C))],
        out_specs=(img(C), stat(C)),
        out_shape=(jax.ShapeDtypeStruct((N, H * Wp, C), ACT_DTYPE),
                   jax.ShapeDtypeStruct((N, G, 2, C), jnp.float32)),
        compiler_params=cparams,
    )(xp, w1)
    s1, t1 = _scale_shift(st1, params["g1"], params["b1"], cnt)

    # ---- pass 2: BN1+ReLU, 3x3 conv, BN2 partial stats ----
    R = (TH + 2) * Wp + 16
    h2, st2 = pl.pallas_call(
        functools.partial(_k2_conv3x3_stats, TH=TH, W=W, Wp=Wp, C=C),
        grid=(N, G),
        in_specs=[img(C), row_up(C), row_dn(C),
                  const((1, C)), const((1, C)), const((9, C, C))],
        out_specs=(img(C), stat(C)),
        out_shape=(jax.ShapeDtypeStruct((N, H * Wp, C), ACT_DTYPE),
                   jax.ShapeDtypeStruct((N, G, 2, C), jnp.float32)),
        scratch_shapes=[pltpu.VMEM((R, C), jnp.float32)],
        compiler_params=cparams,
    )(h1, h1, h1, s1, t1, w2)
    s2, t2 = _scale_shift(st2, params["g2"], params["b2"], cnt)

    # ---- pass 3: BN3 partial stats only (conv3 is cheap to recompute) ----
    st3 = pl.pallas_call(
        functools.partial(_k3_stats3, W=W, Wp=Wp),
        grid=(N, G),
        in_specs=[img(C), const((1, C)), const((1, C)), const((C, Cout))],
        out_specs=stat(Cout),
        out_shape=jax.ShapeDtypeStruct((N, G, 2, Cout), jnp.float32),
        compiler_params=cparams,
    )(h2, s2, t2, w3)
    s3, t3 = _scale_shift(st3, params["g3"], params["b3"], cnt)

    # ---- pass 4: conv3, BN3, residual add, unpadded NHWC output ----
    out_nhwc = pl.pallas_call(
        functools.partial(_k4_finalize, TH=TH, W=W, Wp=Wp),
        grid=(N, G),
        in_specs=[img(C), img(Cin), const((1, C)), const((1, C)),
                  const((C, Cout)), const((1, Cout)), const((1, Cout))],
        out_specs=pl.BlockSpec((1, TH, W, Cout), lambda n, g: (n, g, 0, 0)),
        out_shape=jax.ShapeDtypeStruct((N, H, W, Cout), jnp.float32),
        compiler_params=cparams,
    )(h2, xp, s2, t2, w3, s3, t3)

    return jnp.transpose(out_nhwc, (0, 3, 1, 2))           # back to NCHW


if __name__ == "__main__":
    # Small shapes consistent with the module: Bottelneck(in_channels=16, out_channels=4)
    # => residual add requires in_channels == 4 * out_channels.
    N, Cin, H, W = 2, 16, 16, 16
    C = 4
    Cout = C * 4

    key = jax.random.PRNGKey(0)
    kx, k1, k2, k3 = jax.random.split(key, 4)
    x = jax.random.normal(kx, (N, Cin, H, W), jnp.float32)

    # Deterministic synthetic parameters (PyTorch tensor shapes; BN default init).
    params = dict(
        w1=jax.random.normal(k1, (C, Cin, 1, 1), jnp.float32) * 0.1,
        w2=jax.random.normal(k2, (C, C, 3, 3), jnp.float32) * 0.1,
        w3=jax.random.normal(k3, (Cout, C, 1, 1), jnp.float32) * 0.1,
        g1=jnp.ones((C,), jnp.float32), b1=jnp.zeros((C,), jnp.float32),
        g2=jnp.ones((C,), jnp.float32), b2=jnp.zeros((C,), jnp.float32),
        g3=jnp.ones((Cout,), jnp.float32), b3=jnp.zeros((Cout,), jnp.float32),
    )

    # row_block=8 -> two row groups per image: exercises the cross-group halo
    # path and gives the 2-D grid four "parallel" steps for the TensorCores.
    fwd = jax.jit(functools.partial(bottleneck_forward, row_block=8))
    out = fwd(x, params)
    jax.block_until_ready(out)
    assert out.shape == (N, Cin, H, W) and out.dtype == jnp.float32
    assert bool(jnp.isfinite(out).all())
    print("KERNEL_OK")
</pallas_src>

<mosaic_0001>
module attributes {stable_mosaic.version = 11 : i64} {
  func.func @_k2_conv3x3_stats(%arg0: i32, %arg1: i32, %arg2: memref<1x256x4xbf16, #tpu.memory_space<vmem>>, %arg3: memref<1x32x4xbf16, #tpu.memory_space<vmem>>, %arg4: memref<1x32x4xbf16, #tpu.memory_space<vmem>>, %arg5: memref<1x4xf32, #tpu.memory_space<vmem>>, %arg6: memref<1x4xf32, #tpu.memory_space<vmem>>, %arg7: memref<9x4x4xbf16, #tpu.memory_space<vmem>>, %arg8: memref<1x256x4xbf16, #tpu.memory_space<vmem>>, %arg9: memref<1x1x2x4xf32, #tpu.memory_space<vmem>>, %arg10: memref<336x4xf32, #tpu.memory_space<vmem>>) attributes {dimension_semantics = [#tpu.dimension_semantics<parallel>, #tpu.dimension_semantics<parallel>], iteration_bounds = array<i64: 2, 2>, scalar_prefetch = 0 : i64, scratch_operands = 1 : i64, tpu.core_type = #tpu.core_type<tc>, window_params = [{transform_indices = @transform_0, window_bounds = array<i64: 1, 256, 4>}, {transform_indices = @transform_1, window_bounds = array<i64: 1, 32, 4>}, {transform_indices = @transform_2, window_bounds = array<i64: 1, 32, 4>}, {pipeline_mode = #tpu.pipeline_mode<synchronous>, transform_indices = @transform_3, window_bounds = array<i64: 1, 4>}, {pipeline_mode = #tpu.pipeline_mode<synchronous>, transform_indices = @transform_4, window_bounds = array<i64: 1, 4>}, {pipeline_mode = #tpu.pipeline_mode<synchronous>, transform_indices = @transform_5, window_bounds = array<i64: 9, 4, 4>}, {transform_indices = @transform_6, window_bounds = array<i64: 1, 256, 4>}, {transform_indices = @transform_7, window_bounds = array<i64: 1, 1, 2, 4>}]} {
    %c0 = arith.constant 0 : index
    %c0_0 = arith.constant 0 : index
    %0 = vector.load %arg5[%c0, %c0_0] : memref<1x4xf32, #tpu.memory_space<vmem>>, vector<1x4xf32>
    %c0_1 = arith.constant 0 : index
    %c0_2 = arith.constant 0 : index
    %1 = vector.load %arg6[%c0_1, %c0_2] : memref<1x4xf32, #tpu.memory_space<vmem>>, vector<1x4xf32>
    %2 = tpu.iota {dimensions = array<i32: 0>} : vector<256x1xi32>
    %c32_i32 = arith.constant 32 : i32
    %c0_i32 = arith.constant 0 : i32
    %3 = arith.cmpi eq, %c32_i32, %c0_i32 : i32
    %c1_i32 = arith.constant 1 : i32
    %4 = arith.select %3, %c1_i32, %c32_i32 : i32
    %5 = vector.broadcast %4 : i32 to vector<256x1xi32>
    %6 = arith.remsi %2, %5 : vector<256x1xi32>
    %c0_i32_3 = arith.constant 0 : i32
    %7 = vector.broadcast %c0_i32_3 : i32 to vector<256x1xi32>
    %8 = arith.cmpi ne, %6, %7 : vector<256x1xi32>
    %c0_i32_4 = arith.constant 0 : i32
    %9 = vector.broadcast %c0_i32_4 : i32 to vector<256x1xi32>
    %10 = arith.cmpi slt, %6, %9 : vector<256x1xi32>
    %c0_i32_5 = arith.constant 0 : i32
    %11 = arith.cmpi slt, %4, %c0_i32_5 : i32
    %12 = vector.broadcast %11 : i1 to vector<256x1xi1>
    %13 = vector.broadcast %12 : vector<256x1xi1> to vector<256x1xi1>
    %14 = arith.xori %10, %13 : vector<256x1xi1>
    %15 = arith.andi %14, %8 : vector<256x1xi1>
    %16 = vector.broadcast %4 : i32 to vector<256x1xi32>
    %17 = arith.addi %6, %16 : vector<256x1xi32>
    %18 = arith.select %15, %17, %6 : vector<256x1xi1>, vector<256x1xi32>
    %c1_i32_6 = arith.constant 1 : i32
    %19 = vector.broadcast %c1_i32_6 : i32 to vector<256x1xi32>
    %20 = arith.cmpi sge, %18, %19 : vector<256x1xi32>
    %c16_i32 = arith.constant 16 : i32
    %21 = vector.broadcast %c16_i32 : i32 to vector<256x1xi32>
    %22 = arith.cmpi sle, %18, %21 : vector<256x1xi32>
    %23 = arith.andi %20, %22 : vector<256x1xi1>
    %24 = tpu.iota {dimensions = array<i32: 0>} : vector<32x1xi32>
    %c32_i32_7 = arith.constant 32 : i32
    %c0_i32_8 = arith.constant 0 : i32
    %25 = arith.cmpi eq, %c32_i32_7, %c0_i32_8 : i32
    %c1_i32_9 = arith.constant 1 : i32
    %26 = arith.select %25, %c1_i32_9, %c32_i32_7 : i32
    %27 = vector.broadcast %26 : i32 to vector<32x1xi32>
    %28 = arith.remsi %24, %27 : vector<32x1xi32>
    %c0_i32_10 = arith.constant 0 : i32
    %29 = vector.broadcast %c0_i32_10 : i32 to vector<32x1xi32>
    %30 = arith.cmpi ne, %28, %29 : vector<32x1xi32>
    %c0_i32_11 = arith.constant 0 : i32
    %31 = vector.broadcast %c0_i32_11 : i32 to vector<32x1xi32>
    %32 = arith.cmpi slt, %28, %31 : vector<32x1xi32>
    %c0_i32_12 = arith.constant 0 : i32
    %33 = arith.cmpi slt, %26, %c0_i32_12 : i32
    %34 = vector.broadcast %33 : i1 to vector<32x1xi1>
    %35 = vector.broadcast %34 : vector<32x1xi1> to vector<32x1xi1>
    %36 = arith.xori %32, %35 : vector<32x1xi1>
    %37 = arith.andi %36, %30 : vector<32x1xi1>
    %38 = vector.broadcast %26 : i32 to vector<32x1xi32>
    %39 = arith.addi %28, %38 : vector<32x1xi32>
    %40 = arith.select %37, %39, %28 : vector<32x1xi1>, vector<32x1xi32>
    %c1_i32_13 = arith.constant 1 : i32
    %41 = vector.broadcast %c1_i32_13 : i32 to vector<32x1xi32>
    %42 = arith.cmpi sge, %40, %41 : vector<32x1xi32>
    %c16_i32_14 = arith.constant 16 : i32
    %43 = vector.broadcast %c16_i32_14 : i32 to vector<32x1xi32>
    %44 = arith.cmpi sle, %40, %43 : vector<32x1xi32>
    %45 = arith.andi %42, %44 : vector<32x1xi1>
    %c0_15 = arith.constant 0 : index
    %c0_16 = arith.constant 0 : index
    %c0_17 = arith.constant 0 : index
    %46 = vector.load %arg2[%c0_15, %c0_16, %c0_17] : memref<1x256x4xbf16, #tpu.memory_space<vmem>>, vector<1x256x4xbf16>
    %47 = vector.shape_cast %46 : vector<1x256x4xbf16> to vector<256x4xbf16>
    %48 = arith.extf %47 : vector<256x4xbf16> to vector<256x4xf32>
    %49 = vector.broadcast %0 : vector<1x4xf32> to vector<256x4xf32>
    %50 = arith.mulf %48, %49 : vector<256x4xf32>
    %51 = vector.broadcast %1 : vector<1x4xf32> to vector<256x4xf32>
    %52 = arith.addf %50, %51 : vector<256x4xf32>
    %cst = arith.constant 0.000000e+00 : f32
    %53 = vector.broadcast %cst : f32 to vector<256x4xf32>
    %54 = arith.maximumf %52, %53 : vector<256x4xf32>
    %cst_18 = arith.constant 0.000000e+00 : f32
    %55 = vector.shape_cast %23 : vector<256x1xi1> to vector<256x1xi1>
    %56 = vector.broadcast %55 : vector<256x1xi1> to vector<256x4xi1>
    %57 = vector.broadcast %cst_18 : f32 to vector<256x4xf32>
    %58 = arith.select %56, %54, %57 : vector<256x4xi1>, vector<256x4xf32>
    %c0_i32_19 = arith.constant 0 : i32
    %59 = arith.cmpi sgt, %arg1, %c0_i32_19 : i32
    %60 = vector.broadcast %59 : i1 to vector<32x1xi1>
    %61 = arith.andi %45, %60 : vector<32x1xi1>
    %c0_20 = arith.constant 0 : index
    %c0_21 = arith.constant 0 : index
    %c0_22 = arith.constant 0 : index
    %62 = vector.load %arg3[%c0_20, %c0_21, %c0_22] : memref<1x32x4xbf16, #tpu.memory_space<vmem>>, vector<1x32x4xbf16>
    %63 = vector.shape_cast %62 : vector<1x32x4xbf16> to vector<32x4xbf16>
    %64 = arith.extf %63 : vector<32x4xbf16> to vector<32x4xf32>
    %65 = vector.broadcast %0 : vector<1x4xf32> to vector<32x4xf32>
    %66 = arith.mulf %64, %65 : vector<32x4xf32>
    %67 = vector.broadcast %1 : vector<1x4xf32> to vector<32x4xf32>
    %68 = arith.addf %66, %67 : vector<32x4xf32>
    %cst_23 = arith.constant 0.000000e+00 : f32
    %69 = vector.broadcast %cst_23 : f32 to vector<32x4xf32>
    %70 = arith.maximumf %68, %69 : vector<32x4xf32>
    %cst_24 = arith.constant 0.000000e+00 : f32
    %71 = vector.shape_cast %61 : vector<32x1xi1> to vector<32x1xi1>
    %72 = vector.broadcast %71 : vector<32x1xi1> to vector<32x4xi1>
    %73 = vector.broadcast %cst_24 : f32 to vector<32x4xf32>
    %74 = arith.select %72, %70, %73 : vector<32x4xi1>, vector<32x4xf32>
    %c1_i32_25 = arith.constant 1 : i32
    %75 = arith.cmpi slt, %arg1, %c1_i32_25 : i32
    %76 = vector.broadcast %75 : i1 to vector<32x1xi1>
    %77 = arith.andi %45, %76 : vector<32x1xi1>
    %c0_26 = arith.constant 0 : index
    %c0_27 = arith.constant 0 : index
    %c0_28 = arith.constant 0 : index
    %78 = vector.load %arg4[%c0_26, %c0_27, %c0_28] : memref<1x32x4xbf16, #tpu.memory_space<vmem>>, vector<1x32x4xbf16>
    %79 = vector.shape_cast %78 : vector<1x32x4xbf16> to vector<32x4xbf16>
    %80 = arith.extf %79 : vector<32x4xbf16> to vector<32x4xf32>
    %81 = vector.broadcast %0 : vector<1x4xf32> to vector<32x4xf32>
    %82 = arith.mulf %80, %81 : vector<32x4xf32>
    %83 = vector.broadcast %1 : vector<1x4xf32> to vector<32x4xf32>
    %84 = arith.addf %82, %83 : vector<32x4xf32>
    %cst_29 = arith.constant 0.000000e+00 : f32
    %85 = vector.broadcast %cst_29 : f32 to vector<32x4xf32>
    %86 = arith.maximumf %84, %85 : vector<32x4xf32>
    %cst_30 = arith.constant 0.000000e+00 : f32
    %87 = vector.shape_cast %77 : vector<32x1xi1> to vector<32x1xi1>
    %88 = vector.broadcast %87 : vector<32x1xi1> to vector<32x4xi1>
    %89 = vector.broadcast %cst_30 : f32 to vector<32x4xf32>
    %90 = arith.select %88, %86, %89 : vector<32x4xi1>, vector<32x4xf32>
    %cst_31 = arith.constant 0.000000e+00 : f32
    %91 = vector.broadcast %cst_31 : f32 to vector<8x4xf32>
    %c0_32 = arith.constant 0 : index
    %c0_33 = arith.constant 0 : index
    %92 = vector.load %arg10[%c0_32, %c0_33] : memref<336x4xf32, #tpu.memory_space<vmem>>, vector<8x4xf32>
    tpu.vector_store %arg10[%c0_32, %c0_33], %91 {strides = array<i32>} : memref<336x4xf32, #tpu.memory_space<vmem>>, vector<8x4xf32>,
    %c8 = arith.constant 8 : index
    %c0_34 = arith.constant 0 : index
    %93 = vector.load %arg10[%c8, %c0_34] : memref<336x4xf32, #tpu.memory_space<vmem>>, vector<32x4xf32>
    tpu.vector_store %arg10[%c8, %c0_34], %74 {strides = array<i32>} : memref<336x4xf32, #tpu.memory_space<vmem>>, vector<32x4xf32>,
    %c40 = arith.constant 40 : index
    %c0_35 = arith.constant 0 : index
    %94 = vector.load %arg10[%c40, %c0_35] : memref<336x4xf32, #tpu.memory_space<vmem>>, vector<256x4xf32>
    tpu.vector_store %arg10[%c40, %c0_35], %58 {strides = array<i32>} : memref<336x4xf32, #tpu.memory_space<vmem>>, vector<256x4xf32>,
    %c296 = arith.constant 296 : index
    %c0_36 = arith.constant 0 : index
    %95 = vector.load %arg10[%c296, %c0_36] : memref<336x4xf32, #tpu.memory_space<vmem>>, vector<32x4xf32>
    tpu.vector_store %arg10[%c296, %c0_36], %90 {strides = array<i32>} : memref<336x4xf32, #tpu.memory_space<vmem>>, vector<32x4xf32>,
    %cst_37 = arith.constant 0.000000e+00 : f32
    %96 = vector.broadcast %cst_37 : f32 to vector<8x4xf32>
    %c328 = arith.constant 328 : index
    %c0_38 = arith.constant 0 : index
    %97 = vector.load %arg10[%c328, %c0_38] : memref<336x4xf32, #tpu.memory_space<vmem>>, vector<8x4xf32>
    tpu.vector_store %arg10[%c328, %c0_38], %96 {strides = array<i32>} : memref<336x4xf32, #tpu.memory_space<vmem>>, vector<8x4xf32>,
    %cst_39 = arith.constant 0.000000e+00 : f32
    %98 = vector.broadcast %cst_39 : f32 to vector<256x4xf32>
    %c7 = arith.constant 7 : index
    %c0_40 = arith.constant 0 : index
    %99 = vector.load %arg10[%c7, %c0_40] : memref<336x4xf32, #tpu.memory_space<vmem>>, vector<320x4xf32>
    %100 = arith.truncf %99 : vector<320x4xf32> to vector<320x4xbf16>
    %101 = vector.extract_strided_slice %100 {offsets = [0, 0], sizes = [256, 4], strides = [1, 1]} : vector<320x4xbf16> to vector<256x4xbf16>
    %c0_41 = arith.constant 0 : index
    %c0_42 = arith.constant 0 : index
    %c0_43 = arith.constant 0 : index
    %102 = vector.load %arg7[%c0_41, %c0_42, %c0_43] : memref<9x4x4xbf16, #tpu.memory_space<vmem>>, vector<1x4x4xbf16>
    %103 = vector.shape_cast %102 : vector<1x4x4xbf16> to vector<4x4xbf16>
    %cst_44 = arith.constant dense<0.000000e+00> : vector<256x4xf32>
    %104 = tpu.matmul %101, %103, %cst_44 {dimension_numbers = #tpu.dot_dimension_numbers<[1], [0], [0], [1], [0, 0, 1, 1], [], []>} : vector<256x4xbf16>, vector<4x4xbf16>, vector<256x4xf32> -> vector<256x4xf32>
    %105 = arith.addf %98, %104 : vector<256x4xf32>
    %106 = vector.extract_strided_slice %100 {offsets = [32, 0], sizes = [256, 4], strides = [1, 1]} : vector<320x4xbf16> to vector<256x4xbf16>
    %c3 = arith.constant 3 : index
    %c0_45 = arith.constant 0 : index
    %c0_46 = arith.constant 0 : index
    %107 = vector.load %arg7[%c3, %c0_45, %c0_46] : memref<9x4x4xbf16, #tpu.memory_space<vmem>>, vector<1x4x4xbf16>
    %108 = vector.shape_cast %107 : vector<1x4x4xbf16> to vector<4x4xbf16>
    %cst_47 = arith.constant dense<0.000000e+00> : vector<256x4xf32>
    %109 = tpu.matmul %106, %108, %cst_47 {dimension_numbers = #tpu.dot_dimension_numbers<[1], [0], [0], [1], [0, 0, 1, 1], [], []>} : vector<256x4xbf16>, vector<4x4xbf16>, vector<256x4xf32> -> vector<256x4xf32>
    %110 = arith.addf %105, %109 : vector<256x4xf32>
    %111 = vector.extract_strided_slice %100 {offsets = [64, 0], sizes = [256, 4], strides = [1, 1]} : vector<320x4xbf16> to vector<256x4xbf16>
    %c6 = arith.constant 6 : index
    %c0_48 = arith.constant 0 : index
    %c0_49 = arith.constant 0 : index
    %112 = vector.load %arg7[%c6, %c0_48, %c0_49] : memref<9x4x4xbf16, #tpu.memory_space<vmem>>, vector<1x4x4xbf16>
    %113 = vector.shape_cast %112 : vector<1x4x4xbf16> to vector<4x4xbf16>
    %cst_50 = arith.constant dense<0.000000e+00> : vector<256x4xf32>
    %114 = tpu.matmul %111, %113, %cst_50 {dimension_numbers = #tpu.dot_dimension_numbers<[1], [0], [0], [1], [0, 0, 1, 1], [], []>} : vector<256x4xbf16>, vector<4x4xbf16>, vector<256x4xf32> -> vector<256x4xf32>
    %115 = arith.addf %110, %114 : vector<256x4xf32>
    %c8_51 = arith.constant 8 : index
    %c0_52 = arith.constant 0 : index
    %116 = vector.load %arg10[%c8_51, %c0_52] : memref<336x4xf32, #tpu.memory_space<vmem>>, vector<320x4xf32>
    %117 = arith.truncf %116 : vector<320x4xf32> to vector<320x4xbf16>
    %118 = vector.extract_strided_slice %117 {offsets = [0, 0], sizes = [256, 4], strides = [1, 1]} : vector<320x4xbf16> to vector<256x4xbf16>
    %c1 = arith.constant 1 : index
    %c0_53 = arith.constant 0 : index
    %c0_54 = arith.constant 0 : index
    %119 = vector.load %arg7[%c1, %c0_53, %c0_54] : memref<9x4x4xbf16, #tpu.memory_space<vmem>>, vector<1x4x4xbf16>
    %120 = vector.shape_cast %119 : vector<1x4x4xbf16> to vector<4x4xbf16>
    %cst_55 = arith.constant dense<0.000000e+00> : vector<256x4xf32>
    %121 = tpu.matmul %118, %120, %cst_55 {dimension_numbers = #tpu.dot_dimension_numbers<[1], [0], [0], [1], [0, 0, 1, 1], [], []>} : vector<256x4xbf16>, vector<4x4xbf16>, vector<256x4xf32> -> vector<256x4xf32>
    %122 = arith.addf %115, %121 : vector<256x4xf32>
    %123 = vector.extract_strided_slice %117 {offsets = [32, 0], sizes = [256, 4], strides = [1, 1]} : vector<320x4xbf16> to vector<256x4xbf16>
    %c4 = arith.constant 4 : index
    %c0_56 = arith.constant 0 : index
    %c0_57 = arith.constant 0 : index
    %124 = vector.load %arg7[%c4, %c0_56, %c0_57] : memref<9x4x4xbf16, #tpu.memory_space<vmem>>, vector<1x4x4xbf16>
    %125 = vector.shape_cast %124 : vector<1x4x4xbf16> to vector<4x4xbf16>
    %cst_58 = arith.constant dense<0.000000e+00> : vector<256x4xf32>
    %126 = tpu.matmul %123, %125, %cst_58 {dimension_numbers = #tpu.dot_dimension_numbers<[1], [0], [0], [1], [0, 0, 1, 1], [], []>} : vector<256x4xbf16>, vector<4x4xbf16>, vector<256x4xf32> -> vector<256x4xf32>
    %127 = arith.addf %122, %126 : vector<256x4xf32>
    %128 = vector.extract_strided_slice %117 {offsets = [64, 0], sizes = [256, 4], strides = [1, 1]} : vector<320x4xbf16> to vector<256x4xbf16>
    %c7_59 = arith.constant 7 : index
    %c0_60 = arith.constant 0 : index
    %c0_61 = arith.constant 0 : index
    %129 = vector.load %arg7[%c7_59, %c0_60, %c0_61] : memref<9x4x4xbf16, #tpu.memory_space<vmem>>, vector<1x4x4xbf16>
    %130 = vector.shape_cast %129 : vector<1x4x4xbf16> to vector<4x4xbf16>
    %cst_62 = arith.constant dense<0.000000e+00> : vector<256x4xf32>
    %131 = tpu.matmul %128, %130, %cst_62 {dimension_numbers = #tpu.dot_dimension_numbers<[1], [0], [0], [1], [0, 0, 1, 1], [], []>} : vector<256x4xbf16>, vector<4x4xbf16>, vector<256x4xf32> -> vector<256x4xf32>
    %132 = arith.addf %127, %131 : vector<256x4xf32>
    %c9 = arith.constant 9 : index
    %c0_63 = arith.constant 0 : index
    %133 = vector.load %arg10[%c9, %c0_63] : memref<336x4xf32, #tpu.memory_space<vmem>>, vector<320x4xf32>
    %134 = arith.truncf %133 : vector<320x4xf32> to vector<320x4xbf16>
    %135 = vector.extract_strided_slice %134 {offsets = [0, 0], sizes = [256, 4], strides = [1, 1]} : vector<320x4xbf16> to vector<256x4xbf16>
    %c2 = arith.constant 2 : index
    %c0_64 = arith.constant 0 : index
    %c0_65 = arith.constant 0 : index
    %136 = vector.load %arg7[%c2, %c0_64, %c0_65] : memref<9x4x4xbf16, #tpu.memory_space<vmem>>, vector<1x4x4xbf16>
    %137 = vector.shape_cast %136 : vector<1x4x4xbf16> to vector<4x4xbf16>
    %cst_66 = arith.constant dense<0.000000e+00> : vector<256x4xf32>
    %138 = tpu.matmul %135, %137, %cst_66 {dimension_numbers = #tpu.dot_dimension_numbers<[1], [0], [0], [1], [0, 0, 1, 1], [], []>} : vector<256x4xbf16>, vector<4x4xbf16>, vector<256x4xf32> -> vector<256x4xf32>
    %139 = arith.addf %132, %138 : vector<256x4xf32>
    %140 = vector.extract_strided_slice %134 {offsets = [32, 0], sizes = [256, 4], strides = [1, 1]} : vector<320x4xbf16> to vector<256x4xbf16>
    %c5 = arith.constant 5 : index
    %c0_67 = arith.constant 0 : index
    %c0_68 = arith.constant 0 : index
    %141 = vector.load %arg7[%c5, %c0_67, %c0_68] : memref<9x4x4xbf16, #tpu.memory_space<vmem>>, vector<1x4x4xbf16>
    %142 = vector.shape_cast %141 : vector<1x4x4xbf16> to vector<4x4xbf16>
    %cst_69 = arith.constant dense<0.000000e+00> : vector<256x4xf32>
    %143 = tpu.matmul %140, %142, %cst_69 {dimension_numbers = #tpu.dot_dimension_numbers<[1], [0], [0], [1], [0, 0, 1, 1], [], []>} : vector<256x4xbf16>, vector<4x4xbf16>, vector<256x4xf32> -> vector<256x4xf32>
    %144 = arith.addf %139, %143 : vector<256x4xf32>
    %145 = vector.extract_strided_slice %134 {offsets = [64, 0], sizes = [256, 4], strides = [1, 1]} : vector<320x4xbf16> to vector<256x4xbf16>
    %c8_70 = arith.constant 8 : index
    %c0_71 = arith.constant 0 : index
    %c0_72 = arith.constant 0 : index
    %146 = vector.load %arg7[%c8_70, %c0_71, %c0_72] : memref<9x4x4xbf16, #tpu.memory_space<vmem>>, vector<1x4x4xbf16>
    %147 = vector.shape_cast %146 : vector<1x4x4xbf16> to vector<4x4xbf16>
    %cst_73 = arith.constant dense<0.000000e+00> : vector<256x4xf32>
    %148 = tpu.matmul %145, %147, %cst_73 {dimension_numbers = #tpu.dot_dimension_numbers<[1], [0], [0], [1], [0, 0, 1, 1], [], []>} : vector<256x4xbf16>, vector<4x4xbf16>, vector<256x4xf32> -> vector<256x4xf32>
    %149 = arith.addf %144, %148 : vector<256x4xf32>
    %cst_74 = arith.constant 0.000000e+00 : f32
    %150 = vector.shape_cast %23 : vector<256x1xi1> to vector<256x1xi1>
    %151 = vector.broadcast %150 : vector<256x1xi1> to vector<256x4xi1>
    %152 = vector.broadcast %cst_74 : f32 to vector<256x4xf32>
    %153 = arith.select %151, %149, %152 : vector<256x4xi1>, vector<256x4xf32>
    %154 = arith.truncf %153 : vector<256x4xf32> to vector<256x4xbf16>
    %c0_75 = arith.constant 0 : index
    %c0_76 = arith.constant 0 : index
    %c0_77 = arith.constant 0 : index
    %155 = vector.load %arg8[%c0_75, %c0_76, %c0_77] : memref<1x256x4xbf16, #tpu.memory_space<vmem>>, vector<1x256x4xbf16>
    %156 = vector.shape_cast %155 : vector<1x256x4xbf16> to vector<256x4xbf16>
    %157 = vector.shape_cast %154 : vector<256x4xbf16> to vector<1x256x4xbf16>
    tpu.vector_store %arg8[%c0_75, %c0_76, %c0_77], %157 {strides = array<i32>} : memref<1x256x4xbf16, #tpu.memory_space<vmem>>, vector<1x256x4xbf16>,
    %cst_78 = arith.constant dense<0.000000e+00> : vector<4xf32>
    %158 = vector.multi_reduction <add>, %153, %cst_78 [0] : vector<256x4xf32> to vector<4xf32>
    %159 = vector.shape_cast %158 : vector<4xf32> to vector<1x4xf32>
    %160 = arith.mulf %153, %153 : vector<256x4xf32>
    %cst_79 = arith.constant dense<0.000000e+00> : vector<4xf32>
    %161 = vector.multi_reduction <add>, %160, %cst_79 [0] : vector<256x4xf32> to vector<4xf32>
    %162 = vector.shape_cast %161 : vector<4xf32> to vector<1x4xf32>
    %163 = tpu.concatenate %159, %162 in 0 : vector<1x4xf32>, vector<1x4xf32> -> vector<2x4xf32>
    %c0_80 = arith.constant 0 : index
    %c0_81 = arith.constant 0 : index
    %c0_82 = arith.constant 0 : index
    %c0_83 = arith.constant 0 : index
    %164 = vector.load %arg9[%c0_80, %c0_81, %c0_82, %c0_83] : memref<1x1x2x4xf32, #tpu.memory_space<vmem>>, vector<1x1x2x4xf32>
    %165 = vector.shape_cast %164 : vector<1x1x2x4xf32> to vector<2x4xf32>
    %166 = vector.shape_cast %163 : vector<2x4xf32> to vector<1x1x2x4xf32>
    tpu.vector_store %arg9[%c0_80, %c0_81, %c0_82, %c0_83], %166 {strides = array<i32>} : memref<1x1x2x4xf32, #tpu.memory_space<vmem>>, vector<1x1x2x4xf32>,
    return
  }
  func.func @transform_0(%arg0: i32, %arg1: i32) -> (i32, i32, i32) {
    %c0_i32 = arith.constant 0 : i32
    %c0_i32_0 = arith.constant 0 : i32
    return %arg0, %arg1, %c0_i32 : i32, i32, i32
  }
  func.func @transform_1(%arg0: i32, %arg1: i32) -> (i32, i32, i32) {
    %c8_i32 = arith.constant 8 : i32
    %0 = arith.muli %arg1, %c8_i32 : i32
    %c1_i32 = arith.constant 1 : i32
    %1 = arith.subi %0, %c1_i32 : i32
    %c0_i32 = arith.constant 0 : i32
    %2 = arith.maxsi %1, %c0_i32 : i32
    %c0_i32_0 = arith.constant 0 : i32
    %c0_i32_1 = arith.constant 0 : i32
    return %arg0, %2, %c0_i32_0 : i32, i32, i32
  }
  func.func @transform_2(%arg0: i32, %arg1: i32) -> (i32, i32, i32) {
    %c1_i32 = arith.constant 1 : i32
    %0 = arith.addi %arg1, %c1_i32 : i32
    %c8_i32 = arith.constant 8 : i32
    %1 = arith.muli %0, %c8_i32 : i32
    %c15_i32 = arith.constant 15 : i32
    %2 = arith.minsi %1, %c15_i32 : i32
    %c0_i32 = arith.constant 0 : i32
    %c0_i32_0 = arith.constant 0 : i32
    return %arg0, %2, %c0_i32 : i32, i32, i32
  }
  func.func @transform_3(%arg0: i32, %arg1: i32) -> (i32, i32) {
    %c0_i32 = arith.constant 0 : i32
    %c0_i32_0 = arith.constant 0 : i32
    %c0_i32_1 = arith.constant 0 : i32
    return %c0_i32, %c0_i32_0 : i32, i32
  }
  func.func @transform_4(%arg0: i32, %arg1: i32) -> (i32, i32) {
    %c0_i32 = arith.constant 0 : i32
    %c0_i32_0 = arith.constant 0 : i32
    %c0_i32_1 = arith.constant 0 : i32
    return %c0_i32, %c0_i32_0 : i32, i32
  }
  func.func @transform_5(%arg0: i32, %arg1: i32) -> (i32, i32, i32) {
    %c0_i32 = arith.constant 0 : i32
    %c0_i32_0 = arith.constant 0 : i32
    %c0_i32_1 = arith.constant 0 : i32
    %c0_i32_2 = arith.constant 0 : i32
    return %c0_i32, %c0_i32_0, %c0_i32_1 : i32, i32, i32
  }
  func.func @transform_6(%arg0: i32, %arg1: i32) -> (i32, i32, i32) {
    %c0_i32 = arith.constant 0 : i32
    %c0_i32_0 = arith.constant 0 : i32
    return %arg0, %arg1, %c0_i32 : i32, i32, i32
  }
  func.func @transform_7(%arg0: i32, %arg1: i32) -> (i32, i32, i32, i32) {
    %c0_i32 = arith.constant 0 : i32
    %c0_i32_0 = arith.constant 0 : i32
    %c0_i32_1 = arith.constant 0 : i32
    return %arg0, %arg1, %c0_i32, %c0_i32_0 : i32, i32, i32, i32
  }
}

module attributes {stable_mosaic.version = 11 : i64} {
  func.func @_k1_conv1_stats(%arg0: i32, %arg1: i32, %arg2: memref<1x256x16xf32, #tpu.memory_space<vmem>>, %arg3: memref<16x4xbf16, #tpu.memory_space<vmem>>, %arg4: memref<1x256x4xbf16, #tpu.memory_space<vmem>>, %arg5: memref<1x1x2x4xf32, #tpu.memory_space<vmem>>) attributes {dimension_semantics = [#tpu.dimension_semantics<parallel>, #tpu.dimension_semantics<parallel>], iteration_bounds = array<i64: 2, 2>, scalar_prefetch = 0 : i64, scratch_operands = 0 : i64, tpu.core_type = #tpu.core_type<tc>, window_params = [{transform_indices = @transform_0, window_bounds = array<i64: 1, 256, 16>}, {pipeline_mode = #tpu.pipeline_mode<synchronous>, transform_indices = @transform_1, window_bounds = array<i64: 16, 4>}, {transform_indices = @transform_2, window_bounds = array<i64: 1, 256, 4>}, {transform_indices = @transform_3, window_bounds = array<i64: 1, 1, 2, 4>}]} {
    %c0 = arith.constant 0 : index
    %c0_0 = arith.constant 0 : index
    %c0_1 = arith.constant 0 : index
    %0 = vector.load %arg2[%c0, %c0_0, %c0_1] : memref<1x256x16xf32, #tpu.memory_space<vmem>>, vector<1x256x16xf32>
    %1 = vector.shape_cast %0 : vector<1x256x16xf32> to vector<256x16xf32>
    %2 = arith.truncf %1 : vector<256x16xf32> to vector<256x16xbf16>
    %c0_2 = arith.constant 0 : index
    %c0_3 = arith.constant 0 : index
    %3 = vector.load %arg3[%c0_2, %c0_3] : memref<16x4xbf16, #tpu.memory_space<vmem>>, vector<16x4xbf16>
    %cst = arith.constant dense<0.000000e+00> : vector<256x4xf32>
    %4 = tpu.matmul %2, %3, %cst {dimension_numbers = #tpu.dot_dimension_numbers<[1], [0], [0], [1], [0, 0, 1, 1], [], []>} : vector<256x16xbf16>, vector<16x4xbf16>, vector<256x4xf32> -> vector<256x4xf32>
    %5 = arith.truncf %4 : vector<256x4xf32> to vector<256x4xbf16>
    %c0_4 = arith.constant 0 : index
    %c0_5 = arith.constant 0 : index
    %c0_6 = arith.constant 0 : index
    %6 = vector.load %arg4[%c0_4, %c0_5, %c0_6] : memref<1x256x4xbf16, #tpu.memory_space<vmem>>, vector<1x256x4xbf16>
    %7 = vector.shape_cast %6 : vector<1x256x4xbf16> to vector<256x4xbf16>
    %8 = vector.shape_cast %5 : vector<256x4xbf16> to vector<1x256x4xbf16>
    tpu.vector_store %arg4[%c0_4, %c0_5, %c0_6], %8 {strides = array<i32>} : memref<1x256x4xbf16, #tpu.memory_space<vmem>>, vector<1x256x4xbf16>,
    %cst_7 = arith.constant dense<0.000000e+00> : vector<4xf32>
    %9 = vector.multi_reduction <add>, %4, %cst_7 [0] : vector<256x4xf32> to vector<4xf32>
    %10 = vector.shape_cast %9 : vector<4xf32> to vector<1x4xf32>
    %11 = arith.mulf %4, %4 : vector<256x4xf32>
    %cst_8 = arith.constant dense<0.000000e+00> : vector<4xf32>
    %12 = vector.multi_reduction <add>, %11, %cst_8 [0] : vector<256x4xf32> to vector<4xf32>
    %13 = vector.shape_cast %12 : vector<4xf32> to vector<1x4xf32>
    %14 = tpu.concatenate %10, %13 in 0 : vector<1x4xf32>, vector<1x4xf32> -> vector<2x4xf32>
    %c0_9 = arith.constant 0 : index
    %c0_10 = arith.constant 0 : index
    %c0_11 = arith.constant 0 : index
    %c0_12 = arith.constant 0 : index
    %15 = vector.load %arg5[%c0_9, %c0_10, %c0_11, %c0_12] : memref<1x1x2x4xf32, #tpu.memory_space<vmem>>, vector<1x1x2x4xf32>
    %16 = vector.shape_cast %15 : vector<1x1x2x4xf32> to vector<2x4xf32>
    %17 = vector.shape_cast %14 : vector<2x4xf32> to vector<1x1x2x4xf32>
    tpu.vector_store %arg5[%c0_9, %c0_10, %c0_11, %c0_12], %17 {strides = array<i32>} : memref<1x1x2x4xf32, #tpu.memory_space<vmem>>, vector<1x1x2x4xf32>,
    return
  }
  func.func @transform_0(%arg0: i32, %arg1: i32) -> (i32, i32, i32) {
    %c0_i32 = arith.constant 0 : i32
    %c0_i32_0 = arith.constant 0 : i32
    return %arg0, %arg1, %c0_i32 : i32, i32, i32
  }
  func.func @transform_1(%arg0: i32, %arg1: i32) -> (i32, i32) {
    %c0_i32 = arith.constant 0 : i32
    %c0_i32_0 = arith.constant 0 : i32
    %c0_i32_1 = arith.constant 0 : i32
    return %c0_i32, %c0_i32_0 : i32, i32
  }
  func.func @transform_2(%arg0: i32, %arg1: i32) -> (i32, i32, i32) {
    %c0_i32 = arith.constant 0 : i32
    %c0_i32_0 = arith.constant 0 : i32
    return %arg0, %arg1, %c0_i32 : i32, i32, i32
  }
  func.func @transform_3(%arg0: i32, %arg1: i32) -> (i32, i32, i32, i32) {
    %c0_i32 = arith.constant 0 : i32
    %c0_i32_0 = arith.constant 0 : i32
    %c0_i32_1 = arith.constant 0 : i32
    return %arg0, %arg1, %c0_i32, %c0_i32_0 : i32, i32, i32, i32
  }
}

module attributes {stable_mosaic.version = 11 : i64} {
  func.func @_k3_stats3(%arg0: i32, %arg1: i32, %arg2: memref<1x256x4xbf16, #tpu.memory_space<vmem>>, %arg3: memref<1x4xf32, #tpu.memory_space<vmem>>, %arg4: memref<1x4xf32, #tpu.memory_space<vmem>>, %arg5: memref<4x16xbf16, #tpu.memory_space<vmem>>, %arg6: memref<1x1x2x16xf32, #tpu.memory_space<vmem>>) attributes {dimension_semantics = [#tpu.dimension_semantics<parallel>, #tpu.dimension_semantics<parallel>], iteration_bounds = array<i64: 2, 2>, scalar_prefetch = 0 : i64, scratch_operands = 0 : i64, tpu.core_type = #tpu.core_type<tc>, window_params = [{transform_indices = @transform_0, window_bounds = array<i64: 1, 256, 4>}, {pipeline_mode = #tpu.pipeline_mode<synchronous>, transform_indices = @transform_1, window_bounds = array<i64: 1, 4>}, {pipeline_mode = #tpu.pipeline_mode<synchronous>, transform_indices = @transform_2, window_bounds = array<i64: 1, 4>}, {pipeline_mode = #tpu.pipeline_mode<synchronous>, transform_indices = @transform_3, window_bounds = array<i64: 4, 16>}, {transform_indices = @transform_4, window_bounds = array<i64: 1, 1, 2, 16>}]} {
    %c0 = arith.constant 0 : index
    %c0_0 = arith.constant 0 : index
    %c0_1 = arith.constant 0 : index
    %0 = vector.load %arg2[%c0, %c0_0, %c0_1] : memref<1x256x4xbf16, #tpu.memory_space<vmem>>, vector<1x256x4xbf16>
    %1 = vector.shape_cast %0 : vector<1x256x4xbf16> to vector<256x4xbf16>
    %2 = arith.extf %1 : vector<256x4xbf16> to vector<256x4xf32>
    %c0_2 = arith.constant 0 : index
    %c0_3 = arith.constant 0 : index
    %3 = vector.load %arg3[%c0_2, %c0_3] : memref<1x4xf32, #tpu.memory_space<vmem>>, vector<1x4xf32>
    %4 = vector.broadcast %3 : vector<1x4xf32> to vector<256x4xf32>
    %5 = arith.mulf %2, %4 : vector<256x4xf32>
    %c0_4 = arith.constant 0 : index
    %c0_5 = arith.constant 0 : index
    %6 = vector.load %arg4[%c0_4, %c0_5] : memref<1x4xf32, #tpu.memory_space<vmem>>, vector<1x4xf32>
    %7 = vector.broadcast %6 : vector<1x4xf32> to vector<256x4xf32>
    %8 = arith.addf %5, %7 : vector<256x4xf32>
    %cst = arith.constant 0.000000e+00 : f32
    %9 = vector.broadcast %cst : f32 to vector<256x4xf32>
    %10 = arith.maximumf %8, %9 : vector<256x4xf32>
    %11 = tpu.iota {dimensions = array<i32: 0>} : vector<256x1xi32>
    %c32_i32 = arith.constant 32 : i32
    %c0_i32 = arith.constant 0 : i32
    %12 = arith.cmpi eq, %c32_i32, %c0_i32 : i32
    %c1_i32 = arith.constant 1 : i32
    %13 = arith.select %12, %c1_i32, %c32_i32 : i32
    %14 = vector.broadcast %13 : i32 to vector<256x1xi32>
    %15 = arith.remsi %11, %14 : vector<256x1xi32>
    %c0_i32_6 = arith.constant 0 : i32
    %16 = vector.broadcast %c0_i32_6 : i32 to vector<256x1xi32>
    %17 = arith.cmpi ne, %15, %16 : vector<256x1xi32>
    %c0_i32_7 = arith.constant 0 : i32
    %18 = vector.broadcast %c0_i32_7 : i32 to vector<256x1xi32>
    %19 = arith.cmpi slt, %15, %18 : vector<256x1xi32>
    %c0_i32_8 = arith.constant 0 : i32
    %20 = arith.cmpi slt, %13, %c0_i32_8 : i32
    %21 = vector.broadcast %20 : i1 to vector<256x1xi1>
    %22 = vector.broadcast %21 : vector<256x1xi1> to vector<256x1xi1>
    %23 = arith.xori %19, %22 : vector<256x1xi1>
    %24 = arith.andi %23, %17 : vector<256x1xi1>
    %25 = vector.broadcast %13 : i32 to vector<256x1xi32>
    %26 = arith.addi %15, %25 : vector<256x1xi32>
    %27 = arith.select %24, %26, %15 : vector<256x1xi1>, vector<256x1xi32>
    %c1_i32_9 = arith.constant 1 : i32
    %28 = vector.broadcast %c1_i32_9 : i32 to vector<256x1xi32>
    %29 = arith.cmpi sge, %27, %28 : vector<256x1xi32>
    %c16_i32 = arith.constant 16 : i32
    %30 = vector.broadcast %c16_i32 : i32 to vector<256x1xi32>
    %31 = arith.cmpi sle, %27, %30 : vector<256x1xi32>
    %32 = arith.andi %29, %31 : vector<256x1xi1>
    %cst_10 = arith.constant 0.000000e+00 : f32
    %33 = vector.shape_cast %32 : vector<256x1xi1> to vector<256x1xi1>
    %34 = vector.broadcast %33 : vector<256x1xi1> to vector<256x4xi1>
    %35 = vector.broadcast %cst_10 : f32 to vector<256x4xf32>
    %36 = arith.select %34, %10, %35 : vector<256x4xi1>, vector<256x4xf32>
    %37 = arith.truncf %36 : vector<256x4xf32> to vector<256x4xbf16>
    %c0_11 = arith.constant 0 : index
    %c0_12 = arith.constant 0 : index
    %38 = vector.load %arg5[%c0_11, %c0_12] : memref<4x16xbf16, #tpu.memory_space<vmem>>, vector<4x16xbf16>
    %cst_13 = arith.constant dense<0.000000e+00> : vector<256x16xf32>
    %39 = tpu.matmul %37, %38, %cst_13 {dimension_numbers = #tpu.dot_dimension_numbers<[1], [0], [0], [1], [0, 0, 1, 1], [], []>} : vector<256x4xbf16>, vector<4x16xbf16>, vector<256x16xf32> -> vector<256x16xf32>
    %cst_14 = arith.constant dense<0.000000e+00> : vector<16xf32>
    %40 = vector.multi_reduction <add>, %39, %cst_14 [0] : vector<256x16xf32> to vector<16xf32>
    %41 = vector.shape_cast %40 : vector<16xf32> to vector<1x16xf32>
    %42 = arith.mulf %39, %39 : vector<256x16xf32>
    %cst_15 = arith.constant dense<0.000000e+00> : vector<16xf32>
    %43 = vector.multi_reduction <add>, %42, %cst_15 [0] : vector<256x16xf32> to vector<16xf32>
    %44 = vector.shape_cast %43 : vector<16xf32> to vector<1x16xf32>
    %45 = tpu.concatenate %41, %44 in 0 : vector<1x16xf32>, vector<1x16xf32> -> vector<2x16xf32>
    %c0_16 = arith.constant 0 : index
    %c0_17 = arith.constant 0 : index
    %c0_18 = arith.constant 0 : index
    %c0_19 = arith.constant 0 : index
    %46 = vector.load %arg6[%c0_16, %c0_17, %c0_18, %c0_19] : memref<1x1x2x16xf32, #tpu.memory_space<vmem>>, vector<1x1x2x16xf32>
    %47 = vector.shape_cast %46 : vector<1x1x2x16xf32> to vector<2x16xf32>
    %48 = vector.shape_cast %45 : vector<2x16xf32> to vector<1x1x2x16xf32>
    tpu.vector_store %arg6[%c0_16, %c0_17, %c0_18, %c0_19], %48 {strides = array<i32>} : memref<1x1x2x16xf32, #tpu.memory_space<vmem>>, vector<1x1x2x16xf32>,
    return
  }
  func.func @transform_0(%arg0: i32, %arg1: i32) -> (i32, i32, i32) {
    %c0_i32 = arith.constant 0 : i32
    %c0_i32_0 = arith.constant 0 : i32
    return %arg0, %arg1, %c0_i32 : i32, i32, i32
  }
  func.func @transform_1(%arg0: i32, %arg1: i32) -> (i32, i32) {
    %c0_i32 = arith.constant 0 : i32
    %c0_i32_0 = arith.constant 0 : i32
    %c0_i32_1 = arith.constant 0 : i32
    return %c0_i32, %c0_i32_0 : i32, i32
  }
  func.func @transform_2(%arg0: i32, %arg1: i32) -> (i32, i32) {
    %c0_i32 = arith.constant 0 : i32
    %c0_i32_0 = arith.constant 0 : i32
    %c0_i32_1 = arith.constant 0 : i32
    return %c0_i32, %c0_i32_0 : i32, i32
  }
  func.func @transform_3(%arg0: i32, %arg1: i32) -> (i32, i32) {
    %c0_i32 = arith.constant 0 : i32
    %c0_i32_0 = arith.constant 0 : i32
    %c0_i32_1 = arith.constant 0 : i32
    return %c0_i32, %c0_i32_0 : i32, i32
  }
  func.func @transform_4(%arg0: i32, %arg1: i32) -> (i32, i32, i32, i32) {
    %c0_i32 = arith.constant 0 : i32
    %c0_i32_0 = arith.constant 0 : i32
    %c0_i32_1 = arith.constant 0 : i32
    return %arg0, %arg1, %c0_i32, %c0_i32_0 : i32, i32, i32, i32
  }
}

module attributes {stable_mosaic.version = 11 : i64} {
  func.func @_k4_finalize(%arg0: i32, %arg1: i32, %arg2: memref<1x256x4xbf16, #tpu.memory_space<vmem>>, %arg3: memref<1x256x16xf32, #tpu.memory_space<vmem>>, %arg4: memref<1x4xf32, #tpu.memory_space<vmem>>, %arg5: memref<1x4xf32, #tpu.memory_space<vmem>>, %arg6: memref<4x16xbf16, #tpu.memory_space<vmem>>, %arg7: memref<1x16xf32, #tpu.memory_space<vmem>>, %arg8: memref<1x16xf32, #tpu.memory_space<vmem>>, %arg9: memref<1x8x16x16xf32, #tpu.memory_space<vmem>>) attributes {dimension_semantics = [#tpu.dimension_semantics<parallel>, #tpu.dimension_semantics<parallel>], iteration_bounds = array<i64: 2, 2>, scalar_prefetch = 0 : i64, scratch_operands = 0 : i64, tpu.core_type = #tpu.core_type<tc>, window_params = [{transform_indices = @transform_0, window_bounds = array<i64: 1, 256, 4>}, {transform_indices = @transform_1, window_bounds = array<i64: 1, 256, 16>}, {pipeline_mode = #tpu.pipeline_mode<synchronous>, transform_indices = @transform_2, window_bounds = array<i64: 1, 4>}, {pipeline_mode = #tpu.pipeline_mode<synchronous>, transform_indices = @transform_3, window_bounds = array<i64: 1, 4>}, {pipeline_mode = #tpu.pipeline_mode<synchronous>, transform_indices = @transform_4, window_bounds = array<i64: 4, 16>}, {pipeline_mode = #tpu.pipeline_mode<synchronous>, transform_indices = @transform_5, window_bounds = array<i64: 1, 16>}, {pipeline_mode = #tpu.pipeline_mode<synchronous>, transform_indices = @transform_6, window_bounds = array<i64: 1, 16>}, {transform_indices = @transform_7, window_bounds = array<i64: 1, 8, 16, 16>}]} {
    %c0 = arith.constant 0 : index
    %c0_0 = arith.constant 0 : index
    %c0_1 = arith.constant 0 : index
    %0 = vector.load %arg2[%c0, %c0_0, %c0_1] : memref<1x256x4xbf16, #tpu.memory_space<vmem>>, vector<1x256x4xbf16>
    %1 = vector.shape_cast %0 : vector<1x256x4xbf16> to vector<256x4xbf16>
    %2 = arith.extf %1 : vector<256x4xbf16> to vector<256x4xf32>
    %c0_2 = arith.constant 0 : index
    %c0_3 = arith.constant 0 : index
    %3 = vector.load %arg4[%c0_2, %c0_3] : memref<1x4xf32, #tpu.memory_space<vmem>>, vector<1x4xf32>
    %4 = vector.broadcast %3 : vector<1x4xf32> to vector<256x4xf32>
    %5 = arith.mulf %2, %4 : vector<256x4xf32>
    %c0_4 = arith.constant 0 : index
    %c0_5 = arith.constant 0 : index
    %6 = vector.load %arg5[%c0_4, %c0_5] : memref<1x4xf32, #tpu.memory_space<vmem>>, vector<1x4xf32>
    %7 = vector.broadcast %6 : vector<1x4xf32> to vector<256x4xf32>
    %8 = arith.addf %5, %7 : vector<256x4xf32>
    %cst = arith.constant 0.000000e+00 : f32
    %9 = vector.broadcast %cst : f32 to vector<256x4xf32>
    %10 = arith.maximumf %8, %9 : vector<256x4xf32>
    %11 = arith.truncf %10 : vector<256x4xf32> to vector<256x4xbf16>
    %c0_6 = arith.constant 0 : index
    %c0_7 = arith.constant 0 : index
    %12 = vector.load %arg6[%c0_6, %c0_7] : memref<4x16xbf16, #tpu.memory_space<vmem>>, vector<4x16xbf16>
    %cst_8 = arith.constant dense<0.000000e+00> : vector<256x16xf32>
    %13 = tpu.matmul %11, %12, %cst_8 {dimension_numbers = #tpu.dot_dimension_numbers<[1], [0], [0], [1], [0, 0, 1, 1], [], []>} : vector<256x4xbf16>, vector<4x16xbf16>, vector<256x16xf32> -> vector<256x16xf32>
    %c0_9 = arith.constant 0 : index
    %c0_10 = arith.constant 0 : index
    %14 = vector.load %arg7[%c0_9, %c0_10] : memref<1x16xf32, #tpu.memory_space<vmem>>, vector<1x16xf32>
    %15 = vector.broadcast %14 : vector<1x16xf32> to vector<256x16xf32>
    %16 = arith.mulf %13, %15 : vector<256x16xf32>
    %c0_11 = arith.constant 0 : index
    %c0_12 = arith.constant 0 : index
    %17 = vector.load %arg8[%c0_11, %c0_12] : memref<1x16xf32, #tpu.memory_space<vmem>>, vector<1x16xf32>
    %18 = vector.broadcast %17 : vector<1x16xf32> to vector<256x16xf32>
    %19 = arith.addf %16, %18 : vector<256x16xf32>
    %c0_13 = arith.constant 0 : index
    %c0_14 = arith.constant 0 : index
    %c0_15 = arith.constant 0 : index
    %20 = vector.load %arg3[%c0_13, %c0_14, %c0_15] : memref<1x256x16xf32, #tpu.memory_space<vmem>>, vector<1x256x16xf32>
    %21 = vector.shape_cast %20 : vector<1x256x16xf32> to vector<256x16xf32>
    %22 = arith.addf %19, %21 : vector<256x16xf32>
    %23 = vector.shape_cast %22 : vector<256x16xf32> to vector<8x32x16xf32>
    %24 = vector.extract_strided_slice %23 {offsets = [0, 1, 0], sizes = [8, 16, 16], strides = [1, 1, 1]} : vector<8x32x16xf32> to vector<8x16x16xf32>
    %c0_16 = arith.constant 0 : index
    %c0_17 = arith.constant 0 : index
    %c0_18 = arith.constant 0 : index
    %c0_19 = arith.constant 0 : index
    %25 = vector.load %arg9[%c0_16, %c0_17, %c0_18, %c0_19] : memref<1x8x16x16xf32, #tpu.memory_space<vmem>>, vector<1x8x16x16xf32>
    %26 = vector.shape_cast %25 : vector<1x8x16x16xf32> to vector<8x16x16xf32>
    %27 = vector.shape_cast %24 : vector<8x16x16xf32> to vector<1x8x16x16xf32>
    tpu.vector_store %arg9[%c0_16, %c0_17, %c0_18, %c0_19], %27 {strides = array<i32>} : memref<1x8x16x16xf32, #tpu.memory_space<vmem>>, vector<1x8x16x16xf32>,
    return
  }
  func.func @transform_0(%arg0: i32, %arg1: i32) -> (i32, i32, i32) {
    %c0_i32 = arith.constant 0 : i32
    %c0_i32_0 = arith.constant 0 : i32
    return %arg0, %arg1, %c0_i32 : i32, i32, i32
  }
  func.func @transform_1(%arg0: i32, %arg1: i32) -> (i32, i32, i32) {
    %c0_i32 = arith.constant 0 : i32
    %c0_i32_0 = arith.constant 0 : i32
    return %arg0, %arg1, %c0_i32 : i32, i32, i32
  }
  func.func @transform_2(%arg0: i32, %arg1: i32) -> (i32, i32) {
    %c0_i32 = arith.constant 0 : i32
    %c0_i32_0 = arith.constant 0 : i32
    %c0_i32_1 = arith.constant 0 : i32
    return %c0_i32, %c0_i32_0 : i32, i32
  }
  func.func @transform_3(%arg0: i32, %arg1: i32) -> (i32, i32) {
    %c0_i32 = arith.constant 0 : i32
    %c0_i32_0 = arith.constant 0 : i32
    %c0_i32_1 = arith.constant 0 : i32
    return %c0_i32, %c0_i32_0 : i32, i32
  }
  func.func @transform_4(%arg0: i32, %arg1: i32) -> (i32, i32) {
    %c0_i32 = arith.constant 0 : i32
    %c0_i32_0 = arith.constant 0 : i32
    %c0_i32_1 = arith.constant 0 : i32
    return %c0_i32, %c0_i32_0 : i32, i32
  }
  func.func @transform_5(%arg0: i32, %arg1: i32) -> (i32, i32) {
    %c0_i32 = arith.constant 0 : i32
    %c0_i32_0 = arith.constant 0 : i32
    %c0_i32_1 = arith.constant 0 : i32
    return %c0_i32, %c0_i32_0 : i32, i32
  }
  func.func @transform_6(%arg0: i32, %arg1: i32) -> (i32, i32) {
    %c0_i32 = arith.constant 0 : i32
    %c0_i32_0 = arith.constant 0 : i32
    %c0_i32_1 = arith.constant 0 : i32
    return %c0_i32, %c0_i32_0 : i32, i32
  }
  func.func @transform_7(%arg0: i32, %arg1: i32) -> (i32, i32, i32, i32) {
    %c0_i32 = arith.constant 0 : i32
    %c0_i32_0 = arith.constant 0 : i32
    %c0_i32_1 = arith.constant 0 : i32
    return %arg0, %arg1, %c0_i32, %c0_i32_0 : i32, i32, i32, i32
  }
}

</mosaic_0001>

<bundles_post_ra>
// kernel: bottleneck_forward.4
= control target key start
LH: loop header
LB: loop body
LE: loop exit
PB: predicated region body
PF: predicated region fallthrough
CT: control target
= control target key end

     0   :  { %s1221_s12 = smov 0   ;;  %s1223_s13 = smov 0   ;;  %s1583_s0 = inlined_call_operand.vmem [shape: f32[2,512,16], index: 0, kind: input, shape index: {}]   ;;  %s1584_s1 = inlined_call_operand.vmem [shape: bf16[16,4], index: 1, kind: input, shape index: {}]   ;;  %s1585_s2 = inlined_call_operand.vmem [shape: bf16[2,512,4], index: 2, kind: output, shape index: {0}]   ;;  %s1586_s3 = inlined_call_operand.vmem [shape: f32[2,2,2,4], index: 3, kind: output, shape index: {1}]  }
   0x1   :  { %s1225_s14 = smov 0   ;;  %s1227_s15 = smov 0  }
   0x2   :  { %s1229_s16 = smov 0  }
   0x3 LB: > { %s23_s17 = sadd.s32 1, %s1191_s14  ;;  %s26_s18 = sadd.s32 1, %s1195_s15  ;;  %s1199_s16 = sphi %s1229_s16, %s14_s16   ;;  %s1195_s15 = sphi %s1227_s15, %s1590_s15   ;;  %s1191_s14 = sphi %s1225_s14, %s1589_s14   ;;  %s1187_s13 = sphi %s1223_s13, %s1588_s13   ;;  %s1183_s12 = sphi %s1221_s12, %s1587_s12  }
   0x4   : > { %p24_p0 = scmp.ge.s32.totalorder %s23_s17, 2  ;;  %p975_p1 = scmp.ge.s32.totalorder %s1199_s16, 1 }
   0x5   : > { %p163_p2 = scmp.lt.s32.totalorder %s1199_s16, 5 }
   0x6   : > { %s1592_s17 = smov (%p24_p0, %s23_s17), 0  ;;  %s1594_s18 = smov (!%p24_p0, %s26_s18), %s1195_s15 }
   0x7   : > { %p164_p3 = pnand %p975_p1, %p163_p2  ;;  %p28_p4 = scmp.ge.s32.totalorder %s1594_s18, 2 }
   0x8   : > { %v1160_v0 = vld [vmem:[%s1584_s1] sm:$0xff] (!%p164_p3)   ;;  %s976_s21 = sshll.u32 (!%p164_p3), %s1183_s12, 5  ;;  %p204_p5 = scmp.lt.s32.totalorder (!%p164_p3), %s1187_s13, 1  ;;  %vm288_vm0 = vcmask (!%p164_p3), 130048   ;;  %vm626_vm1 = vcmask (!%p164_p3), 27648   ;;  %vm659_vm2 = vcmask (!%p164_p3), 31744  }
   0x9   : > { %s1596_s18 = smov (%p28_p4, %s1594_s18), 0  ;;  %167 = sbr.rel (%p164_p3) target bundleno = 319 (0x13f), region = 28 }
   0xa   : > { %p206_p6 = scmp.lt.s32.totalorder (!%p164_p3), %s976_s21, 63  ;;  %1084 = vmatprep.subr.bf16.mxu0 (!%p164_p3), %v1160_v0  ;;  %1118 = vmatprep.subr.bf16.mxu1 (!%p164_p3), %v1160_v0  ;;  %p225_p7 = scmp.lt.s32.totalorder (!%p164_p3), %s1183_s12, 1  ;;  %vm830_vm3 = vcmask (!%p164_p3), 1040384   ;;  %vm832_vm4 = vcmask (!%p164_p3), 25600  }
   0xb   : > { %1085 = vmatpush3.bf16.msra.mxu0 (!%p164_p3), %v1160_v0  ;;  %1119 = vmatpush3.bf16.msra.mxu1 (!%p164_p3), %v1160_v0 }
  0x10   : > { %s1598_s13 = smov (!%p204_p5, %s1187_s13), 1  ;;  %s1600_s21 = smov (!%p206_p6, %s976_s21), 63 }
  0x11   : > { %s977_s22 = sshll.u32 %s1598_s13, 6  ;;  %s1602_s12 = smov (!%p225_p7, %s1183_s12), 1 }
  0x12   : > { %s1260_s23 = sadd.s32 %s977_s22, %s1600_s21  ;;  %s982_s5 = sshll.u32 %s1598_s13, 1 }
  0x13   : > { %s978_s24 = sshll.u32 %s1260_s23, 3  ;;  %s981_s28 = sshll.u32 %s1260_s23, 2 }
  0x14   : > { %s1266_s27 = scalar_lea.vmem %s1583_s0, %s978_s24  ;;  %s1320_s4 = scalar_lea.vmem %s1585_s2, %s981_s28 }
  0x15   : > { %v232_v1 = vld [vmem:[%s1266_s27] sm:$0xff]  ;;  %v233_v2 = vld [vmem:[%s1266_s27 + $0x8] sm:$0xff]  ;;  %v234_v3 = vld [vmem:[%s1266_s27 + $0x10] sm:$0xff]  ;;  %s228_s6 = sadd.s32 %s982_s5, %s1602_s12 }
  0x16   : > { %v264_v4 = vpack.c.bf16 %v233_v2, %v232_v1  ;;  %v235_v5 = vld [vmem:[%s1266_s27 + $0x18] sm:$0xff]  ;;  %v236_v6 = vld [vmem:[%s1266_s27 + $0x20] sm:$0xff]  ;;  %v237_v7 = vld [vmem:[%s1266_s27 + $0x28] sm:$0xff]  ;;  %s983_s7 = sshll.u32 %s228_s6, 1 }
  0x17   : > { %v265_v8 = vpack.c.bf16 %v235_v5, %v234_v3  ;;  %v266_v9 = vpack.c.bf16 %v237_v7, %v236_v6  ;;  %v238_v10 = vld [vmem:[%s1266_s27 + $0x30] sm:$0xff]  ;;  %v239_v11 = vld [vmem:[%s1266_s27 + $0x38] sm:$0xff]  ;;  %v240_v12 = vld [vmem:[%s1266_s27 + $0x40] sm:$0xff]  ;;  %s230_s10 = scalar_lea.vmem %s1586_s3, %s983_s7 }
  0x18   : > { %1086 = vmatprep.mubr.msk.bf16.mxu0 %vm288_vm0, %v264_v4  ;;  %v241_v13 = vld [vmem:[%s1266_s27 + $0x48] sm:$0xff]  ;;  %v248_v14 = vld [vmem:[%s1266_s27 + $0x80] sm:$0xff]  ;;  %v250_v17 = vld [vmem:[%s1266_s27 + $0x90] sm:$0xff]  ;;  %v267_v22 = vpack.c.bf16 %v239_v11, %v238_v10 }
  0x19   : > { %1087 = vmatmul.mubr.msk.bf16.vlgmr.msra.gmra.mrb[0].mxu0 %vm288_vm0, %v265_v8  ;;  %v249_v15 = vld [vmem:[%s1266_s27 + $0x88] sm:$0xff]  ;;  %v251_v18 = vld [vmem:[%s1266_s27 + $0x98] sm:$0xff]  ;;  %v252_v19 = vld [vmem:[%s1266_s27 + $0xa0] sm:$0xff]  ;;  %v268_v24 = vpack.c.bf16 %v241_v13, %v240_v12 }
  0x1a   : > { %1090 = vmatprep.mubr.msk.bf16.mxu0 %vm288_vm0, %v266_v9  ;;  %v272_v16 = vpack.c.bf16 %v249_v15, %v248_v14  ;;  %v273_v20 = vpack.c.bf16 %v251_v18, %v250_v17  ;;  %v253_v21 = vld [vmem:[%s1266_s27 + $0xa8] sm:$0xff]  ;;  %v254_v25 = vld [vmem:[%s1266_s27 + $0xb0] sm:$0xff]  ;;  %v255_v26 = vld [vmem:[%s1266_s27 + $0xb8] sm:$0xff] }
  0x1b   : > { %v274_v23 = vpack.c.bf16 %v253_v21, %v252_v19  ;;  %v256_v27 = vld [vmem:[%s1266_s27 + $0xc0] sm:$0xff]  ;;  %v257_v28 = vld [vmem:[%s1266_s27 + $0xc8] sm:$0xff]  ;;  %v242_v29 = vld [vmem:[%s1266_s27 + $0x50] sm:$0xff]  ;;  %v275_v31 = vpack.c.bf16 %v255_v26, %v254_v25 }
  0x1c   : > { %1102 = vmatprep.mubr.msk.bf16.mxu1 %vm288_vm0, %v272_v16  ;;  %v243_v30 = vld [vmem:[%s1266_s27 + $0x58] sm:$0xff]  ;;  %v244_v32 = vld [vmem:[%s1266_s27 + $0x60] sm:$0xff]  ;;  %v245_v33 = vld [vmem:[%s1266_s27 + $0x68] sm:$0xff]  ;;  %v276_v34 = vpack.c.bf16 %v257_v28, %v256_v27 }
  0x1d   : > { %1103 = vmatmul.mubr.msk.bf16.vlgmr.msra.gmra.mrb[0].mxu1 %vm288_vm0, %v273_v20  ;;  %v269_v35 = vpack.c.bf16 %v243_v30, %v242_v29  ;;  %v270_v36 = vpack.c.bf16 %v245_v33, %v244_v32  ;;  %v258_v37 = vld [vmem:[%s1266_s27 + $0xd0] sm:$0xff]  ;;  %v259_v38 = vld [vmem:[%s1266_s27 + $0xd8] sm:$0xff]  ;;  %v260_v39 = vld [vmem:[%s1266_s27 + $0xe0] sm:$0xff] }
  0x1e   : > { %1106 = vmatprep.mubr.msk.bf16.mxu1 %vm288_vm0, %v274_v23  ;;  %v261_v40 = vld [vmem:[%s1266_s27 + $0xe8] sm:$0xff]  ;;  %v246_v41 = vld [vmem:[%s1266_s27 + $0x70] sm:$0xff]  ;;  %v247_v42 = vld [vmem:[%s1266_s27 + $0x78] sm:$0xff]  ;;  %v277_v43 = vpack.c.bf16 %v259_v38, %v258_v37 }
  0x1f   : > { %v278_v44 = vpack.c.bf16 %v261_v40, %v260_v39  ;;  %v271_v45 = vpack.c.bf16 %v247_v42, %v246_v41  ;;  %v262_v46 = vld [vmem:[%s1266_s27 + $0xf0] sm:$0xff]  ;;  %v263_v47 = vld [vmem:[%s1266_s27 + $0xf8] sm:$0xff] }
  0x20   : > { %v279_v48 = vpack.c.bf16 %v263_v47, %v262_v46 }
  0x21   : > { %1091 = vmatmul.mubr.msk.bf16.gmra.mrb[4].mxu0 %vm288_vm0, %v267_v22 }
  0x22   : > { %1094 = vmatprep.mubr.msk.bf16.mxu0 %vm288_vm0, %v268_v24 }
  0x25   : > { %1107 = vmatmul.mubr.msk.bf16.gmra.mrb[4].mxu1 %vm288_vm0, %v275_v31 }
  0x26   : > { %1110 = vmatprep.mubr.msk.bf16.mxu1 %vm288_vm0, %v276_v34 }
  0x29   : > { %1095 = vmatmul.mubr.msk.bf16.gmra.mrb[8].mxu0 %vm288_vm0, %v269_v35 }
  0x2a   : > { %1098 = vmatprep.mubr.msk.bf16.mxu0 %vm288_vm0, %v270_v36 }
  0x2d   : > { %1111 = vmatmul.mubr.msk.bf16.gmra.mrb[8].mxu1 %vm288_vm0, %v277_v43 }
  0x2e   : > { %1114 = vmatprep.mubr.msk.bf16.mxu1 %vm288_vm0, %v278_v44 }
  0x31   : > { %1099 = vmatmul.mubr.msk.bf16.gmra.mrb[12].mxu0 %vm288_vm0, %v271_v45 }
  0x35   : > { %1115 = vmatmul.mubr.msk.bf16.gmra.mrb[12].mxu1 %vm288_vm0, %v279_v48 }
  0xec   : > { %v1088_v49 = vpop.f32.mrb[0].mxu0 }
  0xed   : > { %v1037_v50 = vpack.c.bf16 %v1088_v49, %v1088_v49  ;;  %v371_v51 = vpop.f32.mrb[1].mxu0  ;;  %v731_v55 = vmul.f32 %v1088_v49, %v1088_v49  ;;  %v663_v1 = vsel %vm659_vm2, %v1088_v49, 0.0 }
  0xee   : > { %v1035_v52 = vpack.c.bf16 %v371_v51, %v371_v51  ;;  %v729_v53 = vmul.f32 %v371_v51, %v371_v51  ;;  %v1089_v54 = vpop.f32.mrb[2].mxu0  ;;  %v660_v58 = vsel %vm659_vm2, %v371_v51, 0.0 }
  0xef   : > { %629 = vst.msk [vmem:[%s1320_s4 + $0x8] sm:$0xf] %vm626_vm1, %v1037_v50  ;;  %v1038_v56 = vpack.c.bf16 %v1089_v54, %v1089_v54  ;;  %v374_v57 = vpop.f32.mrb[3].mxu0  ;;  %v732_v62 = vmul.f32 %v1089_v54, %v1089_v54  ;;  %v764_v10 = vsel %vm659_vm2, %v731_v55, 0.0  ;;  %v665_v14 = vsel %vm659_vm2, %v1089_v54, 0.0 }
  0xf0   : > { %627 = vst.msk [vmem:[%s1320_s4] sm:$0xf] %vm626_vm1, %v1035_v52  ;;  %v1036_v59 = vpack.c.bf16 %v374_v57, %v374_v57  ;;  %v661_v60 = vsel %vm659_vm2, %v374_v57, 0.0  ;;  %v730_v61 = vmul.f32 %v374_v57, %v374_v57  ;;  %v1330_v0 = vpop.f32.mrb[0].mxu1  ;;  %v761_v2 = vsel %vm659_vm2, %v729_v53, 0.0 }
  0xf1   : > { %630 = vst.msk [vmem:[%s1320_s4 + $0xc] sm:$0xf] %vm626_vm1, %v1038_v56  ;;  %v662_v63 = vadd.f32 %v661_v60, %v660_v58  ;;  %v1053_v4 = vpack.c.bf16 %v1330_v0, %v1330_v0  ;;  %v1339_v5 = vpop.f32.mrb[1].mxu1  ;;  %v766_v15 = vsel %vm659_vm2, %v732_v62, 0.0 }
  0xf2   : > { %628 = vst.msk [vmem:[%s1320_s4 + $0x4] sm:$0xf] %vm626_vm1, %v1036_v59  ;;  %v762_v3 = vsel %vm659_vm2, %v730_v61, 0.0  ;;  %v1051_v8 = vpack.c.bf16 %v1339_v5, %v1339_v5  ;;  %v1343_v9 = vpop.f32.mrb[2].mxu1 }
  0xf3   : > { %v664_v6 = vadd.f32 %v663_v1, %v662_v63  ;;  %v763_v7 = vadd.f32 %v762_v3, %v761_v2  ;;  %645 = vst.msk [vmem:[%s1320_s4 + $0x48] sm:$0xf] %vm626_vm1, %v1053_v4  ;;  %v1054_v12 = vpack.c.bf16 %v1343_v9, %v1343_v9  ;;  %v1350_v13 = vpop.f32.mrb[3].mxu1 }
  0xf4   : > { %v1092_v11 = vpop.f32.mrb[4].mxu0  ;;  %643 = vst.msk [vmem:[%s1320_s4 + $0x40] sm:$0xf] %vm626_vm1, %v1051_v8  ;;  %v1052_v36 = vpack.c.bf16 %v1350_v13, %v1350_v13 }
  0xf5   : > { %v765_v16 = vadd.f32 %v764_v10, %v763_v7  ;;  %v1041_v17 = vpack.c.bf16 %v1092_v11, %v1092_v11  ;;  %v387_v18 = vpop.f32.mrb[5].mxu0  ;;  %v666_v20 = vadd.f32 %v665_v14, %v664_v6  ;;  %646 = vst.msk [vmem:[%s1320_s4 + $0x4c] sm:$0xf] %vm626_vm1, %v1054_v12  ;;  %v735_v30 = vmul.f32 %v1092_v11, %v1092_v11 }
  0xf6   : > { %v1039_v19 = vpack.c.bf16 %v387_v18, %v387_v18  ;;  %v667_v21 = vsel %vm659_vm2, %v387_v18, 0.0  ;;  %v733_v22 = vmul.f32 %v387_v18, %v387_v18  ;;  %v1093_v23 = vpop.f32.mrb[6].mxu0  ;;  %v671_v38 = vsel %vm659_vm2, %v1092_v11, 0.0  ;;  %644 = vst.msk [vmem:[%s1320_s4 + $0x44] sm:$0xf] %vm626_vm1, %v1052_v36 }
  0xf7   : > { %633 = vst.msk [vmem:[%s1320_s4 + $0x18] sm:$0xf] %vm626_vm1, %v1041_v17  ;;  %v767_v24 = vadd.f32 %v766_v15, %v765_v16  ;;  %v1042_v25 = vpack.c.bf16 %v1093_v23, %v1093_v23  ;;  %v390_v26 = vpop.f32.mrb[7].mxu0  ;;  %v668_v27 = vadd.f32 %v667_v21, %v666_v20  ;;  %v736_v39 = vmul.f32 %v1093_v23, %v1093_v23 }
  0xf8   : > { %631 = vst.msk [vmem:[%s1320_s4 + $0x10] sm:$0xf] %vm626_vm1, %v1039_v19  ;;  %v768_v28 = vsel %vm659_vm2, %v733_v22, 0.0  ;;  %v1040_v29 = vpack.c.bf16 %v390_v26, %v390_v26  ;;  %v669_v32 = vsel %vm659_vm2, %v390_v26, 0.0  ;;  %v734_v33 = vmul.f32 %v390_v26, %v390_v26  ;;  %v1367_v34 = vpop.f32.mrb[4].mxu1 }
  0xf9   : > { %v769_v31 = vadd.f32 %v768_v28, %v767_v24  ;;  %634 = vst.msk [vmem:[%s1320_s4 + $0x1c] sm:$0xf] %vm626_vm1, %v1042_v25  ;;  %v670_v35 = vadd.f32 %v669_v32, %v668_v27  ;;  %v1373_v37 = vpop.f32.mrb[5].mxu1  ;;  %v1057_v41 = vpack.c.bf16 %v1367_v34, %v1367_v34  ;;  %v772_v47 = vsel %vm659_vm2, %v735_v30, 0.0 }
  0xfa   : > { %632 = vst.msk [vmem:[%s1320_s4 + $0x14] sm:$0xf] %vm626_vm1, %v1040_v29  ;;  %v770_v40 = vsel %vm659_vm2, %v734_v33, 0.0  ;;  %v1379_v42 = vpop.f32.mrb[6].mxu1  ;;  %v673_v48 = vsel %vm659_vm2, %v1093_v23, 0.0  ;;  %v774_v56 = vsel %vm659_vm2, %v736_v39, 0.0  ;;  %v1055_v8 = vpack.c.bf16 %v1373_v37, %v1373_v37 }
  0xfb   : > { %v672_v43 = vadd.f32 %v671_v38, %v670_v35  ;;  %v771_v44 = vadd.f32 %v770_v40, %v769_v31  ;;  %v1383_v46 = vpop.f32.mrb[7].mxu1  ;;  %649 = vst.msk [vmem:[%s1320_s4 + $0x58] sm:$0xf] %vm626_vm1, %v1057_v41  ;;  %v1058_v19 = vpack.c.bf16 %v1379_v42, %v1379_v42 }
  0xfc   : > { %v1096_v45 = vpop.f32.mrb[8].mxu0  ;;  %647 = vst.msk [vmem:[%s1320_s4 + $0x50] sm:$0xf] %vm626_vm1, %v1055_v8 }
  0xfd   : > { %v1045_v49 = vpack.c.bf16 %v1096_v45, %v1096_v45  ;;  %v403_v50 = vpop.f32.mrb[9].mxu0  ;;  %v773_v51 = vadd.f32 %v772_v47, %v771_v44  ;;  %v674_v53 = vadd.f32 %v673_v48, %v672_v43  ;;  %v739_v63 = vmul.f32 %v1096_v45, %v1096_v45  ;;  %650 = vst.msk [vmem:[%s1320_s4 + $0x5c] sm:$0xf] %vm626_vm1, %v1058_v19 }
  0xfe   : > { %v1043_v52 = vpack.c.bf16 %v403_v50, %v403_v50  ;;  %v675_v54 = vsel %vm659_vm2, %v403_v50, 0.0  ;;  %v1097_v55 = vpop.f32.mrb[10].mxu0  ;;  %v737_v57 = vmul.f32 %v403_v50, %v403_v50  ;;  %v679_v11 = vsel %vm659_vm2, %v1096_v45, 0.0 }
  0xff   : > { %637 = vst.msk [vmem:[%s1320_s4 + $0x28] sm:$0xf] %vm626_vm1, %v1045_v49  ;;  %v1046_v58 = vpack.c.bf16 %v1097_v55, %v1097_v55  ;;  %v406_v59 = vpop.f32.mrb[11].mxu0  ;;  %v676_v60 = vadd.f32 %v675_v54, %v674_v53  ;;  %v775_v61 = vadd.f32 %v774_v56, %v773_v51  ;;  %v740_v12 = vmul.f32 %v1097_v55, %v1097_v55 }
 0x100   : > { %635 = vst.msk [vmem:[%s1320_s4 + $0x20] sm:$0xf] %vm626_vm1, %v1043_v52  ;;  %v1044_v62 = vpack.c.bf16 %v406_v59, %v406_v59  ;;  %v776_v1 = vsel %vm659_vm2, %v737_v57, 0.0  ;;  %v677_v2 = vsel %vm659_vm2, %v406_v59, 0.0  ;;  %v738_v3 = vmul.f32 %v406_v59, %v406_v59  ;;  %v1399_v4 = vpop.f32.mrb[8].mxu1 }
 0x101   : > { %638 = vst.msk [vmem:[%s1320_s4 + $0x2c] sm:$0xf] %vm626_vm1, %v1046_v58  ;;  %v777_v6 = vadd.f32 %v776_v1, %v775_v61  ;;  %v678_v7 = vadd.f32 %v677_v2, %v676_v60  ;;  %v1405_v10 = vpop.f32.mrb[9].mxu1  ;;  %v780_v21 = vsel %vm659_vm2, %v739_v63, 0.0  ;;  %v681_v22 = vsel %vm659_vm2, %v1097_v55, 0.0 }
 0x102   : > { %636 = vst.msk [vmem:[%s1320_s4 + $0x24] sm:$0xf] %vm626_vm1, %v1044_v62  ;;  %v778_v14 = vsel %vm659_vm2, %v738_v3, 0.0  ;;  %v1409_v15 = vpop.f32.mrb[10].mxu1  ;;  %v782_v30 = vsel %vm659_vm2, %v740_v12, 0.0  ;;  %v1056_v48 = vpack.c.bf16 %v1383_v46, %v1383_v46  ;;  %v745_v53 = vmul.f32 %v1339_v5, %v1339_v5 }
 0x103   : > { %v680_v16 = vadd.f32 %v679_v11, %v678_v7  ;;  %v779_v17 = vadd.f32 %v778_v14, %v777_v6  ;;  %v1415_v20 = vpop.f32.mrb[11].mxu1  ;;  %v1061_v57 = vpack.c.bf16 %v1399_v4, %v1399_v4  ;;  %v691_v61 = vsel %vm659_vm2, %v1339_v5, 0.0 }
 0x104   : > { %v1100_v18 = vpop.f32.mrb[12].mxu0  ;;  %648 = vst.msk [vmem:[%s1320_s4 + $0x54] sm:$0xf] %vm626_vm1, %v1056_v48  ;;  %v1059_v62 = vpack.c.bf16 %v1405_v10, %v1405_v10  ;;  %v1062_v2 = vpack.c.bf16 %v1409_v15, %v1409_v15  ;;  %v792_v6 = vsel %vm659_vm2, %v745_v53, 0.0  ;;  %v746_v7 = vmul.f32 %v1350_v13, %v1350_v13 }
 0x105   : > { %v1049_v23 = vpack.c.bf16 %v1100_v18, %v1100_v18  ;;  %v419_v24 = vpop.f32.mrb[13].mxu0  ;;  %v781_v25 = vadd.f32 %v780_v21, %v779_v17  ;;  %v682_v27 = vadd.f32 %v681_v22, %v680_v16  ;;  %v743_v39 = vmul.f32 %v1100_v18, %v1100_v18  ;;  %653 = vst.msk [vmem:[%s1320_s4 + $0x68] sm:$0xf] %vm626_vm1, %v1061_v57 }
 0x106   : > { %v1047_v26 = vpack.c.bf16 %v419_v24, %v419_v24  ;;  %v683_v28 = vsel %vm659_vm2, %v419_v24, 0.0  ;;  %v1101_v29 = vpop.f32.mrb[14].mxu0  ;;  %v741_v31 = vmul.f32 %v419_v24, %v419_v24  ;;  %v687_v50 = vsel %vm659_vm2, %v1100_v18, 0.0  ;;  %651 = vst.msk [vmem:[%s1320_s4 + $0x60] sm:$0xf] %vm626_vm1, %v1059_v62 }
 0x107   : > { %641 = vst.msk [vmem:[%s1320_s4 + $0x38] sm:$0xf] %vm626_vm1, %v1049_v23  ;;  %v1050_v32 = vpack.c.bf16 %v1101_v29, %v1101_v29  ;;  %v422_v33 = vpop.f32.mrb[15].mxu0  ;;  %v684_v35 = vadd.f32 %v683_v28, %v682_v27  ;;  %v783_v36 = vadd.f32 %v782_v30, %v781_v25  ;;  %v744_v51 = vmul.f32 %v1101_v29, %v1101_v29 }
 0x108   : > { %639 = vst.msk [vmem:[%s1320_s4 + $0x30] sm:$0xf] %vm626_vm1, %v1047_v26  ;;  %v1048_v38 = vpack.c.bf16 %v422_v33, %v422_v33  ;;  %v784_v40 = vsel %vm659_vm2, %v741_v31, 0.0  ;;  %v685_v41 = vsel %vm659_vm2, %v422_v33, 0.0  ;;  %v742_v43 = vmul.f32 %v422_v33, %v422_v33  ;;  %v1431_v44 = vpop.f32.mrb[12].mxu1 }
 0x109   : > { %642 = vst.msk [vmem:[%s1320_s4 + $0x3c] sm:$0xf] %vm626_vm1, %v1050_v32  ;;  %v785_v45 = vadd.f32 %v784_v40, %v783_v36  ;;  %v686_v47 = vadd.f32 %v685_v41, %v684_v35  ;;  %v1437_v49 = vpop.f32.mrb[13].mxu1  ;;  %v788_v59 = vsel %vm659_vm2, %v743_v39, 0.0  ;;  %v689_v60 = vsel %vm659_vm2, %v1101_v29, 0.0 }
 0x10a   : > { %640 = vst.msk [vmem:[%s1320_s4 + $0x34] sm:$0xf] %vm626_vm1, %v1048_v38  ;;  %v786_v52 = vsel %vm659_vm2, %v742_v43, 0.0  ;;  %v1443_v54 = vpop.f32.mrb[14].mxu1  ;;  %v790_v3 = vsel %vm659_vm2, %v744_v51, 0.0  ;;  %v1060_v5 = vpack.c.bf16 %v1415_v20, %v1415_v20  ;;  %v747_v12 = vmul.f32 %v1330_v0, %v1330_v0 }
 0x10b   : > { %v688_v55 = vadd.f32 %v687_v50, %v686_v47  ;;  %v787_v56 = vadd.f32 %v786_v52, %v785_v45  ;;  %v1449_v58 = vpop.f32.mrb[15].mxu1  ;;  %654 = vst.msk [vmem:[%s1320_s4 + $0x6c] sm:$0xf] %vm626_vm1, %v1062_v2  ;;  %v693_v14 = vsel %vm659_vm2, %v1350_v13, 0.0  ;;  %v1065_v16 = vpack.c.bf16 %v1431_v44, %v1431_v44 }
 0x10c   : > { %652 = vst.msk [vmem:[%s1320_s4 + $0x64] sm:$0xf] %vm626_vm1, %v1060_v5  ;;  %v695_v17 = vsel %vm659_vm2, %v1330_v0, 0.0  ;;  %v1063_v21 = vpack.c.bf16 %v1437_v49, %v1437_v49  ;;  %v748_v22 = vmul.f32 %v1343_v9, %v1343_v9  ;;  %v794_v23 = vsel %vm659_vm2, %v746_v7, 0.0 }
 0x10d   : > { %v789_v63 = vadd.f32 %v788_v59, %v787_v56  ;;  %v690_v1 = vadd.f32 %v689_v60, %v688_v55  ;;  %v749_v13 = vmul.f32 %v1373_v37, %v1373_v37  ;;  %657 = vst.msk [vmem:[%s1320_s4 + $0x78] sm:$0xf] %vm626_vm1, %v1065_v16  ;;  %v1066_v24 = vpack.c.bf16 %v1443_v54, %v1443_v54 }
 0x10e   : > { %655 = vst.msk [vmem:[%s1320_s4 + $0x70] sm:$0xf] %vm626_vm1, %v1063_v21  ;;  %v796_v26 = vsel %vm659_vm2, %v747_v12, 0.0  ;;  %v697_v27 = vsel %vm659_vm2, %v1343_v9, 0.0  ;;  %v699_v28 = vsel %vm659_vm2, %v1373_v37, 0.0  ;;  %v1064_v29 = vpack.c.bf16 %v1449_v58, %v1449_v58 }
 0x10f   : > { %v692_v8 = vadd.f32 %v691_v61, %v690_v1  ;;  %v791_v11 = vadd.f32 %v790_v3, %v789_v63  ;;  %658 = vst.msk [vmem:[%s1320_s4 + $0x7c] sm:$0xf] %vm626_vm1, %v1066_v24  ;;  %v798_v32 = vsel %vm659_vm2, %v748_v22, 0.0  ;;  %v800_v33 = vsel %vm659_vm2, %v749_v13, 0.0 }
 0x110   : > { %v750_v35 = vmul.f32 %v1383_v46, %v1383_v46  ;;  %656 = vst.msk [vmem:[%s1320_s4 + $0x74] sm:$0xf] %vm626_vm1, %v1064_v29  ;;  %v751_v37 = vmul.f32 %v1367_v34, %v1367_v34  ;;  %v701_v38 = vsel %vm659_vm2, %v1383_v46, 0.0  ;;  %v703_v41 = vsel %vm659_vm2, %v1367_v34, 0.0 }
 0x111   : > { %v793_v18 = vadd.f32 %v792_v6, %v791_v11  ;;  %v694_v19 = vadd.f32 %v693_v14, %v692_v8  ;;  %v752_v43 = vmul.f32 %v1379_v42, %v1379_v42  ;;  %v753_v47 = vmul.f32 %v1405_v10, %v1405_v10 }
 0x112   : > { %v802_v45 = vsel %vm659_vm2, %v750_v35, 0.0  ;;  %v804_v51 = vsel %vm659_vm2, %v751_v37, 0.0  ;;  %v705_v46 = vsel %vm659_vm2, %v1379_v42, 0.0  ;;  %v707_v52 = vsel %vm659_vm2, %v1405_v10, 0.0 }
 0x113   : > { %v696_v0 = vadd.f32 %v695_v17, %v694_v19  ;;  %v795_v25 = vadd.f32 %v794_v23, %v793_v18  ;;  %v806_v55 = vsel %vm659_vm2, %v752_v43, 0.0  ;;  %v808_v56 = vsel %vm659_vm2, %v753_v47, 0.0 }
 0x114   : > { %v754_v57 = vmul.f32 %v1415_v20, %v1415_v20  ;;  %v755_v61 = vmul.f32 %v1399_v4, %v1399_v4  ;;  %v709_v42 = vsel %vm659_vm2, %v1415_v20, 0.0  ;;  %v711_v10 = vsel %vm659_vm2, %v1399_v4, 0.0 }
 0x115   : > { %v797_v30 = vadd.f32 %v796_v26, %v795_v25  ;;  %v698_v31 = vadd.f32 %v697_v27, %v696_v0  ;;  %v756_v1 = vmul.f32 %v1409_v15, %v1409_v15  ;;  %v757_v3 = vmul.f32 %v1437_v49, %v1437_v49 }
 0x116   : > { %v810_v2 = vsel %vm659_vm2, %v754_v57, 0.0  ;;  %v812_v5 = vsel %vm659_vm2, %v755_v61, 0.0  ;;  %v713_v20 = vsel %vm659_vm2, %v1409_v15, 0.0  ;;  %v715_v8 = vsel %vm659_vm2, %v1437_v49, 0.0 }
 0x117   : > { %v700_v9 = vadd.f32 %v699_v28, %v698_v31  ;;  %v799_v36 = vadd.f32 %v798_v32, %v797_v30  ;;  %v814_v12 = vsel %vm659_vm2, %v756_v1, 0.0  ;;  %v816_v14 = vsel %vm659_vm2, %v757_v3, 0.0 }
 0x118   : > { %v758_v16 = vmul.f32 %v1449_v58, %v1449_v58  ;;  %v759_v19 = vmul.f32 %v1431_v44, %v1431_v44  ;;  %v717_v15 = vsel %vm659_vm2, %v1449_v58, 0.0  ;;  %v719_v22 = vsel %vm659_vm2, %v1431_v44, 0.0 }
 0x119   : > { %v801_v39 = vadd.f32 %v800_v33, %v799_v36  ;;  %v702_v40 = vadd.f32 %v701_v38, %v700_v9  ;;  %v760_v23 = vmul.f32 %v1443_v54, %v1443_v54  ;;  %v721_v26 = vsel %vm659_vm2, %v1443_v54, 0.0 }
 0x11a   : > { %v818_v13 = vsel %vm659_vm2, %v758_v16, 0.0  ;;  %v820_v25 = vsel %vm659_vm2, %v759_v19, 0.0 }
 0x11b   : > { %v704_v48 = vadd.f32 %v703_v41, %v702_v40  ;;  %v803_v50 = vadd.f32 %v802_v45, %v801_v39  ;;  %v822_v28 = vsel %vm659_vm2, %v760_v23, 0.0 }
 0x11d   : > { %v805_v53 = vadd.f32 %v804_v51, %v803_v50  ;;  %v706_v34 = vadd.f32 %v705_v46, %v704_v48 }
 0x11f   : > { %v708_v59 = vadd.f32 %v707_v52, %v706_v34  ;;  %v807_v60 = vadd.f32 %v806_v55, %v805_v53 }
 0x121   : > { %v809_v62 = vadd.f32 %v808_v56, %v807_v60  ;;  %v710_v63 = vadd.f32 %v709_v42, %v708_v59 }
 0x123   : > { %v712_v6 = vadd.f32 %v711_v10, %v710_v63  ;;  %v811_v7 = vadd.f32 %v810_v2, %v809_v62 }
 0x125   : > { %v813_v11 = vadd.f32 %v812_v5, %v811_v7  ;;  %v714_v4 = vadd.f32 %v713_v20, %v712_v6 }
 0x127   : > { %v716_v17 = vadd.f32 %v715_v8, %v714_v4  ;;  %v815_v18 = vadd.f32 %v814_v12, %v813_v11 }
 0x129   : > { %v817_v49 = vadd.f32 %v816_v14, %v815_v18  ;;  %v718_v21 = vadd.f32 %v717_v15, %v716_v17 }
 0x12b   : > { %v720_v24 = vadd.f32 %v719_v22, %v718_v21  ;;  %v819_v0 = vadd.f32 %v818_v13, %v817_v49 }
 0x12d   : > { %v722_v58 = vadd.f32 %v721_v26, %v720_v24  ;;  %v821_v27 = vadd.f32 %v820_v25, %v819_v0 }
 0x12f   : > { %v723_v29 = vrot.slane %v722_v58, 4  ;;  %v823_v44 = vadd.f32 %v822_v28, %v821_v27 }
 0x131   : > { %v724_v30 = vadd.f32 %v723_v29, %v722_v58  ;;  %v824_v31 = vrot.slane %v823_v44, 4 }
 0x133   : > { %v725_v32 = vrot.slane %v724_v30, 2  ;;  %v825_v33 = vadd.f32 %v824_v31, %v823_v44 }
 0x135   : > { %v726_v35 = vadd.f32 %v725_v32, %v724_v30  ;;  %v826_v9 = vrot.slane %v825_v33, 2 }
 0x137   : > { %v727_v36 = vrot.slane %v726_v35, 1  ;;  %v827_v37 = vadd.f32 %v826_v9, %v825_v33 }
 0x139   : > { %v828_v54 = vrot.slane %v827_v37, 1  ;;  %v728_v38 = vadd.f32 %v727_v36, %v726_v35 }
 0x13b   : > { %v829_v39 = vadd.f32 %v828_v54, %v827_v37 }
 0x13d   : > { %v831_v40 = vsel %vm830_vm3, %v728_v38, %v829_v39 }
 0x13e   : > { %833 = vst.msk [vmem:[%s230_s10] sm:$0x3] %vm832_vm4, %v831_v40 }
 0x13f PF: > { %s14_s16 = sadd.s32 1, %s1199_s16   ;;  %s1587_s12 = smov %s1191_s14 }
 0x140   : > { %p11_p8 = scmp.ge.s32.totalorder %s14_s16, 6   ;;  %s1588_s13 = smov %s1195_s15 }
 0x141   : > { %s1589_s14 = smov %s1592_s17  ;;  %s1590_s15 = smov %s1596_s18 }
 0x142   :  { %13 = sbr.rel (!%p11_p8) target bundleno = 3 (0x3), region = 70 }

// kernel: bottleneck_forward.6
= control target key start
LH: loop header
LB: loop body
LE: loop exit
PB: predicated region body
PF: predicated region fallthrough
CT: control target
= control target key end

     0   :  { %s1741_s15 = smov 0   ;;  %s1743_s16 = smov 0   ;;  %s2058_s0 = inlined_call_operand.vmem [shape: bf16[2,512,4], index: 0, kind: input, shape index: {}]   ;;  %s2059_s1 = inlined_call_operand.vmem [shape: f32[1,4], index: 1, kind: input, shape index: {}]   ;;  %s2060_s2 = inlined_call_operand.vmem [shape: f32[1,4], index: 2, kind: input, shape index: {}]   ;;  %s2061_s3 = inlined_call_operand.vmem [shape: bf16[4,16], index: 3, kind: input, shape index: {}]   ;;  %s2062_s4 = inlined_call_operand.vmem [shape: f32[2,2,2,16], index: 4, kind: output, shape index: {}]  }
   0x1   :  { %s1745_s17 = smov 0   ;;  %s1747_s18 = smov 0  }
   0x2   :  { %s1749_s19 = smov 0  }
   0x3 LB: > { %s23_s20 = sadd.s32 1, %s1705_s17  ;;  %s26_s21 = sadd.s32 1, %s1709_s18  ;;  %s1713_s19 = sphi %s1749_s19, %s14_s19   ;;  %s1709_s18 = sphi %s1747_s18, %s2080_s18   ;;  %s1705_s17 = sphi %s1745_s17, %s2079_s17   ;;  %s1701_s16 = sphi %s1743_s16, %s2078_s16   ;;  %s1697_s15 = sphi %s1741_s15, %s2077_s15  }
   0x4   : > { %p24_p0 = scmp.ge.s32.totalorder %s23_s20, 2  ;;  %p1514_p1 = scmp.ge.s32.totalorder %s1713_s19, 1 }
   0x5   : > { %p183_p2 = scmp.lt.s32.totalorder %s1713_s19, 5 }
   0x6   : > { %s2082_s20 = smov (%p24_p0, %s23_s20), 0  ;;  %s2084_s21 = smov (!%p24_p0, %s26_s21), %s1709_s18 }
   0x7   : > { %p184_p3 = pnand %p1514_p1, %p183_p2  ;;  %p28_p4 = scmp.ge.s32.totalorder %s2084_s21, 2 }
   0x8   : > { %v1034_v0 = vld [vmem:[%s2061_s3] sm:$0x3] (!%p184_p3)  ;;  %vm1084_vm0 = vcmask (!%p184_p3), 1041408   ;;  %s1515_s24 = sshll.u32 (!%p184_p3), %s1697_s15, 5  ;;  %p217_p5 = scmp.lt.s32.totalorder (!%p184_p3), %s1701_s16, 1  ;;  %v409_v1 = vlaneseq (!%p184_p3)  ;;  %vm1035_vm4 = vcmask (!%p184_p3), 31744  }
   0x9   : > { %s2086_s21 = smov (%p28_p4, %s2084_s21), 0  ;;  %187 = sbr.rel (%p184_p3) target bundleno = 328 (0x148), region = 36 }
   0xa   : > { %1632 = vmatprep.subr.msk.bf16.mxu0 (!%p184_p3), %vm1084_vm0, %v1034_v0  ;;  %v1086_v2 = vsel (!%p184_p3), %vm1084_vm0, %v1034_v0, 0  ;;  %p219_p6 = scmp.lt.s32.totalorder (!%p184_p3), %s1515_s24, 63  ;;  %1633 = vmatprep.subr.msk.bf16.mxu1 (!%p184_p3), %vm1084_vm0, %v1034_v0  ;;  %v1779_v3 = vshrl.u32 (!%p184_p3), %v409_v1, 7  ;;  %v1808_v16 = vld [vmem:[%s2059_s1] ss:$0 sm:$0xff] (!%p184_p3)  ;;  %p228_p7 = scmp.lt.s32.totalorder (!%p184_p3), %s1697_s15, 1 }
   0xb   : > { %1597 = vmatpush3.bf16.msra.mxu0 (!%p184_p3), %v1086_v2  ;;  %1631 = vmatpush3.bf16.msra.mxu1 (!%p184_p3), %v1086_v2  ;;  %v1828_v31 = vld [vmem:[%s2060_s2] ss:$0 sm:$0xff] (!%p184_p3)  ;;  %v1715_v2 = vmov (!%p184_p3), 0.0  }
   0xc   : > { %v446_v4 = vand.u32 (!%p184_p3), 31, %v1779_v3  ;;  %v412_v5 = vadd.s32 (!%p184_p3), 16, %v1779_v3  ;;  %v414_v6 = vadd.s32 (!%p184_p3), 32, %v1779_v3  ;;  %v416_v7 = vadd.s32 (!%p184_p3), 48, %v1779_v3 }
   0xd   : > { %v418_v8 = vadd.s32 (!%p184_p3), 64, %v1779_v3  ;;  %v1788_v9 = vadd.s32 (!%p184_p3), 80, %v1779_v3  ;;  %v1791_v10 = vadd.s32 (!%p184_p3), 96, %v1779_v3  ;;  %v1794_v11 = vadd.s32 (!%p184_p3), 112, %v1779_v3 }
   0xe   : > { %vm1796_vm1 = vcmp.ge.s32.totalorder (!%p184_p3), %v446_v4, 1  ;;  %v460_v13 = vand.u32 (!%p184_p3), 31, %v412_v5  ;;  %v474_v14 = vand.u32 (!%p184_p3), 31, %v414_v6  ;;  %v488_v15 = vand.u32 (!%p184_p3), 31, %v416_v7 }
   0xf   : > { %v502_v17 = vand.u32 (!%p184_p3), 31, %v418_v8  ;;  %v516_v18 = vand.u32 (!%p184_p3), 31, %v1788_v9  ;;  %v530_v19 = vand.u32 (!%p184_p3), 31, %v1791_v10  ;;  %v544_v20 = vand.u32 (!%p184_p3), 31, %v1794_v11 }
  0x10   : > { %s2088_s16 = smov (!%p217_p5, %s1701_s16), 1  ;;  %s2090_s24 = smov (!%p219_p6, %s1515_s24), 63  ;;  %vm1815_vm2 = vcmp.le.s32.totalorder %v460_v13, 16  ;;  %vm1820_vm3 = vcmp.ge.s32.totalorder %v474_v14, 1  ;;  %vm1830_vm5 = vcmp.le.s32.totalorder %v488_v15, 16 }
  0x11   : > { %s1516_s25 = sshll.u32 %s2088_s16, 6  ;;  %vm834_vm6 = vcmp.ge.s32.totalorder %v502_v17, 1  ;;  %vm1864_vm7 = vcmp.le.s32.totalorder %v516_v18, 16  ;;  %vm1868_vm8 = vcmp.ge.s32.totalorder %v530_v19, 1  ;;  %vm1877_vm9 = vcmp.le.s32.totalorder %v544_v20, 16  ;;  %s2092_s15 = smov (!%p228_p7, %s1697_s15), 1 }
  0x12   : > { %s222_s26 = sadd.s32 %s1516_s25, %s2090_s24  ;;  %s1518_s9 = sshll.u32 %s2088_s16, 1 }
  0x13   : > { %s1517_s27 = sshll.u32 %s222_s26, 2  ;;  %s231_s10 = sadd.s32 %s1518_s9, %s2092_s15 }
  0x14   : > { %s1803_s30 = scalar_lea.vmem %s2058_s0, %s1517_s27  ;;  %s1519_s11 = sshll.u32 %s231_s10, 1 }
  0x15   : > { %v1541_v21 = vld [vmem:[%s1803_s30] sm:$0xff]   ;;  %v237_v22 = vld [vmem:[%s1803_s30 + $0x8] ss:$16 sps:$4 sm:$0xff]   ;;  %v1572_v24 = vld [vmem:[%s1803_s30 + $0x10] sm:$0xff]   ;;  %s233_s14 = scalar_lea.vmem %s2062_s4, %s1519_s11 }
  0x16   : > { %v1542_v26 = vunpack.c.l.bf16 %v1541_v21  ;;  %v1543_v27 = vunpack.c.h.bf16 %v1541_v21  ;;  %v269_v28 = vunpack.c.l.bf16 %v237_v22  ;;  %v1546_v29 = vunpack.c.l.bf16 %v1572_v24  ;;  %v1573_v30 = vld [vmem:[%s1803_s30 + $0x20] sm:$0xff]   ;;  %v245_v60 = vld [vmem:[%s1803_s30 + $0x28] ss:$16 sps:$4 sm:$0xff]   ;;  %v1574_v0 = vld [vmem:[%s1803_s30 + $0x30] sm:$0xff]  }
  0x17   : > { %v1547_v32 = vunpack.c.h.bf16 %v1572_v24  ;;  %v273_v33 = vunpack.c.h.bf16 %v237_v22  ;;  %v1550_v35 = vunpack.c.l.bf16 %v1573_v30  ;;  %v1551_v42 = vunpack.c.h.bf16 %v1573_v30  ;;  %v1575_v12 = vld [vmem:[%s1803_s30 + $0x40] sm:$0xff]   ;;  %v253_v21 = vld [vmem:[%s1803_s30 + $0x48] ss:$16 sps:$4 sm:$0xff]  }
  0x18   : > { %v306_v36 = vmul.f32 %v1542_v26, %v1808_v16  ;;  %v307_v37 = vmul.f32 %v1543_v27, %v1808_v16  ;;  %v308_v38 = vmul.f32 %v1808_v16, %v269_v28  ;;  %v310_v39 = vmul.f32 %v1546_v29, %v1808_v16 }
  0x19   : > { %v311_v40 = vmul.f32 %v1547_v32, %v1808_v16  ;;  %v312_v41 = vmul.f32 %v1808_v16, %v273_v33  ;;  %v314_v43 = vmul.f32 %v1550_v35, %v1808_v16  ;;  %v315_v50 = vmul.f32 %v1551_v42, %v1808_v16 }
  0x1a   : > { %v345_v44 = vadd.f32 %v1828_v31, %v306_v36  ;;  %v346_v45 = vadd.f32 %v1828_v31, %v307_v37  ;;  %v347_v46 = vadd.f32 %v1828_v31, %v308_v38  ;;  %v349_v47 = vadd.f32 %v1828_v31, %v310_v39 }
  0x1b   : > { %v350_v48 = vadd.f32 %v1828_v31, %v311_v40  ;;  %v351_v49 = vadd.f32 %v1828_v31, %v312_v41  ;;  %v353_v51 = vadd.f32 %v1828_v31, %v314_v43  ;;  %v354_v58 = vadd.f32 %v1828_v31, %v315_v50 }
  0x1c   : > { %v377_v52 = vmax.f32 %v345_v44, 0.0  ;;  %v378_v53 = vmax.f32 %v346_v45, 0.0  ;;  %v379_v54 = vmax.f32 %v347_v46, 0.0  ;;  %v381_v55 = vmax.f32 %v349_v47, 0.0  ;;  %v1576_v46 = vld [vmem:[%s1803_s30 + $0x50] sm:$0xff]  }
  0x1d   : > { %v382_v56 = vmax.f32 %v350_v48, 0.0  ;;  %v383_v57 = vmax.f32 %v351_v49, 0.0  ;;  %v385_v59 = vmax.f32 %v353_v51, 0.0  ;;  %v386_v8 = vmax.f32 %v354_v58, 0.0 }
  0x1e   : > { %v986_v61 = vsel %vm1796_vm1, %v377_v52, 0.0  ;;  %v988_v62 = vsel %vm1815_vm2, %v379_v54, 0.0  ;;  %v990_v63 = vsel %vm1820_vm3, %v381_v55, 0.0  ;;  %v277_v10 = vunpack.c.l.bf16 %v245_v60  ;;  %v1577_v55 = vld [vmem:[%s1803_s30 + $0x60] sm:$0xff]  }
  0x1f   : > { %v1018_v1 = vpack.c.bf16 %v378_v53, %v986_v61  ;;  %v1019_v4 = vpack.c.bf16 %v1715_v2, %v988_v62  ;;  %v1020_v5 = vpack.c.bf16 %v382_v56, %v990_v63  ;;  %v992_v6 = vsel %vm1830_vm5, %v383_v57, 0.0 }
  0x20   : > { %v1021_v7 = vpack.c.bf16 %v1715_v2, %v992_v6  ;;  %v994_v9 = vsel %vm834_vm6, %v385_v59, 0.0  ;;  %v1554_v14 = vunpack.c.l.bf16 %v1574_v0  ;;  %v1555_v15 = vunpack.c.h.bf16 %v1574_v0 }
  0x21   : > { %1598 = vmatprep.mubr.msk.bf16.mxu0 %vm1035_vm4, %v1018_v1  ;;  %v1022_v22 = vpack.c.bf16 %v386_v8, %v994_v9  ;;  %v316_v23 = vmul.f32 %v1808_v16, %v277_v10  ;;  %v281_v24 = vunpack.c.h.bf16 %v245_v60  ;;  %v1558_v26 = vunpack.c.l.bf16 %v1575_v12 }
  0x22   : > { %1599 = vmatmul.mubr.msk.bf16.vlgmr.msra.gmra.mrb[0].mxu0 %vm1035_vm4, %v1019_v4  ;;  %v318_v19 = vmul.f32 %v1554_v14, %v1808_v16  ;;  %v319_v25 = vmul.f32 %v1555_v15, %v1808_v16  ;;  %v1559_v27 = vunpack.c.h.bf16 %v1575_v12  ;;  %v426_v30 = vadd.s32 128, %v1779_v3  ;;  %v261_v14 = vld [vmem:[%s1803_s30 + $0x68] ss:$16 sps:$4 sm:$0xff]  }
  0x23   : > { %1602 = vmatprep.mubr.msk.bf16.mxu0 %vm1035_vm4, %v1020_v5  ;;  %v355_v28 = vadd.f32 %v1828_v31, %v316_v23  ;;  %v320_v29 = vmul.f32 %v1808_v16, %v281_v24  ;;  %v285_v32 = vunpack.c.l.bf16 %v253_v21  ;;  %v322_v33 = vmul.f32 %v1558_v26, %v1808_v16 }
  0x24   : > { %v357_v11 = vadd.f32 %v1828_v31, %v318_v19  ;;  %v358_v20 = vadd.f32 %v1828_v31, %v319_v25  ;;  %v323_v34 = vmul.f32 %v1559_v27, %v1808_v16  ;;  %v558_v37 = vand.u32 31, %v426_v30 }
  0x25   : > { %v387_v35 = vmax.f32 %v355_v28, 0.0  ;;  %v359_v36 = vadd.f32 %v1828_v31, %v320_v29  ;;  %v324_v38 = vmul.f32 %v1808_v16, %v285_v32  ;;  %v361_v41 = vadd.f32 %v1828_v31, %v322_v33 }
  0x26   : > { %v389_v39 = vmax.f32 %v357_v11, 0.0  ;;  %v390_v40 = vmax.f32 %v358_v20, 0.0  ;;  %v362_v42 = vadd.f32 %v1828_v31, %v323_v34  ;;  %vm842_vm10 = vcmp.ge.s32.totalorder %v558_v37, 1 }
  0x27   : > { %v996_v43 = vsel %vm1864_vm7, %v387_v35, 0.0  ;;  %v391_v44 = vmax.f32 %v359_v36, 0.0  ;;  %v363_v45 = vadd.f32 %v1828_v31, %v324_v38  ;;  %v393_v49 = vmax.f32 %v361_v41, 0.0 }
  0x28   : > { %v1023_v47 = vpack.c.bf16 %v1715_v2, %v996_v43  ;;  %v998_v48 = vsel %vm1868_vm8, %v389_v39, 0.0  ;;  %v394_v50 = vmax.f32 %v362_v42, 0.0  ;;  %v428_v54 = vadd.s32 144, %v1779_v3 }
  0x29   : > { %v1024_v51 = vpack.c.bf16 %v390_v40, %v998_v48  ;;  %v1000_v52 = vsel %vm1877_vm9, %v391_v44, 0.0  ;;  %v395_v53 = vmax.f32 %v363_v45, 0.0  ;;  %v1002_v57 = vsel %vm842_vm10, %v393_v49, 0.0 }
  0x2a   : > { %1603 = vmatmul.mubr.msk.bf16.gmra.mrb[4].mxu0 %vm1035_vm4, %v1021_v7  ;;  %v1909_v56 = vpack.c.bf16 %v1715_v2, %v1000_v52  ;;  %v1562_v58 = vunpack.c.l.bf16 %v1576_v46  ;;  %v1563_v59 = vunpack.c.h.bf16 %v1576_v46  ;;  %v1026_v60 = vpack.c.bf16 %v394_v50, %v1002_v57 }
  0x2b   : > { %1606 = vmatprep.mubr.msk.bf16.mxu0 %vm1035_vm4, %v1022_v22  ;;  %v572_v61 = vand.u32 31, %v428_v54  ;;  %v430_v62 = vadd.s32 160, %v1779_v3  ;;  %v289_v63 = vunpack.c.h.bf16 %v253_v21  ;;  %v432_v4 = vadd.s32 176, %v1779_v3  ;;  %v1578_v22 = vld [vmem:[%s1803_s30 + $0x70] sm:$0xff]  }
  0x2c   : > { %v326_v0 = vmul.f32 %v1562_v58, %v1808_v16  ;;  %v327_v1 = vmul.f32 %v1563_v59, %v1808_v16  ;;  %v1566_v5 = vunpack.c.l.bf16 %v1577_v55  ;;  %1614 = vmatprep.mubr.msk.bf16.mxu1 %vm1035_vm4, %v1026_v60  ;;  %v1567_v8 = vunpack.c.h.bf16 %v1577_v55 }
  0x2d   : > { %vm876_vm11 = vcmp.le.s32.totalorder %v572_v61, 16  ;;  %v586_v6 = vand.u32 31, %v430_v62  ;;  %v328_v7 = vmul.f32 %v1808_v16, %v289_v63  ;;  %v600_v13 = vand.u32 31, %v432_v4 }
  0x2e   : > { %v1004_v9 = vsel %vm876_vm11, %v395_v53, 0.0  ;;  %v365_v10 = vadd.f32 %v1828_v31, %v326_v0  ;;  %v366_v12 = vadd.f32 %v1828_v31, %v327_v1  ;;  %v330_v21 = vmul.f32 %v1566_v5, %v1808_v16 }
  0x2f   : > { %v1027_v15 = vpack.c.bf16 %v1715_v2, %v1004_v9  ;;  %vm846_vm12 = vcmp.ge.s32.totalorder %v586_v6, 1  ;;  %v367_v17 = vadd.f32 %v1828_v31, %v328_v7  ;;  %vm880_vm13 = vcmp.le.s32.totalorder %v600_v13, 16 }
  0x30   : > { %v397_v23 = vmax.f32 %v365_v10, 0.0  ;;  %v398_v24 = vmax.f32 %v366_v12, 0.0  ;;  %v331_v18 = vmul.f32 %v1567_v8, %v1808_v16  ;;  %v369_v25 = vadd.f32 %v1828_v31, %v330_v21 }
  0x31   : > { %1615 = vmatmul.mubr.msk.bf16.vlgmr.msra.gmra.mrb[0].mxu1 %vm1035_vm4, %v1027_v15  ;;  %v399_v19 = vmax.f32 %v367_v17, 0.0  ;;  %v434_v26 = vadd.s32 192, %v1779_v3  ;;  %v293_v27 = vunpack.c.l.bf16 %v261_v14  ;;  %v436_v30 = vadd.s32 208, %v1779_v3 }
  0x32   : > { %1607 = vmatmul.mubr.msk.bf16.gmra.mrb[8].mxu0 %vm1035_vm4, %v1023_v47  ;;  %v1006_v28 = vsel %vm846_vm12, %v397_v23, 0.0  ;;  %v370_v29 = vadd.f32 %v1828_v31, %v331_v18  ;;  %v1570_v32 = vunpack.c.l.bf16 %v1578_v22  ;;  %v401_v33 = vmax.f32 %v369_v25, 0.0 }
  0x33   : > { %1610 = vmatprep.mubr.msk.bf16.mxu0 %vm1035_vm4, %v1024_v51  ;;  %v1028_v11 = vpack.c.bf16 %v398_v24, %v1006_v28  ;;  %v1008_v20 = vsel %vm880_vm13, %v399_v19, 0.0  ;;  %v614_v34 = vand.u32 31, %v434_v26  ;;  %v332_v37 = vmul.f32 %v1808_v16, %v293_v27 }
  0x34   : > { %v1029_v35 = vpack.c.bf16 %v1715_v2, %v1008_v20  ;;  %v402_v36 = vmax.f32 %v370_v29, 0.0  ;;  %v628_v38 = vand.u32 31, %v436_v30  ;;  %v1571_v39 = vunpack.c.h.bf16 %v1578_v22 }
  0x35   : > { %1618 = vmatprep.mubr.msk.bf16.mxu1 %vm1035_vm4, %v1028_v11  ;;  %vm850_vm14 = vcmp.ge.s32.totalorder %v614_v34, 1  ;;  %v334_v40 = vmul.f32 %v1570_v32, %v1808_v16  ;;  %v438_v41 = vadd.s32 224, %v1779_v3  ;;  %v371_v43 = vadd.f32 %v1828_v31, %v332_v37 }
  0x36   : > { %v1010_v42 = vsel %vm850_vm14, %v401_v33, 0.0  ;;  %vm884_vm15 = vcmp.le.s32.totalorder %v628_v38, 16  ;;  %v297_v44 = vunpack.c.h.bf16 %v261_v14  ;;  %v335_v46 = vmul.f32 %v1571_v39, %v1808_v16 }
  0x37   : > { %v1030_v45 = vpack.c.bf16 %v402_v36, %v1010_v42  ;;  %v373_v47 = vadd.f32 %v1828_v31, %v334_v40  ;;  %v642_v48 = vand.u32 31, %v438_v41  ;;  %v403_v49 = vmax.f32 %v371_v43, 0.0 }
  0x38   : > { %v336_v50 = vmul.f32 %v1808_v16, %v297_v44  ;;  %v440_v51 = vadd.s32 240, %v1779_v3  ;;  %v374_v52 = vadd.f32 %v1828_v31, %v335_v46  ;;  %vm1249_vm2 = vcmask 130048  }
  0x39   : > { %1619 = vmatmul.mubr.msk.bf16.gmra.mrb[4].mxu1 %vm1035_vm4, %v1029_v35  ;;  %v405_v53 = vmax.f32 %v373_v47, 0.0  ;;  %vm854_vm0 = vcmp.ge.s32.totalorder %v642_v48, 1  ;;  %v1012_v54 = vsel %vm884_vm15, %v403_v49, 0.0  ;;  %vm1420_vm3 = vcmask 1040384  }
  0x3a   : > { %1611 = vmatmul.mubr.msk.bf16.gmra.mrb[12].mxu0 %vm1035_vm4, %v1909_v56  ;;  %1622 = vmatprep.mubr.msk.bf16.mxu1 %vm1035_vm4, %v1030_v45  ;;  %v375_v55 = vadd.f32 %v1828_v31, %v336_v50  ;;  %v406_v57 = vmax.f32 %v374_v52, 0.0  ;;  %v656_v59 = vand.u32 31, %v440_v51  ;;  %v1031_v16 = vpack.c.bf16 %v1715_v2, %v1012_v54 }
  0x3b   : > { %v1014_v58 = vsel %vm854_vm0, %v405_v53, 0.0 }
  0x3c   : > { %v1032_v3 = vpack.c.bf16 %v406_v57, %v1014_v58  ;;  %v407_v60 = vmax.f32 %v375_v55, 0.0  ;;  %vm888_vm1 = vcmp.le.s32.totalorder %v656_v59, 16 }
  0x3e   : > { %v1016_v56 = vsel %vm888_vm1, %v407_v60, 0.0 }
  0x3f   : > { %v1033_v61 = vpack.c.bf16 %v1715_v2, %v1016_v56 }
  0x41   : > { %1623 = vmatmul.mubr.msk.bf16.gmra.mrb[8].mxu1 %vm1035_vm4, %v1031_v16 }
  0x42   : > { %1626 = vmatprep.mubr.msk.bf16.mxu1 %vm1035_vm4, %v1032_v3 }
  0x49   : > { %1627 = vmatmul.mubr.msk.bf16.gmra.mrb[12].mxu1 %vm1035_vm4, %v1033_v61  ;;  %vm1422_vm4 = vcmask 123904  }
  0xf5   : > { %v1600_v62 = vpop.f32.mrb[0].mxu0 }
  0xf6   : > { %v1122_v31 = vpop.f32.mrb[1].mxu0  ;;  %v1321_v4 = vmul.f32 %v1600_v62, %v1600_v62  ;;  %v1253_v9 = vsel %vm1249_vm2, %v1600_v62, 0.0 }
  0xf7   : > { %v1319_v63 = vmul.f32 %v1122_v31, %v1122_v31  ;;  %v1601_v0 = vpop.f32.mrb[2].mxu0  ;;  %v1250_v5 = vsel %vm1249_vm2, %v1122_v31, 0.0 }
  0xf8   : > { %v1125_v1 = vpop.f32.mrb[3].mxu0  ;;  %v1322_v2 = vmul.f32 %v1601_v0, %v1601_v0  ;;  %v1354_v15 = vsel %vm1249_vm2, %v1321_v4, 0.0  ;;  %v1255_v17 = vsel %vm1249_vm2, %v1601_v0, 0.0 }
  0xf9   : > { %v1251_v6 = vsel %vm1249_vm2, %v1125_v1, 0.0  ;;  %v1320_v7 = vmul.f32 %v1125_v1, %v1125_v1  ;;  %v1351_v10 = vsel %vm1249_vm2, %v1319_v63, 0.0 }
  0xfa   : > { %v1252_v8 = vadd.f32 %v1251_v6, %v1250_v5  ;;  %v1356_v18 = vsel %vm1249_vm2, %v1322_v2, 0.0 }
  0xfb   : > { %v1352_v12 = vsel %vm1249_vm2, %v1320_v7, 0.0 }
  0xfc   : > { %v1254_v13 = vadd.f32 %v1253_v9, %v1252_v8  ;;  %v1353_v14 = vadd.f32 %v1352_v12, %v1351_v10 }
  0xfd   : > { %v1604_v21 = vpop.f32.mrb[4].mxu0 }
  0xfe   : > { %v1355_v22 = vadd.f32 %v1354_v15, %v1353_v14  ;;  %v1138_v23 = vpop.f32.mrb[5].mxu0  ;;  %v1256_v24 = vadd.f32 %v1255_v17, %v1254_v13  ;;  %v1325_v30 = vmul.f32 %v1604_v21, %v1604_v21  ;;  %v1261_v35 = vsel %vm1249_vm2, %v1604_v21, 0.0 }
  0xff   : > { %v1257_v19 = vsel %vm1249_vm2, %v1138_v23, 0.0  ;;  %v1323_v25 = vmul.f32 %v1138_v23, %v1138_v23  ;;  %v1605_v26 = vpop.f32.mrb[6].mxu0 }
 0x100   : > { %v1258_v27 = vadd.f32 %v1257_v19, %v1256_v24  ;;  %v1357_v28 = vadd.f32 %v1356_v18, %v1355_v22  ;;  %v1141_v29 = vpop.f32.mrb[7].mxu0  ;;  %v1326_v36 = vmul.f32 %v1605_v26, %v1605_v26  ;;  %v1362_v40 = vsel %vm1249_vm2, %v1325_v30, 0.0 }
 0x101   : > { %v1358_v32 = vsel %vm1249_vm2, %v1323_v25, 0.0  ;;  %v1259_v11 = vsel %vm1249_vm2, %v1141_v29, 0.0  ;;  %v1324_v20 = vmul.f32 %v1141_v29, %v1141_v29  ;;  %v1263_v41 = vsel %vm1249_vm2, %v1605_v26, 0.0 }
 0x102   : > { %v1359_v33 = vadd.f32 %v1358_v32, %v1357_v28  ;;  %v1260_v34 = vadd.f32 %v1259_v11, %v1258_v27  ;;  %v1364_v48 = vsel %vm1249_vm2, %v1326_v36, 0.0 }
 0x103   : > { %v1360_v37 = vsel %vm1249_vm2, %v1324_v20, 0.0 }
 0x104   : > { %v1262_v38 = vadd.f32 %v1261_v35, %v1260_v34  ;;  %v1361_v39 = vadd.f32 %v1360_v37, %v1359_v33  ;;  %v1968_v43 = vpop.f32.mrb[0].mxu1 }
 0x105   : > { %v1608_v42 = vpop.f32.mrb[8].mxu0  ;;  %v1186_v47 = vpop.f32.mrb[1].mxu1 }
 0x106   : > { %v1363_v44 = vadd.f32 %v1362_v40, %v1361_v39  ;;  %v1154_v45 = vpop.f32.mrb[9].mxu0  ;;  %v1264_v46 = vadd.f32 %v1263_v41, %v1262_v38  ;;  %v1972_v52 = vpop.f32.mrb[2].mxu1  ;;  %v1329_v58 = vmul.f32 %v1608_v42, %v1608_v42  ;;  %v1269_v61 = vsel %vm1249_vm2, %v1608_v42, 0.0 }
 0x107   : > { %v1265_v49 = vsel %vm1249_vm2, %v1154_v45, 0.0  ;;  %v1327_v50 = vmul.f32 %v1154_v45, %v1154_v45  ;;  %v1609_v51 = vpop.f32.mrb[10].mxu0  ;;  %v1189_v57 = vpop.f32.mrb[3].mxu1  ;;  %v1335_v32 = vmul.f32 %v1186_v47, %v1186_v47  ;;  %v1281_v35 = vsel %vm1249_vm2, %v1186_v47, 0.0 }
 0x108   : > { %v1266_v53 = vadd.f32 %v1265_v49, %v1264_v46  ;;  %v1365_v54 = vadd.f32 %v1364_v48, %v1363_v44  ;;  %v1157_v55 = vpop.f32.mrb[11].mxu0  ;;  %v1330_v62 = vmul.f32 %v1609_v51, %v1609_v51  ;;  %v1370_v1 = vsel %vm1249_vm2, %v1329_v58, 0.0 }
 0x109   : > { %v1366_v59 = vsel %vm1249_vm2, %v1327_v50, 0.0  ;;  %v1267_v16 = vsel %vm1249_vm2, %v1157_v55, 0.0  ;;  %v1328_v3 = vmul.f32 %v1157_v55, %v1157_v55  ;;  %v1271_v4 = vsel %vm1249_vm2, %v1609_v51, 0.0 }
 0x10a   : > { %v1367_v60 = vadd.f32 %v1366_v59, %v1365_v54  ;;  %v1268_v56 = vadd.f32 %v1267_v16, %v1266_v53  ;;  %v1372_v2 = vsel %vm1249_vm2, %v1330_v62, 0.0  ;;  %v1382_v41 = vsel %vm1249_vm2, %v1335_v32, 0.0 }
 0x10b   : > { %v1368_v31 = vsel %vm1249_vm2, %v1328_v3, 0.0  ;;  %v1336_v42 = vmul.f32 %v1189_v57, %v1189_v57  ;;  %v1337_v49 = vmul.f32 %v1968_v43, %v1968_v43  ;;  %v1283_v50 = vsel %vm1249_vm2, %v1189_v57, 0.0 }
 0x10c   : > { %v1270_v63 = vadd.f32 %v1269_v61, %v1268_v56  ;;  %v1369_v0 = vadd.f32 %v1368_v31, %v1367_v60  ;;  %v1980_v6 = vpop.f32.mrb[4].mxu1  ;;  %v1285_v53 = vsel %vm1249_vm2, %v1968_v43, 0.0  ;;  %v1338_v54 = vmul.f32 %v1972_v52, %v1972_v52 }
 0x10d   : > { %v1612_v5 = vpop.f32.mrb[12].mxu0  ;;  %v1202_v10 = vpop.f32.mrb[5].mxu1  ;;  %v1384_v55 = vsel %vm1249_vm2, %v1336_v42, 0.0  ;;  %v1386_v3 = vsel %vm1249_vm2, %v1337_v49, 0.0  ;;  %v1287_v60 = vsel %vm1249_vm2, %v1972_v52, 0.0 }
 0x10e   : > { %v1371_v7 = vadd.f32 %v1370_v1, %v1369_v0  ;;  %v1170_v8 = vpop.f32.mrb[13].mxu0  ;;  %v1272_v9 = vadd.f32 %v1271_v4, %v1270_v63  ;;  %v1984_v15 = vpop.f32.mrb[6].mxu1  ;;  %v1333_v24 = vmul.f32 %v1612_v5, %v1612_v5  ;;  %v1277_v28 = vsel %vm1249_vm2, %v1612_v5, 0.0 }
 0x10f   : > { %v1273_v12 = vsel %vm1249_vm2, %v1170_v8, 0.0  ;;  %v1331_v13 = vmul.f32 %v1170_v8, %v1170_v8  ;;  %v1613_v14 = vpop.f32.mrb[14].mxu0  ;;  %v1205_v23 = vpop.f32.mrb[7].mxu1  ;;  %v1339_v58 = vmul.f32 %v1202_v10, %v1202_v10  ;;  %v1289_v57 = vsel %vm1249_vm2, %v1202_v10, 0.0 }
 0x110   : > { %v1274_v17 = vadd.f32 %v1273_v12, %v1272_v9  ;;  %v1373_v21 = vadd.f32 %v1372_v2, %v1371_v7  ;;  %v1173_v22 = vpop.f32.mrb[15].mxu0  ;;  %v1334_v29 = vmul.f32 %v1613_v14, %v1613_v14  ;;  %v1378_v33 = vsel %vm1249_vm2, %v1333_v24, 0.0 }
 0x111   : > { %v1374_v18 = vsel %vm1249_vm2, %v1331_v13, 0.0  ;;  %v1275_v19 = vsel %vm1249_vm2, %v1173_v22, 0.0  ;;  %v1332_v25 = vmul.f32 %v1173_v22, %v1173_v22  ;;  %v1279_v34 = vsel %vm1249_vm2, %v1613_v14, 0.0 }
 0x112   : > { %v1375_v26 = vadd.f32 %v1374_v18, %v1373_v21  ;;  %v1276_v27 = vadd.f32 %v1275_v19, %v1274_v17  ;;  %v1380_v40 = vsel %vm1249_vm2, %v1334_v29, 0.0  ;;  %v1388_v43 = vsel %vm1249_vm2, %v1338_v54, 0.0 }
 0x113   : > { %v1376_v30 = vsel %vm1249_vm2, %v1332_v25, 0.0  ;;  %v1390_v63 = vsel %vm1249_vm2, %v1339_v58, 0.0  ;;  %v1340_v0 = vmul.f32 %v1205_v23, %v1205_v23  ;;  %v1341_v8 = vmul.f32 %v1980_v6, %v1980_v6 }
 0x114   : > { %v1278_v11 = vadd.f32 %v1277_v28, %v1276_v27  ;;  %v1377_v20 = vadd.f32 %v1376_v30, %v1375_v26  ;;  %v1624_v36 = vpop.f32.mrb[8].mxu1  ;;  %v1291_v52 = vsel %vm1249_vm2, %v1205_v23, 0.0  ;;  %v1293_v2 = vsel %vm1249_vm2, %v1980_v6, 0.0 }
 0x115   : > { %v1218_v39 = vpop.f32.mrb[9].mxu1  ;;  %v1342_v12 = vmul.f32 %v1984_v15, %v1984_v15  ;;  %v1392_v13 = vsel %vm1249_vm2, %v1340_v0, 0.0  ;;  %v1394_v22 = vsel %vm1249_vm2, %v1341_v8, 0.0  ;;  %v1295_v24 = vsel %vm1249_vm2, %v1984_v15, 0.0 }
 0x116   : > { %v1379_v37 = vadd.f32 %v1378_v33, %v1377_v20  ;;  %v1280_v38 = vadd.f32 %v1279_v34, %v1278_v11  ;;  %v1625_v44 = vpop.f32.mrb[10].mxu1  ;;  %v1343_v14 = vmul.f32 %v1218_v39, %v1218_v39  ;;  %v1297_v23 = vsel %vm1249_vm2, %v1218_v39, 0.0 }
 0x117   : > { %v1221_v48 = vpop.f32.mrb[11].mxu1  ;;  %v1396_v25 = vsel %vm1249_vm2, %v1342_v12, 0.0  ;;  %v1345_v29 = vmul.f32 %v1624_v36, %v1624_v36  ;;  %v1301_v20 = vsel %vm1249_vm2, %v1624_v36, 0.0  ;;  %v1346_v33 = vmul.f32 %v1625_v44, %v1625_v44 }
 0x118   : > { %v1282_v45 = vadd.f32 %v1281_v35, %v1280_v38  ;;  %v1381_v46 = vadd.f32 %v1380_v40, %v1379_v37  ;;  %v1398_v6 = vsel %vm1249_vm2, %v1343_v14, 0.0  ;;  %v1344_v26 = vmul.f32 %v1221_v48, %v1221_v48 }
 0x119   : > { %v1299_v30 = vsel %vm1249_vm2, %v1221_v48, 0.0  ;;  %v1402_v38 = vsel %vm1249_vm2, %v1345_v29, 0.0  ;;  %v1303_v39 = vsel %vm1249_vm2, %v1625_v44, 0.0 }
 0x11a   : > { %v1383_v51 = vadd.f32 %v1382_v41, %v1381_v46  ;;  %v1284_v47 = vadd.f32 %v1283_v50, %v1282_v45  ;;  %v1400_v15 = vsel %vm1249_vm2, %v1344_v26, 0.0  ;;  %v1404_v45 = vsel %vm1249_vm2, %v1346_v33, 0.0 }
 0x11c   : > { %v1286_v59 = vadd.f32 %v1285_v53, %v1284_v47  ;;  %v1385_v16 = vadd.f32 %v1384_v55, %v1383_v51  ;;  %v1628_v56 = vpop.f32.mrb[12].mxu1 }
 0x11d   : > { %v1234_v31 = vpop.f32.mrb[13].mxu1  ;;  %v1349_v50 = vmul.f32 %v1628_v56, %v1628_v56  ;;  %v1309_v44 = vsel %vm1249_vm2, %v1628_v56, 0.0 }
 0x11e   : > { %v1387_v61 = vadd.f32 %v1386_v3, %v1385_v16  ;;  %v1288_v62 = vadd.f32 %v1287_v60, %v1286_v59  ;;  %v1629_v1 = vpop.f32.mrb[14].mxu1  ;;  %v1347_v34 = vmul.f32 %v1234_v31, %v1234_v31  ;;  %v1305_v40 = vsel %vm1249_vm2, %v1234_v31, 0.0 }
 0x11f   : > { %v1237_v7 = vpop.f32.mrb[15].mxu1  ;;  %v1350_v54 = vmul.f32 %v1629_v1, %v1629_v1  ;;  %v1410_v16 = vsel %vm1249_vm2, %v1349_v50, 0.0  ;;  %v1311_v3 = vsel %vm1249_vm2, %v1629_v1, 0.0 }
 0x120   : > { %v1290_v4 = vadd.f32 %v1289_v57, %v1288_v62  ;;  %v1389_v5 = vadd.f32 %v1388_v43, %v1387_v61  ;;  %v1406_v46 = vsel %vm1249_vm2, %v1347_v34, 0.0  ;;  %v1348_v36 = vmul.f32 %v1237_v7, %v1237_v7 }
 0x121   : > { %v1307_v51 = vsel %vm1249_vm2, %v1237_v7, 0.0  ;;  %v1412_v61 = vsel %vm1249_vm2, %v1350_v54, 0.0 }
 0x122   : > { %v1391_v9 = vadd.f32 %v1390_v63, %v1389_v5  ;;  %v1292_v10 = vadd.f32 %v1291_v52, %v1290_v4  ;;  %v1408_v55 = vsel %vm1249_vm2, %v1348_v36, 0.0 }
 0x124   : > { %v1294_v17 = vadd.f32 %v1293_v2, %v1292_v10  ;;  %v1393_v21 = vadd.f32 %v1392_v13, %v1391_v9 }
 0x126   : > { %v1395_v18 = vadd.f32 %v1394_v22, %v1393_v21  ;;  %v1296_v19 = vadd.f32 %v1295_v24, %v1294_v17 }
 0x128   : > { %v1298_v27 = vadd.f32 %v1297_v23, %v1296_v19  ;;  %v1397_v28 = vadd.f32 %v1396_v25, %v1395_v18 }
 0x12a   : > { %v1399_v32 = vadd.f32 %v1398_v6, %v1397_v28  ;;  %v1300_v11 = vadd.f32 %v1299_v30, %v1298_v27 }
 0x12c   : > { %v1302_v35 = vadd.f32 %v1301_v20, %v1300_v11  ;;  %v1401_v37 = vadd.f32 %v1400_v15, %v1399_v32 }
 0x12e   : > { %v1403_v41 = vadd.f32 %v1402_v38, %v1401_v37  ;;  %v1304_v42 = vadd.f32 %v1303_v39, %v1302_v35 }
 0x130   : > { %v1306_v48 = vadd.f32 %v1305_v40, %v1304_v42  ;;  %v1405_v49 = vadd.f32 %v1404_v45, %v1403_v41 }
 0x132   : > { %v1407_v47 = vadd.f32 %v1406_v46, %v1405_v49  ;;  %v1308_v53 = vadd.f32 %v1307_v51, %v1306_v48 }
 0x134   : > { %v1310_v58 = vadd.f32 %v1309_v44, %v1308_v53  ;;  %v1409_v59 = vadd.f32 %v1408_v55, %v1407_v47 }
 0x136   : > { %v1312_v60 = vadd.f32 %v1311_v3, %v1310_v58  ;;  %v1411_v57 = vadd.f32 %v1410_v16, %v1409_v59 }
 0x138   : > { %v1313_v62 = vrot.slane %v1312_v60, 4  ;;  %v1413_v31 = vadd.f32 %v1412_v61, %v1411_v57 }
 0x13a   : > { %v1314_v43 = vadd.f32 %v1313_v62, %v1312_v60  ;;  %v1414_v56 = vrot.slane %v1413_v31, 4 }
 0x13c   : > { %v1315_v63 = vrot.slane %v1314_v43, 2  ;;  %v1415_v0 = vadd.f32 %v1414_v56, %v1413_v31 }
 0x13e   : > { %v1316_v4 = vadd.f32 %v1315_v63, %v1314_v43  ;;  %v1416_v5 = vrot.slane %v1415_v0, 2 }
 0x140   : > { %v1317_v7 = vrot.slane %v1316_v4, 1  ;;  %v1417_v8 = vadd.f32 %v1416_v5, %v1415_v0 }
 0x142   : > { %v1418_v1 = vrot.slane %v1417_v8, 1  ;;  %v1318_v52 = vadd.f32 %v1317_v7, %v1316_v4 }
 0x144   : > { %v1419_v9 = vadd.f32 %v1418_v1, %v1417_v8 }
 0x146   : > { %v1421_v10 = vsel %vm1420_vm3, %v1318_v52, %v1419_v9 }
 0x147   : > { %1423 = vst.msk [vmem:[%s233_s14] sm:$0x3] %vm1422_vm4, %v1421_v10 }
 0x148 PF: > { %s14_s19 = sadd.s32 1, %s1713_s19   ;;  %s2077_s15 = smov %s1705_s17 }
 0x149   : > { %p11_p8 = scmp.ge.s32.totalorder %s14_s19, 6   ;;  %s2078_s16 = smov %s1709_s18 }
 0x14a   : > { %s2079_s17 = smov %s2082_s20  ;;  %s2080_s18 = smov %s2086_s21 }
 0x14b   :  { %13 = sbr.rel (!%p11_p8) target bundleno = 3 (0x3), region = 66 }

// kernel: bottleneck_forward.7
= control target key start
LH: loop header
LB: loop body
LE: loop exit
PB: predicated region body
PF: predicated region fallthrough
CT: control target
= control target key end

     0   :  { %s1296_s24 = smov 0   ;;  %s1298_s25 = smov 0   ;;  %s1607_s0 = inlined_call_operand.vmem [shape: bf16[2,512,4], index: 0, kind: input, shape index: {}]   ;;  %s1608_s1 = inlined_call_operand.vmem [shape: f32[2,512,16], index: 1, kind: input, shape index: {}]   ;;  %s1609_s2 = inlined_call_operand.vmem [shape: f32[1,4], index: 2, kind: input, shape index: {}]   ;;  %s1610_s3 = inlined_call_operand.vmem [shape: f32[1,4], index: 3, kind: input, shape index: {}]   ;;  %s1611_s4 = inlined_call_operand.vmem [shape: bf16[4,16], index: 4, kind: input, shape index: {}]   ;;  %s1612_s5 = inlined_call_operand.vmem [shape: f32[1,16], index: 5, kind: input, shape index: {}]   ;;  %s1613_s6 = inlined_call_operand.vmem [shape: f32[1,16], index: 6, kind: input, shape index: {}]   ;;  %s1614_s7 = inlined_call_operand.vmem [shape: f32[2,16,16,16], index: 7, kind: output, shape index: {}]  }
   0x1   :  { %s1300_s26 = smov 0   ;;  %s1302_s27 = smov 0  }
   0x2   :  { %s1304_s28 = smov 0  }
   0x3 LB: > { %s26_s29 = sadd.s32 1, %s1246_s26  ;;  %s29_s30 = sadd.s32 1, %s1250_s27  ;;  %s1254_s28 = sphi %s1304_s28, %s17_s28   ;;  %s1250_s27 = sphi %s1302_s27, %s1618_s27   ;;  %s1246_s26 = sphi %s1300_s26, %s1617_s26   ;;  %s1242_s25 = sphi %s1298_s25, %s1616_s25   ;;  %s1238_s24 = sphi %s1296_s24, %s1615_s24  }
   0x4   : > { %p27_p0 = scmp.ge.s32.totalorder %s26_s29, 2  ;;  %p1009_p1 = scmp.ge.s32.totalorder %s1254_s28, 1 }
   0x5   : > { %p275_p2 = scmp.lt.s32.totalorder %s1254_s28, 5 }
   0x6   : > { %s1620_s29 = smov (%p27_p0, %s26_s29), 0  ;;  %s1622_s30 = smov (!%p27_p0, %s29_s30), %s1250_s27 }
   0x7   : > { %p276_p3 = pnand %p1009_p1, %p275_p2  ;;  %p31_p4 = scmp.ge.s32.totalorder %s1622_s30, 2 }
   0x8   : > { %v547_v0 = vld [vmem:[%s1611_s4] sm:$0x3] (!%p276_p3)  ;;  %vm597_vm0 = vcmask (!%p276_p3), 1041408   ;;  %s1010_s10 = sshll.u32 (!%p276_p3), %s1238_s24, 5  ;;  %p326_p5 = scmp.lt.s32.totalorder (!%p276_p3), %s1242_s25, 1  ;;  %vm548_vm1 = vcmask (!%p276_p3), 31744  }
   0x9   : > { %s1624_s30 = smov (%p31_p4, %s1622_s30), 0  ;;  %279 = sbr.rel (%p276_p3) target bundleno = 285 (0x11d), region = 48 }
   0xa   : > { %1174 = vmatprep.subr.msk.bf16.mxu0 (!%p276_p3), %vm597_vm0, %v547_v0  ;;  %1175 = vmatprep.subr.msk.bf16.mxu1 (!%p276_p3), %vm597_vm0, %v547_v0  ;;  %v599_v1 = vsel (!%p276_p3), %vm597_vm0, %v547_v0, 0  ;;  %p328_p6 = scmp.lt.s32.totalorder (!%p276_p3), %s1010_s10, 63  ;;  %v1346_v2 = vld [vmem:[%s1609_s2] ss:$0 sm:$0xff] (!%p276_p3)  ;;  %s1016_s21 = sshll.u32 (!%p276_p3), %s1238_s24, 3  ;;  %vm868_vm2 = vcmask (!%p276_p3), 122880  }
   0xb   : > { %1139 = vmatpush3.bf16.msra.mxu0 (!%p276_p3), %v599_v1  ;;  %1173 = vmatpush3.bf16.msra.mxu1 (!%p276_p3), %v599_v1  ;;  %v1355_v11 = vld [vmem:[%s1610_s3] ss:$0 sm:$0xff] (!%p276_p3)  ;;  %p348_p7 = scmp.lt.s32.totalorder (!%p276_p3), %s1016_s21, 15  ;;  %vm864_vm3 = vcmask (!%p276_p3), 130049   ;;  %vm866_vm4 = vcmask (!%p276_p3), 130048  }
  0x10   : > { %s1626_s25 = smov (!%p326_p5, %s1242_s25), 1  ;;  %s1628_s10 = smov (!%p328_p6, %s1010_s10), 63 }
  0x11   : > { %s1011_s11 = sshll.u32 %s1626_s25, 6  ;;  %s1630_s21 = smov (!%p348_p7, %s1016_s21), 15 }
  0x12   : > { %s1335_s12 = sadd.s32 %s1011_s11, %s1628_s10  ;;  %s1017_s22 = sshll.u32 %s1630_s21, 1 }
  0x13   : > { %s1012_s13 = sshll.u32 %s1335_s12, 2  ;;  %s1018_s23 = sshll.u32 %s1626_s25, 5 }
  0x14   : > { %s1341_s16 = scalar_lea.vmem %s1607_s0, %s1012_s13  ;;  %s1015_s8 = sshll.u32 %s1335_s12, 3 }
  0x15   : > { %v1043_v3 = vld [vmem:[%s1341_s16] sm:$0xff]   ;;  %v1106_v5 = vld [vmem:[%s1341_s16 + $0x8] sm:$0xff]   ;;  %v1107_v32 = vld [vmem:[%s1341_s16 + $0x10] sm:$0xff]   ;;  %s352_s9 = sadd.s32 %s1018_s23, %s1017_s22  ;;  %s1460_s15 = scalar_lea.vmem %s1608_s1, %s1015_s8 }
  0x16   : > { %v1113_v4 = vld [vmem:[%s1341_s16 + $0x40] sm:$0xff]   ;;  %v1044_v6 = vunpack.c.l.bf16 %v1043_v3  ;;  %v1045_v7 = vunpack.c.h.bf16 %v1043_v3  ;;  %v1114_v10 = vld [vmem:[%s1341_s16 + $0x48] sm:$0xff]   ;;  %v1048_v12 = vunpack.c.l.bf16 %v1106_v5  ;;  %v1049_v13 = vunpack.c.h.bf16 %v1106_v5  ;;  %v1115_v37 = vld [vmem:[%s1341_s16 + $0x50] sm:$0xff]   ;;  %s1019_s25 = sshll.u32 %s352_s9, 3 }
  0x17   : > { %v1076_v8 = vunpack.c.l.bf16 %v1113_v4  ;;  %v1077_v9 = vunpack.c.h.bf16 %v1113_v4  ;;  %v1080_v14 = vunpack.c.l.bf16 %v1114_v10  ;;  %v1081_v15 = vunpack.c.h.bf16 %v1114_v10  ;;  %v1108_v42 = vld [vmem:[%s1341_s16 + $0x18] sm:$0xff]   ;;  %v1109_v5 = vld [vmem:[%s1341_s16 + $0x20] sm:$0xff]   ;;  %s1480_s18 = scalar_lea.vmem %s1614_s7, %s1019_s25 }
  0x18   : > { %v428_v16 = vmul.f32 %v1044_v6, %v1346_v2  ;;  %v429_v17 = vmul.f32 %v1045_v7, %v1346_v2  ;;  %v430_v20 = vmul.f32 %v1048_v12, %v1346_v2  ;;  %v431_v21 = vmul.f32 %v1049_v13, %v1346_v2  ;;  %v1116_v47 = vld [vmem:[%s1341_s16 + $0x58] sm:$0xff]  }
  0x19   : > { %v444_v18 = vmul.f32 %v1076_v8, %v1346_v2  ;;  %v445_v19 = vmul.f32 %v1077_v9, %v1346_v2  ;;  %v446_v22 = vmul.f32 %v1080_v14, %v1346_v2  ;;  %v447_v23 = vmul.f32 %v1081_v15, %v1346_v2  ;;  %v1117_v15 = vld [vmem:[%s1341_s16 + $0x60] sm:$0xff]  }
  0x1a   : > { %v467_v24 = vadd.f32 %v1355_v11, %v428_v16  ;;  %v468_v25 = vadd.f32 %v1355_v11, %v429_v17  ;;  %v469_v28 = vadd.f32 %v1355_v11, %v430_v20  ;;  %v470_v29 = vadd.f32 %v1355_v11, %v431_v21  ;;  %v1110_v20 = vld [vmem:[%s1341_s16 + $0x28] sm:$0xff]  }
  0x1b   : > { %v483_v26 = vadd.f32 %v1355_v11, %v444_v18  ;;  %v484_v27 = vadd.f32 %v1355_v11, %v445_v19  ;;  %v485_v30 = vadd.f32 %v1355_v11, %v446_v22  ;;  %v486_v31 = vadd.f32 %v1355_v11, %v447_v23 }
  0x1c   : > { %v499_v33 = vmax.f32 %v467_v24, 0.0  ;;  %v500_v34 = vmax.f32 %v468_v25, 0.0  ;;  %v501_v38 = vmax.f32 %v469_v28, 0.0  ;;  %v502_v39 = vmax.f32 %v470_v29, 0.0  ;;  %v1118_v25 = vld [vmem:[%s1341_s16 + $0x68] sm:$0xff]  }
  0x1d   : > { %v515_v35 = vmax.f32 %v483_v26, 0.0  ;;  %v516_v36 = vmax.f32 %v484_v27, 0.0  ;;  %v517_v40 = vmax.f32 %v485_v30, 0.0  ;;  %v518_v41 = vmax.f32 %v486_v31, 0.0 }
  0x1e   : > { %v531_v43 = vpack.c.bf16 %v500_v34, %v499_v33  ;;  %v1052_v45 = vunpack.c.l.bf16 %v1107_v32  ;;  %v1053_v46 = vunpack.c.h.bf16 %v1107_v32  ;;  %v532_v48 = vpack.c.bf16 %v502_v39, %v501_v38 }
  0x1f   : > { %v539_v44 = vpack.c.bf16 %v516_v36, %v515_v35  ;;  %v540_v49 = vpack.c.bf16 %v518_v41, %v517_v40  ;;  %v1084_v50 = vunpack.c.l.bf16 %v1115_v37  ;;  %v1085_v51 = vunpack.c.h.bf16 %v1115_v37 }
  0x20   : > { %1140 = vmatprep.mubr.msk.bf16.mxu0 %vm548_vm1, %v531_v43  ;;  %v432_v52 = vmul.f32 %v1052_v45, %v1346_v2  ;;  %v433_v53 = vmul.f32 %v1053_v46, %v1346_v2  ;;  %v1056_v54 = vunpack.c.l.bf16 %v1108_v42  ;;  %v1057_v55 = vunpack.c.h.bf16 %v1108_v42  ;;  %v1111_v42 = vld [vmem:[%s1341_s16 + $0x30] sm:$0xff]  }
  0x21   : > { %1156 = vmatprep.mubr.msk.bf16.mxu1 %vm548_vm1, %v539_v44  ;;  %1141 = vmatmul.mubr.msk.bf16.vlgmr.msra.gmra.mrb[0].mxu0 %vm548_vm1, %v532_v48  ;;  %v448_v56 = vmul.f32 %v1084_v50, %v1346_v2  ;;  %v449_v57 = vmul.f32 %v1085_v51, %v1346_v2  ;;  %v1088_v58 = vunpack.c.l.bf16 %v1116_v47  ;;  %v1089_v59 = vunpack.c.h.bf16 %v1116_v47 }
  0x22   : > { %1157 = vmatmul.mubr.msk.bf16.vlgmr.msra.gmra.mrb[0].mxu1 %vm548_vm1, %v540_v49  ;;  %v471_v60 = vadd.f32 %v1355_v11, %v432_v52  ;;  %v472_v61 = vadd.f32 %v1355_v11, %v433_v53  ;;  %v434_v62 = vmul.f32 %v1056_v54, %v1346_v2  ;;  %v435_v63 = vmul.f32 %v1057_v55, %v1346_v2  ;;  %v1119_v55 = vld [vmem:[%s1341_s16 + $0x70] sm:$0xff]  }
  0x23   : > { %v487_v0 = vadd.f32 %v1355_v11, %v448_v56  ;;  %v488_v1 = vadd.f32 %v1355_v11, %v449_v57  ;;  %v450_v3 = vmul.f32 %v1088_v58, %v1346_v2  ;;  %v451_v4 = vmul.f32 %v1089_v59, %v1346_v2 }
  0x24   : > { %v503_v6 = vmax.f32 %v471_v60, 0.0  ;;  %v504_v7 = vmax.f32 %v472_v61, 0.0  ;;  %v473_v8 = vadd.f32 %v1355_v11, %v434_v62  ;;  %v474_v9 = vadd.f32 %v1355_v11, %v435_v63  ;;  %v1112_v60 = vld [vmem:[%s1341_s16 + $0x38] sm:$0xff]  }
  0x25   : > { %v519_v10 = vmax.f32 %v487_v0, 0.0  ;;  %v520_v12 = vmax.f32 %v488_v1, 0.0  ;;  %v489_v13 = vadd.f32 %v1355_v11, %v450_v3  ;;  %v490_v14 = vadd.f32 %v1355_v11, %v451_v4  ;;  %v1120_v1 = vld [vmem:[%s1341_s16 + $0x78] sm:$0xff]  }
  0x26   : > { %v533_v16 = vpack.c.bf16 %v504_v7, %v503_v6  ;;  %v505_v17 = vmax.f32 %v473_v8, 0.0  ;;  %v506_v18 = vmax.f32 %v474_v9, 0.0  ;;  %v1060_v19 = vunpack.c.l.bf16 %v1109_v5 }
  0x27   : > { %v541_v21 = vpack.c.bf16 %v520_v12, %v519_v10  ;;  %v521_v22 = vmax.f32 %v489_v13, 0.0  ;;  %v522_v23 = vmax.f32 %v490_v14, 0.0  ;;  %v1061_v24 = vunpack.c.h.bf16 %v1109_v5 }
  0x28   : > { %1144 = vmatprep.mubr.msk.bf16.mxu0 %vm548_vm1, %v533_v16  ;;  %v534_v26 = vpack.c.bf16 %v506_v18, %v505_v17  ;;  %v436_v27 = vmul.f32 %v1060_v19, %v1346_v2  ;;  %v1092_v28 = vunpack.c.l.bf16 %v1117_v15  ;;  %v1093_v29 = vunpack.c.h.bf16 %v1117_v15 }
  0x29   : > { %1160 = vmatprep.mubr.msk.bf16.mxu1 %vm548_vm1, %v541_v21  ;;  %v542_v30 = vpack.c.bf16 %v522_v23, %v521_v22  ;;  %v437_v31 = vmul.f32 %v1061_v24, %v1346_v2  ;;  %v1064_v32 = vunpack.c.l.bf16 %v1110_v20  ;;  %v1065_v33 = vunpack.c.h.bf16 %v1110_v20 }
  0x2a   : > { %1145 = vmatmul.mubr.msk.bf16.gmra.mrb[4].mxu0 %vm548_vm1, %v534_v26  ;;  %v475_v34 = vadd.f32 %v1355_v11, %v436_v27  ;;  %v452_v35 = vmul.f32 %v1092_v28, %v1346_v2  ;;  %v453_v36 = vmul.f32 %v1093_v29, %v1346_v2  ;;  %v1096_v37 = vunpack.c.l.bf16 %v1118_v25 }
  0x2b   : > { %1161 = vmatmul.mubr.msk.bf16.gmra.mrb[4].mxu1 %vm548_vm1, %v542_v30  ;;  %v476_v38 = vadd.f32 %v1355_v11, %v437_v31  ;;  %v438_v39 = vmul.f32 %v1064_v32, %v1346_v2  ;;  %v439_v40 = vmul.f32 %v1065_v33, %v1346_v2  ;;  %v1097_v41 = vunpack.c.h.bf16 %v1118_v25 }
  0x2c   : > { %v507_v43 = vmax.f32 %v475_v34, 0.0  ;;  %v491_v44 = vadd.f32 %v1355_v11, %v452_v35  ;;  %v492_v45 = vadd.f32 %v1355_v11, %v453_v36  ;;  %v454_v46 = vmul.f32 %v1096_v37, %v1346_v2 }
  0x2d   : > { %v508_v47 = vmax.f32 %v476_v38, 0.0  ;;  %v477_v48 = vadd.f32 %v1355_v11, %v438_v39  ;;  %v478_v49 = vadd.f32 %v1355_v11, %v439_v40  ;;  %v455_v50 = vmul.f32 %v1097_v41, %v1346_v2  ;;  %v1465_v40 = vld [vmem:[%s1613_s6] ss:$0 sm:$0xff] }
  0x2e   : > { %v523_v51 = vmax.f32 %v491_v44, 0.0  ;;  %v524_v52 = vmax.f32 %v492_v45, 0.0  ;;  %v493_v53 = vadd.f32 %v1355_v11, %v454_v46  ;;  %v1068_v54 = vunpack.c.l.bf16 %v1111_v42  ;;  %v818_v46 = vld [vmem:[%s1460_s15 + $0x10] sm:$0xff] }
  0x2f   : > { %v535_v56 = vpack.c.bf16 %v508_v47, %v507_v43  ;;  %v509_v57 = vmax.f32 %v477_v48, 0.0  ;;  %v510_v58 = vmax.f32 %v478_v49, 0.0  ;;  %v494_v59 = vadd.f32 %v1355_v11, %v455_v50  ;;  %v830_v47 = vld [vmem:[%s1460_s15 + $0x90] sm:$0xff] }
  0x30   : > { %v543_v61 = vpack.c.bf16 %v524_v52, %v523_v51  ;;  %v525_v62 = vmax.f32 %v493_v53, 0.0  ;;  %v1069_v63 = vunpack.c.h.bf16 %v1111_v42  ;;  %v440_v0 = vmul.f32 %v1068_v54, %v1346_v2  ;;  %v816_v54 = vld [vmem:[%s1460_s15] sm:$0xff] }
  0x31   : > { %1148 = vmatprep.mubr.msk.bf16.mxu0 %vm548_vm1, %v535_v56  ;;  %v536_v3 = vpack.c.bf16 %v510_v58, %v509_v57  ;;  %v526_v4 = vmax.f32 %v494_v59, 0.0  ;;  %v1100_v5 = vunpack.c.l.bf16 %v1119_v55  ;;  %v1101_v6 = vunpack.c.h.bf16 %v1119_v55  ;;  %v828_v55 = vld [vmem:[%s1460_s15 + $0x80] sm:$0xff] }
  0x32   : > { %1164 = vmatprep.mubr.msk.bf16.mxu1 %vm548_vm1, %v543_v61  ;;  %v441_v7 = vmul.f32 %v1069_v63, %v1346_v2  ;;  %v479_v8 = vadd.f32 %v1355_v11, %v440_v0  ;;  %v1072_v9 = vunpack.c.l.bf16 %v1112_v60  ;;  %v1073_v10 = vunpack.c.h.bf16 %v1112_v60  ;;  %v817_v0 = vld [vmem:[%s1460_s15 + $0x8] sm:$0xff] }
  0x33   : > { %1149 = vmatmul.mubr.msk.bf16.gmra.mrb[8].mxu0 %vm548_vm1, %v536_v3  ;;  %v544_v12 = vpack.c.bf16 %v526_v4, %v525_v62  ;;  %v456_v13 = vmul.f32 %v1100_v5, %v1346_v2  ;;  %v457_v14 = vmul.f32 %v1101_v6, %v1346_v2  ;;  %v1104_v15 = vunpack.c.l.bf16 %v1120_v1 }
  0x34   : > { %v480_v16 = vadd.f32 %v1355_v11, %v441_v7  ;;  %v511_v17 = vmax.f32 %v479_v8, 0.0  ;;  %v442_v18 = vmul.f32 %v1072_v9, %v1346_v2  ;;  %v443_v19 = vmul.f32 %v1073_v10, %v1346_v2 }
  0x35   : > { %1165 = vmatmul.mubr.msk.bf16.gmra.mrb[8].mxu1 %vm548_vm1, %v544_v12  ;;  %v495_v20 = vadd.f32 %v1355_v11, %v456_v13  ;;  %v496_v21 = vadd.f32 %v1355_v11, %v457_v14  ;;  %v1105_v22 = vunpack.c.h.bf16 %v1120_v1  ;;  %v458_v23 = vmul.f32 %v1104_v15, %v1346_v2  ;;  %v829_v1 = vld [vmem:[%s1460_s15 + $0x88] sm:$0xff]  ;;  %v821_v14 = vld [vmem:[%s1460_s15 + $0x30] sm:$0xff] }
  0x36   : > { %v512_v24 = vmax.f32 %v480_v16, 0.0  ;;  %v481_v25 = vadd.f32 %v1355_v11, %v442_v18  ;;  %v482_v26 = vadd.f32 %v1355_v11, %v443_v19 }
  0x37   : > { %v527_v27 = vmax.f32 %v495_v20, 0.0  ;;  %v528_v28 = vmax.f32 %v496_v21, 0.0  ;;  %v459_v29 = vmul.f32 %v1105_v22, %v1346_v2  ;;  %v497_v30 = vadd.f32 %v1355_v11, %v458_v23  ;;  %v833_v20 = vld [vmem:[%s1460_s15 + $0xb0] sm:$0xff]  ;;  %v819_v21 = vld [vmem:[%s1460_s15 + $0x20] sm:$0xff] }
  0x38   : > { %v537_v31 = vpack.c.bf16 %v512_v24, %v511_v17  ;;  %v513_v32 = vmax.f32 %v481_v25, 0.0  ;;  %v514_v33 = vmax.f32 %v482_v26, 0.0 }
  0x39   : > { %v545_v34 = vpack.c.bf16 %v528_v28, %v527_v27  ;;  %v498_v35 = vadd.f32 %v1355_v11, %v459_v29  ;;  %v529_v36 = vmax.f32 %v497_v30, 0.0  ;;  %v1455_v11 = vld [vmem:[%s1612_s5] ss:$0 sm:$0xff] }
  0x3a   : > { %1152 = vmatprep.mubr.msk.bf16.mxu0 %vm548_vm1, %v537_v31  ;;  %v538_v37 = vpack.c.bf16 %v514_v33, %v513_v32  ;;  %v831_v27 = vld [vmem:[%s1460_s15 + $0xa0] sm:$0xff]  ;;  %v820_v32 = vld [vmem:[%s1460_s15 + $0x28] sm:$0xff] }
  0x3b   : > { %1168 = vmatprep.mubr.msk.bf16.mxu1 %vm548_vm1, %v545_v34  ;;  %v530_v38 = vmax.f32 %v498_v35, 0.0 }
  0x3c   : > { %1153 = vmatmul.mubr.msk.bf16.gmra.mrb[12].mxu0 %vm548_vm1, %v538_v37  ;;  %v832_v37 = vld [vmem:[%s1460_s15 + $0xa8] sm:$0xff] }
  0x3d   : > { %v546_v2 = vpack.c.bf16 %v530_v38, %v529_v36 }
  0x3f   : > { %1169 = vmatmul.mubr.msk.bf16.gmra.mrb[12].mxu1 %vm548_vm1, %v546_v2 }
  0xf4   : > { %v1142_v39 = vpop.f32.mrb[0].mxu0 }
  0xf5   : > { %v1158_v41 = vpop.f32.mrb[0].mxu1  ;;  %v763_v42 = vmul.f32 %v1142_v39, %v1455_v11  ;;  %v635_v44 = vpop.f32.mrb[1].mxu0 }
  0xf6   : > { %v775_v43 = vmul.f32 %v1158_v41, %v1455_v11  ;;  %v695_v45 = vpop.f32.mrb[1].mxu1  ;;  %v761_v48 = vmul.f32 %v1455_v11, %v635_v44  ;;  %v1143_v50 = vpop.f32.mrb[2].mxu0 }
  0xf7   : > { %v773_v49 = vmul.f32 %v1455_v11, %v695_v45  ;;  %v1159_v51 = vpop.f32.mrb[2].mxu1  ;;  %v794_v52 = vadd.f32 %v1465_v40, %v763_v42  ;;  %v638_v56 = vpop.f32.mrb[3].mxu0  ;;  %v824_v45 = vld [vmem:[%s1460_s15 + $0x50] sm:$0xff] }
  0xf8   : > { %v806_v53 = vadd.f32 %v1465_v40, %v775_v43  ;;  %v698_v57 = vpop.f32.mrb[3].mxu1  ;;  %v792_v58 = vadd.f32 %v1465_v40, %v761_v48  ;;  %v762_v60 = vmul.f32 %v1455_v11, %v638_v56  ;;  %v822_v51 = vld [vmem:[%s1460_s15 + $0x40] sm:$0xff] }
  0xf9   : > { %v804_v59 = vadd.f32 %v1465_v40, %v773_v49  ;;  %v774_v61 = vmul.f32 %v1455_v11, %v698_v57  ;;  %v842_v62 = vadd.f32 %v818_v46, %v794_v52 }
  0xfa   : > { %v854_v63 = vadd.f32 %v830_v47, %v806_v53  ;;  %v840_v3 = vadd.f32 %v816_v54, %v792_v58  ;;  %v793_v5 = vadd.f32 %v1465_v40, %v762_v60  ;;  %v836_v54 = vld [vmem:[%s1460_s15 + $0xd0] sm:$0xff] }
  0xfb   : > { %v852_v4 = vadd.f32 %v828_v55, %v804_v59  ;;  %v805_v6 = vadd.f32 %v1465_v40, %v774_v61  ;;  %869 = vst.msk [vmem:[%s1480_s18 + $0xf] sm:$0x1] %vm868_vm2, %v842_v62  ;;  %v834_v61 = vld [vmem:[%s1460_s15 + $0xc0] sm:$0xff]  ;;  %v823_v62 = vld [vmem:[%s1460_s15 + $0x48] sm:$0xff] }
  0xfc   : > { %881 = vst.msk [vmem:[%s1480_s18 + $0x4f] sm:$0x1] %vm868_vm2, %v854_v63  ;;  %v841_v7 = vadd.f32 %v817_v0, %v793_v5 }
  0xfd   : > { %865 = vst.msk [vmem:[%s1480_s18 - $0x1] sm:$0xfe] %vm864_vm3, %v840_v3  ;;  %879 = vst.msk [vmem:[%s1480_s18 + $0x3f] sm:$0xfe] %vm864_vm3, %v852_v4  ;;  %v853_v8 = vadd.f32 %v829_v1, %v805_v6  ;;  %v1146_v9 = vpop.f32.mrb[4].mxu0  ;;  %v835_v6 = vld [vmem:[%s1460_s15 + $0xc8] sm:$0xff] }
  0xfe   : > { %867 = vst.msk [vmem:[%s1480_s18 + $0x7] sm:$0xff] %vm866_vm4, %v841_v7  ;;  %v766_v10 = vmul.f32 %v1146_v9, %v1455_v11  ;;  %v1162_v12 = vpop.f32.mrb[4].mxu1  ;;  %v650_v13 = vpop.f32.mrb[5].mxu0 }
  0xff   : > { %880 = vst.msk [vmem:[%s1480_s18 + $0x47] sm:$0xff] %vm866_vm4, %v853_v8  ;;  %v778_v15 = vmul.f32 %v1162_v12, %v1455_v11  ;;  %v764_v16 = vmul.f32 %v1455_v11, %v650_v13  ;;  %v710_v17 = vpop.f32.mrb[5].mxu1  ;;  %v1147_v18 = vpop.f32.mrb[6].mxu0 }
 0x100   : > { %v797_v19 = vadd.f32 %v1465_v40, %v766_v10  ;;  %v776_v22 = vmul.f32 %v1455_v11, %v710_v17  ;;  %v1163_v23 = vpop.f32.mrb[6].mxu1  ;;  %v653_v24 = vpop.f32.mrb[7].mxu0 }
 0x101   : > { %v809_v25 = vadd.f32 %v1465_v40, %v778_v15  ;;  %v795_v26 = vadd.f32 %v1465_v40, %v764_v16  ;;  %v765_v28 = vmul.f32 %v1455_v11, %v653_v24  ;;  %v713_v29 = vpop.f32.mrb[7].mxu1  ;;  %v827_v15 = vld [vmem:[%s1460_s15 + $0x70] sm:$0xff] }
 0x102   : > { %v845_v30 = vadd.f32 %v821_v14, %v797_v19  ;;  %v807_v31 = vadd.f32 %v1465_v40, %v776_v22  ;;  %v777_v33 = vmul.f32 %v1455_v11, %v713_v29 }
 0x103   : > { %v857_v34 = vadd.f32 %v833_v20, %v809_v25  ;;  %v843_v35 = vadd.f32 %v819_v21, %v795_v26  ;;  %v796_v36 = vadd.f32 %v1465_v40, %v765_v28  ;;  %v825_v20 = vld [vmem:[%s1460_s15 + $0x60] sm:$0xff] }
 0x104   : > { %872 = vst.msk [vmem:[%s1480_s18 + $0x1f] sm:$0x1] %vm868_vm2, %v845_v30  ;;  %v855_v38 = vadd.f32 %v831_v27, %v807_v31  ;;  %v808_v2 = vadd.f32 %v1465_v40, %v777_v33  ;;  %v839_v27 = vld [vmem:[%s1460_s15 + $0xf0] sm:$0xff]  ;;  %v826_v30 = vld [vmem:[%s1460_s15 + $0x68] sm:$0xff]  ;;  %v837_v33 = vld [vmem:[%s1460_s15 + $0xe0] sm:$0xff] }
 0x105   : > { %884 = vst.msk [vmem:[%s1480_s18 + $0x5f] sm:$0x1] %vm868_vm2, %v857_v34  ;;  %v844_v39 = vadd.f32 %v820_v32, %v796_v36 }
 0x106   : > { %870 = vst.msk [vmem:[%s1480_s18 + $0xf] sm:$0xfe] %vm864_vm3, %v843_v35  ;;  %882 = vst.msk [vmem:[%s1480_s18 + $0x4f] sm:$0xfe] %vm864_vm3, %v855_v38  ;;  %v856_v41 = vadd.f32 %v832_v37, %v808_v2  ;;  %v1150_v42 = vpop.f32.mrb[8].mxu0 }
 0x107   : > { %871 = vst.msk [vmem:[%s1480_s18 + $0x17] sm:$0xff] %vm866_vm4, %v844_v39  ;;  %v769_v43 = vmul.f32 %v1150_v42, %v1455_v11  ;;  %v665_v44 = vpop.f32.mrb[9].mxu0  ;;  %v838_v39 = vld [vmem:[%s1460_s15 + $0xe8] sm:$0xff] }
 0x108   : > { %883 = vst.msk [vmem:[%s1480_s18 + $0x57] sm:$0xff] %vm866_vm4, %v856_v41  ;;  %v1166_v46 = vpop.f32.mrb[8].mxu1  ;;  %v767_v47 = vmul.f32 %v1455_v11, %v665_v44  ;;  %v1151_v48 = vpop.f32.mrb[10].mxu0 }
 0x109   : > { %v800_v49 = vadd.f32 %v1465_v40, %v769_v43  ;;  %v781_v50 = vmul.f32 %v1166_v46, %v1455_v11  ;;  %v725_v52 = vpop.f32.mrb[9].mxu1  ;;  %v668_v53 = vpop.f32.mrb[11].mxu0 }
 0x10a   : > { %v798_v55 = vadd.f32 %v1465_v40, %v767_v47  ;;  %v779_v56 = vmul.f32 %v1455_v11, %v725_v52  ;;  %v1167_v57 = vpop.f32.mrb[10].mxu1  ;;  %v768_v58 = vmul.f32 %v1455_v11, %v668_v53 }
 0x10b   : > { %v848_v59 = vadd.f32 %v824_v45, %v800_v49  ;;  %v812_v60 = vadd.f32 %v1465_v40, %v781_v50  ;;  %v728_v63 = vpop.f32.mrb[11].mxu1 }
 0x10c   : > { %v846_v0 = vadd.f32 %v822_v51, %v798_v55  ;;  %v810_v1 = vadd.f32 %v1465_v40, %v779_v56  ;;  %v799_v3 = vadd.f32 %v1465_v40, %v768_v58  ;;  %v780_v4 = vmul.f32 %v1455_v11, %v728_v63 }
 0x10d   : > { %875 = vst.msk [vmem:[%s1480_s18 + $0x2f] sm:$0x1] %vm868_vm2, %v848_v59  ;;  %v860_v5 = vadd.f32 %v836_v54, %v812_v60 }
 0x10e   : > { %873 = vst.msk [vmem:[%s1480_s18 + $0x1f] sm:$0xfe] %vm864_vm3, %v846_v0  ;;  %v858_v7 = vadd.f32 %v834_v61, %v810_v1  ;;  %v847_v8 = vadd.f32 %v823_v62, %v799_v3  ;;  %v811_v9 = vadd.f32 %v1465_v40, %v780_v4 }
 0x10f   : > { %887 = vst.msk [vmem:[%s1480_s18 + $0x6f] sm:$0x1] %vm868_vm2, %v860_v5  ;;  %v1154_v10 = vpop.f32.mrb[12].mxu0 }
 0x110   : > { %885 = vst.msk [vmem:[%s1480_s18 + $0x5f] sm:$0xfe] %vm864_vm3, %v858_v7  ;;  %v859_v12 = vadd.f32 %v835_v6, %v811_v9  ;;  %v772_v13 = vmul.f32 %v1154_v10, %v1455_v11  ;;  %v680_v14 = vpop.f32.mrb[13].mxu0 }
 0x111   : > { %874 = vst.msk [vmem:[%s1480_s18 + $0x27] sm:$0xff] %vm866_vm4, %v847_v8  ;;  %v770_v16 = vmul.f32 %v1455_v11, %v680_v14  ;;  %v1155_v17 = vpop.f32.mrb[14].mxu0 }
 0x112   : > { %886 = vst.msk [vmem:[%s1480_s18 + $0x67] sm:$0xff] %vm866_vm4, %v859_v12  ;;  %v803_v18 = vadd.f32 %v1465_v40, %v772_v13  ;;  %v1170_v19 = vpop.f32.mrb[12].mxu1  ;;  %v683_v21 = vpop.f32.mrb[15].mxu0 }
 0x113   : > { %v784_v22 = vmul.f32 %v1170_v19, %v1455_v11  ;;  %v801_v23 = vadd.f32 %v1465_v40, %v770_v16  ;;  %v740_v24 = vpop.f32.mrb[13].mxu1  ;;  %v771_v25 = vmul.f32 %v1455_v11, %v683_v21 }
 0x114   : > { %v851_v26 = vadd.f32 %v827_v15, %v803_v18  ;;  %v782_v28 = vmul.f32 %v1455_v11, %v740_v24  ;;  %v1171_v29 = vpop.f32.mrb[14].mxu1 }
 0x115   : > { %v815_v31 = vadd.f32 %v1465_v40, %v784_v22  ;;  %v849_v32 = vadd.f32 %v825_v20, %v801_v23  ;;  %v802_v34 = vadd.f32 %v1465_v40, %v771_v25  ;;  %v743_v35 = vpop.f32.mrb[15].mxu1 }
 0x116   : > { %878 = vst.msk [vmem:[%s1480_s18 + $0x3f] sm:$0x1] %vm868_vm2, %v851_v26  ;;  %v813_v36 = vadd.f32 %v1465_v40, %v782_v28  ;;  %v783_v37 = vmul.f32 %v1455_v11, %v743_v35 }
 0x117   : > { %v863_v38 = vadd.f32 %v839_v27, %v815_v31  ;;  %876 = vst.msk [vmem:[%s1480_s18 + $0x2f] sm:$0xfe] %vm864_vm3, %v849_v32  ;;  %v850_v2 = vadd.f32 %v826_v30, %v802_v34 }
 0x118   : > { %v861_v41 = vadd.f32 %v837_v33, %v813_v36  ;;  %v814_v42 = vadd.f32 %v1465_v40, %v783_v37 }
 0x119   : > { %890 = vst.msk [vmem:[%s1480_s18 + $0x7f] sm:$0x1] %vm868_vm2, %v863_v38 }
 0x11a   : > { %877 = vst.msk [vmem:[%s1480_s18 + $0x37] sm:$0xff] %vm866_vm4, %v850_v2  ;;  %v862_v43 = vadd.f32 %v838_v39, %v814_v42 }
 0x11b   : > { %888 = vst.msk [vmem:[%s1480_s18 + $0x6f] sm:$0xfe] %vm864_vm3, %v861_v41 }
 0x11c   : > { %889 = vst.msk [vmem:[%s1480_s18 + $0x77] sm:$0xff] %vm866_vm4, %v862_v43 }
 0x11d PF: > { %s17_s28 = sadd.s32 1, %s1254_s28   ;;  %s1615_s24 = smov %s1246_s26 }
 0x11e   : > { %p14_p8 = scmp.ge.s32.totalorder %s17_s28, 6   ;;  %s1616_s25 = smov %s1250_s27 }
 0x11f   : > { %s1617_s26 = smov %s1620_s29  ;;  %s1618_s27 = smov %s1624_s30 }
 0x120   :  { %16 = sbr.rel (!%p14_p8) target bundleno = 3 (0x3), region = 81 }

// kernel: bottleneck_forward.5
= control target key start
LH: loop header
LB: loop body
LE: loop exit
PB: predicated region body
PF: predicated region fallthrough
CT: control target
= control target key end

     0   :  { %s5137_s24 = smov 0   ;;  %s5139_s25 = smov 0   ;;  %s6200_s0 = inlined_call_operand.vmem [shape: bf16[2,512,4], index: 0, kind: input, shape index: {}, may-alias: {0,1,2}]   ;;  %s6201_s1 = inlined_call_operand.vmem [shape: bf16[2,512,4], index: 1, kind: input, shape index: {}, may-alias: {0,1,2}]   ;;  %s6202_s2 = inlined_call_operand.vmem [shape: bf16[2,512,4], index: 2, kind: input, shape index: {}, may-alias: {0,1,2}]   ;;  %s6203_s3 = inlined_call_operand.vmem [shape: f32[1,4], index: 3, kind: input, shape index: {}]   ;;  %s6204_s4 = inlined_call_operand.vmem [shape: f32[1,4], index: 4, kind: input, shape index: {}]   ;;  %s6205_s5 = inlined_call_operand.vmem [shape: bf16[9,4,4], index: 5, kind: input, shape index: {}]   ;;  %s6206_s6 = inlined_call_operand.vmem [shape: bf16[2,512,4], index: 6, kind: output, shape index: {0}]   ;;  %s6207_s7 = inlined_call_operand.vmem [shape: f32[2,2,2,4], index: 7, kind: output, shape index: {1}]  }
   0x1   :  { %s5141_s26 = smov 0   ;;  %s5143_s27 = smov 0  }
   0x2   :  { %s5145_s28 = smov 0  }
   0x3 LB: > { %s27_s29 = sadd.s32 1, %s5085_s26  ;;  %s30_s30 = sadd.s32 1, %s5089_s27  ;;  %s5093_s28 = sphi %s5145_s28, %s18_s28   ;;  %s5089_s27 = sphi %s5143_s27, %s6440_s27   ;;  %s5085_s26 = sphi %s5141_s26, %s6439_s26   ;;  %s5081_s25 = sphi %s5139_s25, %s6438_s25   ;;  %s5077_s24 = sphi %s5137_s24, %s6437_s24  }
   0x4   : > { %p28_p0 = scmp.ge.s32.totalorder %s27_s29, 2  ;;  %p4002_p1 = scmp.ge.s32.totalorder %s5093_s28, 1 }
   0x5   : > { %p329_p2 = scmp.lt.s32.totalorder %s5093_s28, 5 }
   0x6   : > { %s6442_s29 = smov (%p28_p0, %s27_s29), 0  ;;  %s6444_s30 = smov (!%p28_p0, %s30_s30), %s5089_s27 }
   0x7   : > { %p330_p3 = pnand %p4002_p1, %p329_p2  ;;  %p32_p4 = scmp.ge.s32.totalorder %s6444_s30, 2 }
   0x8   : > { %v4022_v0 = vld [vmem:[%s6205_s5 + $0x6] sm:$0x3] (!%p330_p3)  ;;  %vm6208_vm0 = vcmask (!%p330_p3), 1041408   ;;  %v4089_v1 = vld [vmem:[%s6205_s5 + $0x8] sm:$0x3] (!%p330_p3)  ;;  %s4003_s12 = sshll.u32 (!%p330_p3), %s5077_s24, 5  ;;  %v470_v2 = vlaneseq (!%p330_p3) }
   0x9   : > { %s6446_s30 = smov (%p32_p4, %s6444_s30), 0  ;;  %333 = sbr.rel (%p330_p3) target bundleno = 563 (0x233), region = 44 }
   0xa   : > { %5002 = vmatprep.subr.msk.bf16.mxu1 (!%p330_p3), %vm6208_vm0, %v4022_v0  ;;  %5006 = vmatprep.subr.msk.bf16.mxu0 (!%p330_p3), %vm6208_vm0, %v4089_v1  ;;  %v1487_v3 = vsel (!%p330_p3), %vm6208_vm0, %v4022_v0, 0  ;;  %v5182_v4 = vsel (!%p330_p3), %vm6208_vm0, %v4089_v1, 0  ;;  %p404_p5 = scmp.lt.s32.totalorder (!%p330_p3), %s5081_s25, 1  ;;  %p5185_p6 = scmp.lt.s32.totalorder (!%p330_p3), %s4003_s12, 63  ;;  %v5190_v5 = vshrl.u32 (!%p330_p3), %v470_v2, 7  ;;  %vm6213_vm1 = vcmask (!%p330_p3), 31744  }
   0xb   : > { %4447 = vmatpush3.bf16.msra.mxu1 (!%p330_p3), %v1487_v3  ;;  %4583 = vmatpush3.bf16.msra.mxu0 (!%p330_p3), %v5182_v4  ;;  %v5095_v6 = vmov (!%p330_p3), 0.0   ;;  %v1434_v7 = vld [vmem:[%s6205_s5] sm:$0x3] (!%p330_p3)  ;;  %v4106_v8 = vld [vmem:[%s6205_s5 + $0xe] sm:$0x3] (!%p330_p3)  ;;  %s4006_s10 = sshll.u32 (!%p330_p3), %s5077_s24, 3 }
   0xc   : > { %1336 = vst.msk [vmem:[#allocation2 + $0x20] sm:$0xff] (!%p330_p3), %vm6213_vm1, %v5095_v6  ;;  %1332 = vst.msk [vmem:[#allocation2] sm:$0xff] (!%p330_p3), %vm6213_vm1, %v5095_v6  ;;  %v507_v9 = vand.u32 (!%p330_p3), 31, %v5190_v5  ;;  %5003 = vmatprep.subr.msk.bf16.mxu1 (!%p330_p3), %vm6208_vm0, %v1434_v7  ;;  %5008 = vmatprep.subr.msk.bf16.mxu0 (!%p330_p3), %vm6208_vm0, %v4106_v8  ;;  %v473_v10 = vadd.s32 (!%p330_p3), 16, %v5190_v5  ;;  %v475_v11 = vadd.s32 (!%p330_p3), 32, %v5190_v5  ;;  %v477_v12 = vadd.s32 (!%p330_p3), 48, %v5190_v5 }
   0xd   : > { %1340 = vst.msk [vmem:[#allocation2 + $0x40] sm:$0xff] (!%p330_p3), %vm6213_vm1, %v5095_v6  ;;  %1344 = vst.msk [vmem:[#allocation2 + $0x60] sm:$0xff] (!%p330_p3), %vm6213_vm1, %v5095_v6  ;;  %v479_v13 = vadd.s32 (!%p330_p3), 64, %v5190_v5  ;;  %v5226_v14 = vadd.s32 (!%p330_p3), 80, %v5190_v5  ;;  %v5230_v16 = vsel (!%p330_p3), %vm6208_vm0, %v1434_v7, 0  ;;  %v5233_v17 = vsel (!%p330_p3), %vm6208_vm0, %v4106_v8, 0 }
   0xe   : > { %1348 = vst.msk [vmem:[#allocation2 + $0x80] sm:$0xff] (!%p330_p3), %vm6213_vm1, %v5095_v6  ;;  %1352 = vst.msk [vmem:[#allocation2 + $0xa0] sm:$0xff] (!%p330_p3), %vm6213_vm1, %v5095_v6  ;;  %v521_v15 = vand.u32 (!%p330_p3), 31, %v473_v10  ;;  %v5236_v18 = vadd.s32 (!%p330_p3), 96, %v5190_v5  ;;  %v5243_v19 = vld [vmem:[%s6203_s3] ss:$0 sm:$0xff] (!%p330_p3) }
   0xf   : > { %1356 = vst.msk [vmem:[#allocation2 + $0xc0] sm:$0xff] (!%p330_p3), %vm6213_vm1, %v5095_v6  ;;  %1360 = vst.msk [vmem:[#allocation2 + $0xe0] sm:$0xff] (!%p330_p3), %vm6213_vm1, %v5095_v6  ;;  %vm5245_vm2 = vcmp.ge.s32.totalorder (!%p330_p3), %v507_v9, 1  ;;  %v535_v21 = vand.u32 (!%p330_p3), 31, %v475_v11  ;;  %v549_v22 = vand.u32 (!%p330_p3), 31, %v477_v12  ;;  %v563_v23 = vand.u32 (!%p330_p3), 31, %v479_v13 }
  0x10   : > { %s6448_s25 = smov (!%p404_p5, %s5081_s25), 1  ;;  %1364 = vst.msk [vmem:[#allocation2 + $0x100] sm:$0xff] %vm6213_vm1, %v5095_v6  ;;  %1368 = vst.msk [vmem:[#allocation2 + $0x120] sm:$0xff] %vm6213_vm1, %v5095_v6  ;;  %s6450_s12 = smov (!%p5185_p6, %s4003_s12), 63  ;;  %v5250_v24 = vadd.s32 112, %v5190_v5  ;;  %vm5258_vm3 = vcmp.le.s32.totalorder %v521_v15, 16 }
  0x11   : > { %1372 = vst.msk [vmem:[#allocation2 + $0x140] sm:$0xff] %vm6213_vm1, %v5095_v6  ;;  %1373 = vst.msk [vmem:[#allocation2 + $0x148] sm:$0xff] %vm6213_vm1, %v5095_v6  ;;  %s5220_s18 = sshll.u32 %s6448_s25, 6  ;;  %v577_v26 = vand.u32 31, %v5226_v14  ;;  %v591_v27 = vand.u32 31, %v5236_v18  ;;  %v5265_v28 = vadd.s32 128, %v5190_v5 }
  0x12   : > { %s409_s19 = sadd.s32 %s5220_s18, %s6450_s12  ;;  %vm5270_vm4 = vcmp.ge.s32.totalorder %v535_v21, 1  ;;  %vm5275_vm5 = vcmp.le.s32.totalorder %v549_v22, 16  ;;  %v5283_v39 = vld [vmem:[%s6204_s4] ss:$0 sm:$0xff]  ;;  %vm5285_vm6 = vcmp.ge.s32.totalorder %v563_v23, 1  ;;  %s5295_s13 = sadd.s32 4294967295, %s4006_s10 }
  0x13   : > { %s5238_s20 = sshll.u32 %s409_s19, 2  ;;  %p415_p7 = scmp.gt.s32.totalorder %s5295_s13, 0  ;;  %v605_v11 = vand.u32 31, %v5250_v24  ;;  %vm5337_vm7 = vcmp.le.s32.totalorder %v577_v26, 16  ;;  %vm5343_vm8 = vcmp.ge.s32.totalorder %v591_v27, 1  ;;  %v619_v26 = vand.u32 31, %v5265_v28 }
  0x14   : > { %s5256_s9 = scalar_lea.vmem %s6200_s0, %s5238_s20  ;;  %s5323_s14 = sadd.s32 8, %s4006_s10 }
  0x15   : > { %v4247_v29 = vld [vmem:[%s5256_s9] sm:$0xff]   ;;  %v985_v30 = vld [vmem:[%s5256_s9 + $0x8] ss:$16 sps:$4 sm:$0xff]   ;;  %v4286_v32 = vld [vmem:[%s5256_s9 + $0x10] sm:$0xff]   ;;  %s6452_s13 = smov (!%p415_p7, %s5295_s13), 0  ;;  %p433_p8 = scmp.lt.s32.totalorder %s5323_s14, 15 }
  0x16   : > { %v4248_v34 = vunpack.c.l.bf16 %v4247_v29  ;;  %v4249_v35 = vunpack.c.h.bf16 %v4247_v29  ;;  %v1017_v36 = vunpack.c.l.bf16 %v985_v30  ;;  %v4252_v37 = vunpack.c.l.bf16 %v4286_v32  ;;  %v4287_v38 = vld [vmem:[%s5256_s9 + $0x20] sm:$0xff]   ;;  %v993_v0 = vld [vmem:[%s5256_s9 + $0x28] ss:$16 sps:$4 sm:$0xff]   ;;  %v4288_v7 = vld [vmem:[%s5256_s9 + $0x30] sm:$0xff]   ;;  %s4008_s15 = sshll.u32 %s6452_s13, 2  ;;  %p1251_p11 = scmp.gt.s32.totalorder %s5077_s24, 0 }
  0x17   : > { %v4253_v40 = vunpack.c.h.bf16 %v4286_v32  ;;  %v1021_v41 = vunpack.c.h.bf16 %v985_v30  ;;  %v4256_v43 = vunpack.c.l.bf16 %v4287_v38  ;;  %v4257_v50 = vunpack.c.h.bf16 %v4287_v38  ;;  %v4289_v12 = vld [vmem:[%s5256_s9 + $0x40] sm:$0xff]   ;;  %s6454_s14 = smov (!%p433_p8, %s5323_s14), 15  ;;  %p5411_p9 = scmp.lt.s32.totalorder %s4008_s15, 63 }
  0x18   : > { %v1053_v44 = vmul.f32 %v4248_v34, %v5243_v19  ;;  %v1054_v45 = vmul.f32 %v4249_v35, %v5243_v19  ;;  %v1055_v46 = vmul.f32 %v5243_v19, %v1017_v36  ;;  %v1057_v47 = vmul.f32 %v4252_v37, %v5243_v19  ;;  %v5362_v37 = vld [vmem:[%s5256_s9 + $0x48] ss:$16 sps:$4 sm:$0xff]   ;;  %s4012_s23 = sshll.u32 %s6454_s14, 2  ;;  %p461_p12 = scmp.lt.s32.totalorder %s5077_s24, 1 }
  0x19   : > { %v1058_v48 = vmul.f32 %v4253_v40, %v5243_v19  ;;  %v1059_v49 = vmul.f32 %v5243_v19, %v1021_v41  ;;  %v1061_v51 = vmul.f32 %v4256_v43, %v5243_v19  ;;  %v1062_v58 = vmul.f32 %v4257_v50, %v5243_v19  ;;  %s6456_s15 = smov (!%p5411_p9, %s4008_s15), 63  ;;  %p5474_p10 = scmp.lt.s32.totalorder %s4012_s23, 63 }
  0x1a   : > { %v1091_v52 = vadd.f32 %v5283_v39, %v1053_v44  ;;  %v1092_v53 = vadd.f32 %v5283_v39, %v1054_v45  ;;  %v1093_v54 = vadd.f32 %v5283_v39, %v1055_v46  ;;  %v1095_v55 = vadd.f32 %v5283_v39, %v1057_v47  ;;  %s423_s10 = sadd.s32 %s5220_s18, %s6456_s15  ;;  %s6460_s24 = smov (!%p461_p12, %s5077_s24), 1 }
  0x1b   : > { %v1096_v56 = vadd.f32 %v5283_v39, %v1058_v48  ;;  %v1097_v57 = vadd.f32 %v5283_v39, %v1059_v49  ;;  %v1099_v59 = vadd.f32 %v5283_v39, %v1061_v51  ;;  %v1100_v3 = vadd.f32 %v5283_v39, %v1062_v58  ;;  %v2031_v48 = vld [vmem:[#allocation2 + $0x40] sm:$0xff]  ;;  %s6458_s23 = smov (!%p5474_p10, %s4012_s23), 63 }
  0x1c   : > { %v1123_v60 = vmax.f32 %v1091_v52, 0.0  ;;  %v1124_v61 = vmax.f32 %v1092_v53, 0.0  ;;  %v1125_v62 = vmax.f32 %v1093_v54, 0.0  ;;  %v1127_v63 = vmax.f32 %v1095_v55, 0.0  ;;  %s441_s11 = sadd.s32 %s5220_s18, %s6458_s23 }
  0x1d   : > { %v1128_v1 = vmax.f32 %v1096_v56, 0.0  ;;  %v1129_v2 = vmax.f32 %v1097_v57, 0.0  ;;  %v1131_v6 = vmax.f32 %v1099_v59, 0.0  ;;  %v1132_v15 = vmax.f32 %v1100_v3, 0.0  ;;  %s5548_s12 = scalar_select %p1251_p11, 1, 0 }
  0x1e   : > { %v1219_v8 = vsel %vm5245_vm2, %v1123_v60, 0.0  ;;  %1338 = vst.msk [vmem:[#allocation2 + $0x30] sm:$0xff] %vm6213_vm1, %v1124_v61  ;;  %v1221_v9 = vsel %vm5258_vm3, %v1125_v62, 0.0  ;;  %v1223_v10 = vsel %vm5270_vm4, %v1127_v63, 0.0  ;;  %v1025_v22 = vunpack.c.l.bf16 %v993_v0  ;;  %s4014_s15 = sshll.u32 %s441_s11, 2 }
  0x1f   : > { %1337 = vst.msk [vmem:[#allocation2 + $0x28] sm:$0xff] %vm6213_vm1, %v1219_v8  ;;  %1339 = vst.msk [vmem:[#allocation2 + $0x38] sm:$0xff] %vm6213_vm1, %v1221_v9  ;;  %v1225_v13 = vsel %vm5275_vm5, %v1129_v2, 0.0  ;;  %v1227_v21 = vsel %vm5285_vm6, %v1131_v6, 0.0  ;;  %v4260_v29 = vunpack.c.l.bf16 %v4288_v7  ;;  %v4261_v30 = vunpack.c.h.bf16 %v4288_v7  ;;  %v4290_v6 = vld [vmem:[%s5256_s9 + $0x50] sm:$0xff]   ;;  %s443_s19 = scalar_lea.vmem %s6202_s2, %s4014_s15  ;;  %s6017_s15 = scalar_lea.vmem %s6206_s6, %s5238_s20 }
  0x20   : > { %1341 = vst.msk [vmem:[#allocation2 + $0x48] sm:$0xff] %vm6213_vm1, %v1223_v10  ;;  %1342 = vst.msk [vmem:[#allocation2 + $0x50] sm:$0xff] %vm6213_vm1, %v1128_v1  ;;  %v1063_v14 = vmul.f32 %v5243_v19, %v1025_v22  ;;  %v1029_v32 = vunpack.c.h.bf16 %v993_v0  ;;  %v4264_v34 = vunpack.c.l.bf16 %v4289_v12  ;;  %v4265_v35 = vunpack.c.h.bf16 %v4289_v12  ;;  %v2035_v1 = vld [vmem:[#allocation2 + $0x60] sm:$0xff]  ;;  %s5597_s21 = scalar_select %p461_p12, 1, 0 }
  0x21   : > { %1343 = vst.msk [vmem:[#allocation2 + $0x58] sm:$0xff] %vm6213_vm1, %v1225_v13  ;;  %1345 = vst.msk [vmem:[#allocation2 + $0x68] sm:$0xff] %vm6213_vm1, %v1227_v21  ;;  %v1065_v18 = vmul.f32 %v4260_v29, %v5243_v19  ;;  %v1066_v27 = vmul.f32 %v4261_v30, %v5243_v19  ;;  %v5359_v36 = vadd.s32 144, %v5190_v5  ;;  %vm5365_vm9 = vcmp.le.s32.totalorder %v605_v11, 16  ;;  %s4018_s20 = sshll.u32 %s6448_s25, 1 }
  0x22   : > { %1346 = vst.msk [vmem:[#allocation2 + $0x70] sm:$0xff] %vm6213_vm1, %v1132_v15  ;;  %v1101_v38 = vadd.f32 %v5283_v39, %v1063_v14  ;;  %v1067_v28 = vmul.f32 %v5243_v19, %v1029_v32  ;;  %v1069_v41 = vmul.f32 %v4264_v34, %v5243_v19  ;;  %vm5373_vm10 = vcmp.ge.s32.totalorder %v619_v26, 1  ;;  %v5407_v15 = vld [vmem:[%s6205_s5 + $0x4] sm:$0x3]  ;;  %s464_s16 = sadd.s32 %s4018_s20, %s6460_s24 }
  0x23   : > { %v1103_v43 = vadd.f32 %v5283_v39, %v1065_v18  ;;  %v1104_v44 = vadd.f32 %v5283_v39, %v1066_v27  ;;  %v6235_v45 = vmov 0  ;;  %v1070_v46 = vmul.f32 %v4265_v35, %v5243_v19  ;;  %v5437_v35 = vld [vmem:[%s6205_s5 + $0xc] sm:$0x3]  ;;  %s4019_s17 = sshll.u32 %s464_s16, 1 }
  0x24   : > { %v6236_v45 = vsel %vm5373_vm10, 4294967295, %v6235_v45  ;;  %v1133_v49 = vmax.f32 %v1101_v38, 0.0  ;;  %v1105_v50 = vadd.f32 %v5283_v39, %v1067_v28  ;;  %v1107_v51 = vadd.f32 %v5283_v39, %v1069_v41  ;;  %s466_s22 = scalar_lea.vmem %s6207_s7, %s4019_s17 }
  0x25   : > { %v2029_v47 = vld [vmem:[#allocation2 + $0x30] sm:$0xff]  ;;  %v1033_v52 = vunpack.c.l.bf16 %v5362_v37  ;;  %v1135_v56 = vmax.f32 %v1103_v43, 0.0  ;;  %v1136_v57 = vmax.f32 %v1104_v44, 0.0  ;;  %v1108_v58 = vadd.f32 %v5283_v39, %v1070_v46 }
  0x26   : > { %v1378_v53 = vld [vmem:[#allocation2 + $0x27] sm:$0xff]  ;;  %v1379_v54 = vld [vmem:[#allocation2 + $0x2f] sm:$0xff]  ;;  %v633_v59 = vand.u32 31, %v5359_v36  ;;  %v1380_v62 = vld [vmem:[#allocation2 + $0x37] sm:$0xff]  ;;  %v1229_v2 = vsel %vm5337_vm7, %v1133_v49, 0.0  ;;  %v1137_v3 = vmax.f32 %v1105_v50, 0.0 }
  0x27   : > { %v2028_v55 = vld [vmem:[#allocation2 + $0x28] sm:$0xff]  ;;  %v5389_v60 = vpack.c.bf16 %v1379_v54, %v1378_v53  ;;  %v1381_v63 = vld [vmem:[#allocation2 + $0x3f] sm:$0xff]  ;;  %1347 = vst.msk [vmem:[#allocation2 + $0x78] sm:$0xff] %vm6213_vm1, %v1229_v2  ;;  %v1231_v12 = vsel %vm5343_vm8, %v1135_v56, 0.0  ;;  %1350 = vst.msk [vmem:[#allocation2 + $0x90] sm:$0xff] %vm6213_vm1, %v1136_v57  ;;  %v1139_v13 = vmax.f32 %v1107_v51, 0.0  ;;  %v1071_v26 = vmul.f32 %v5243_v19, %v1033_v52 }
  0x28   : > { %v5391_v61 = vpack.c.bf16 %v2029_v47, %v2028_v55  ;;  %v2030_v0 = vld [vmem:[#allocation2 + $0x38] sm:$0xff]  ;;  %v5396_v7 = vpack.c.bf16 %v1381_v63, %v1380_v62  ;;  %v1382_v9 = vld [vmem:[#allocation2 + $0x47] sm:$0xff]  ;;  %v1383_v10 = vld [vmem:[#allocation2 + $0x4f] sm:$0xff]  ;;  %1349 = vst.msk [vmem:[#allocation2 + $0x88] sm:$0xff] %vm6213_vm1, %v1231_v12  ;;  %v1233_v14 = vsel %vm5365_vm9, %v1137_v3, 0.0  ;;  %v1140_v32 = vmax.f32 %v1108_v58, 0.0 }
  0x29   : > { %v5398_v8 = vpack.c.bf16 %v2031_v48, %v2030_v0  ;;  %v2032_v11 = vld [vmem:[#allocation2 + $0x48] sm:$0xff]  ;;  %4448 = vmatprep.mubr.msk.bf16.mxu1 %vm6213_vm1, %v5389_v60  ;;  %v5419_v21 = vpack.c.bf16 %v1383_v10, %v1382_v9  ;;  %v2033_v22 = vld [vmem:[#allocation2 + $0x50] sm:$0xff]  ;;  %v1385_v30 = vld [vmem:[#allocation2 + $0x5f] sm:$0xff]  ;;  %1351 = vst.msk [vmem:[#allocation2 + $0x98] sm:$0xff] %vm6213_vm1, %v1233_v14  ;;  %v1235_v27 = vsel %vm5373_vm10, %v1139_v13, 0.0  ;;  %vm5446_vm11 = vcmp.le.s32.totalorder %v633_v59, 16 }
  0x2a   : > { %4584 = vmatprep.mubr.msk.bf16.mxu0 %vm6213_vm1, %v5391_v61  ;;  %v1384_v29 = vld [vmem:[#allocation2 + $0x57] sm:$0xff]  ;;  %4449 = vmatmul.mubr.msk.bf16.vlgmr.msra.gmra.mrb[0].mxu1 %vm6213_vm1, %v5396_v7  ;;  %v5429_v34 = vpack.c.bf16 %v2033_v22, %v2032_v11  ;;  %v1386_v38 = vld [vmem:[#allocation2 + $0x67] sm:$0xff]  ;;  %v1387_v28 = vld [vmem:[#allocation2 + $0x6f] sm:$0xff]  ;;  %1353 = vst.msk [vmem:[#allocation2 + $0xa8] sm:$0xff] %vm6213_vm1, %v1235_v27  ;;  %v6238_v41 = vmov 0  ;;  %v1109_v43 = vadd.f32 %v5283_v39, %v1071_v26  ;;  %v4268_v47 = vunpack.c.l.bf16 %v4290_v6 }
  0x2b   : > { %4585 = vmatmul.mubr.msk.bf16.vlgmr.msra.gmra.mrb[0].mxu0 %vm6213_vm1, %v5398_v8  ;;  %v2034_v18 = vld [vmem:[#allocation2 + $0x58] sm:$0xff]  ;;  %4481 = vmatpush3.bf16.msra.mxu1 %v5230_v16  ;;  %v5442_v36 = vpack.c.bf16 %v1385_v30, %v1384_v29  ;;  %1354 = vst.msk [vmem:[#allocation2 + $0xb0] sm:$0xff] %vm6213_vm1, %v1140_v32  ;;  %v6239_v41 = vsel %vm5446_vm11, 4294967295, %v6238_v41  ;;  %v491_v16 = vadd.s32 160, %v5190_v5  ;;  %v2036_v44 = vld [vmem:[#allocation2 + $0x68] sm:$0xff]  ;;  %v2037_v46 = vld [vmem:[#allocation2 + $0x70] sm:$0xff]  ;;  %v4269_v48 = vunpack.c.h.bf16 %v4290_v6 }
  0x2c   : > { %4617 = vmatpush3.bf16.msra.mxu0 %v5233_v17  ;;  %4452 = vmatprep.mubr.msk.bf16.mxu1 %vm6213_vm1, %v5419_v21  ;;  %v5456_v17 = vpack.c.bf16 %v2035_v1, %v2034_v18  ;;  %v493_v49 = vadd.s32 176, %v5190_v5  ;;  %v1141_v50 = vmax.f32 %v1109_v43, 0.0  ;;  %v1037_v52 = vunpack.c.h.bf16 %v5362_v37  ;;  %v4291_v54 = vld [vmem:[%s5256_s9 + $0x60] sm:$0xff]   ;;  %v5500_v30 = vld [vmem:[%s5256_s9 + $0x68] ss:$16 sps:$4 sm:$0xff]   ;;  %v4292_v27 = vld [vmem:[%s5256_s9 + $0x70] sm:$0xff]  }
  0x2d   : > { %4588 = vmatprep.mubr.msk.bf16.mxu0 %vm6213_vm1, %v5429_v34  ;;  %5009 = vmatprep.subr.msk.bf16.mxu0 %vm6208_vm0, %v5407_v15  ;;  %v647_v51 = vand.u32 31, %v491_v16  ;;  %v495_v53 = vadd.s32 192, %v5190_v5  ;;  %v5478_v55 = vpack.c.bf16 %v1387_v28, %v1386_v38  ;;  %v2039_v56 = vld [vmem:[#allocation2 + $0x80] sm:$0xff]  ;;  %v1073_v57 = vmul.f32 %v4268_v47, %v5243_v19  ;;  %s4010_s9 = sshll.u32 %s423_s10, 2 }
  0x2e   : > { %5004 = vmatprep.subr.msk.bf16.mxu1 %vm6208_vm0, %v5437_v35  ;;  %v1074_v37 = vmul.f32 %v4269_v48, %v5243_v19  ;;  %v661_v58 = vand.u32 31, %v493_v49  ;;  %v5482_v59 = vpack.c.bf16 %v2037_v46, %v2036_v44  ;;  %v1388_v62 = vld [vmem:[#allocation2 + $0x77] sm:$0xff]  ;;  %v1389_v63 = vld [vmem:[#allocation2 + $0x7f] sm:$0xff]  ;;  %v1237_v1 = vsel %vm5446_vm11, %v1141_v50, 0.0  ;;  %s5557_s14 = scalar_lea.vmem %s6201_s1, %s4010_s9 }
  0x2f   : > { %v2038_v0 = vld [vmem:[#allocation2 + $0x78] sm:$0xff]  ;;  %v1075_v2 = vmul.f32 %v5243_v19, %v1037_v52  ;;  %v675_v3 = vand.u32 31, %v495_v53  ;;  %v1390_v6 = vld [vmem:[#allocation2 + $0x87] sm:$0xff]  ;;  %v1391_v9 = vld [vmem:[#allocation2 + $0x8f] sm:$0xff]  ;;  %1355 = vst.msk [vmem:[#allocation2 + $0xb8] sm:$0xff] %vm6213_vm1, %v1237_v1  ;;  %v1111_v10 = vadd.f32 %v5283_v39, %v1073_v57  ;;  %v4272_v12 = vunpack.c.l.bf16 %v4291_v54 }
  0x30   : > { %v1112_v11 = vadd.f32 %v5283_v39, %v1074_v37  ;;  %v5492_v13 = vpack.c.bf16 %v1389_v63, %v1388_v62  ;;  %vm5494_vm12 = vcmp.ge.s32.totalorder %v647_v51, 1  ;;  %v6241_v22 = vmov 0  ;;  %v2040_v44 = vld [vmem:[#allocation2 + $0x88] sm:$0xff]  ;;  %v2041_v46 = vld [vmem:[#allocation2 + $0x90] sm:$0xff] }
  0x31   : > { %v6242_v22 = vsel %vm5494_vm12, 4294967295, %v6241_v22  ;;  %v1113_v29 = vadd.f32 %v5283_v39, %v1075_v2  ;;  %v5512_v14 = vpack.c.bf16 %v2039_v56, %v2038_v0  ;;  %v1143_v32 = vmax.f32 %v1111_v10, 0.0 }
  0x32   : > { %4453 = vmatmul.mubr.msk.bf16.gmra.mrb[4].mxu1 %vm6213_vm1, %v5442_v36  ;;  %v1144_v26 = vmax.f32 %v1112_v11, 0.0  ;;  %vm5514_vm13 = vcmp.le.s32.totalorder %v661_v58, 16  ;;  %v6243_v18 = vmov 0  ;;  %v5524_v38 = vpack.c.bf16 %v1391_v9, %v1390_v6  ;;  %v2043_v9 = vld [vmem:[#allocation2 + $0xa0] sm:$0xff] }
  0x33   : > { %4589 = vmatmul.mubr.msk.bf16.gmra.mrb[4].mxu0 %vm6213_vm1, %v5456_v17  ;;  %v6244_v18 = vsel %vm5514_vm13, 4294967295, %v6243_v18  ;;  %4456 = vmatprep.mubr.msk.bf16.mxu1 %vm6213_vm1, %v5478_v55  ;;  %v1145_v28 = vmax.f32 %v1113_v29, 0.0  ;;  %vm5526_vm14 = vcmp.ge.s32.totalorder %v675_v3, 1  ;;  %v6245_v43 = vmov 0 }
  0x34   : > { %4592 = vmatprep.mubr.msk.bf16.mxu0 %vm6213_vm1, %v5482_v59  ;;  %v6246_v43 = vsel %vm5526_vm14, 4294967295, %v6245_v43  ;;  %v4273_v16 = vunpack.c.h.bf16 %v4291_v54  ;;  %v1239_v47 = vsel %vm5494_vm12, %v1143_v32, 0.0  ;;  %1358 = vst.msk [vmem:[#allocation2 + $0xd0] sm:$0xff] %vm6213_vm1, %v1144_v26  ;;  %v1077_v48 = vmul.f32 %v4272_v12, %v5243_v19  ;;  %v1392_v32 = vld [vmem:[#allocation2 + $0x97] sm:$0xff]  ;;  %v1393_v26 = vld [vmem:[#allocation2 + $0x9f] sm:$0xff] }
  0x35   : > { %v497_v49 = vadd.s32 208, %v5190_v5  ;;  %v1041_v50 = vunpack.c.l.bf16 %v5500_v30  ;;  %1357 = vst.msk [vmem:[#allocation2 + $0xc8] sm:$0xff] %vm6213_vm1, %v1239_v47  ;;  %v1241_v51 = vsel %vm5514_vm13, %v1145_v28, 0.0  ;;  %v499_v53 = vadd.s32 224, %v5190_v5  ;;  %v2042_v47 = vld [vmem:[#allocation2 + $0x98] sm:$0xff] }
  0x36   : > { %v1078_v52 = vmul.f32 %v4273_v16, %v5243_v19  ;;  %v4276_v54 = vunpack.c.l.bf16 %v4292_v27  ;;  %1359 = vst.msk [vmem:[#allocation2 + $0xd8] sm:$0xff] %vm6213_vm1, %v1241_v51  ;;  %v1115_v56 = vadd.f32 %v5283_v39, %v1077_v48  ;;  %v4277_v58 = vunpack.c.h.bf16 %v4292_v27  ;;  %v1394_v48 = vld [vmem:[#allocation2 + $0xa7] sm:$0xff] }
  0x37   : > { %v689_v57 = vand.u32 31, %v497_v49  ;;  %v1079_v37 = vmul.f32 %v5243_v19, %v1041_v50  ;;  %v5550_v62 = vpack.c.bf16 %v2041_v46, %v2040_v44  ;;  %v703_v0 = vand.u32 31, %v499_v53  ;;  %v4279_v46 = vld [vmem:[%s5557_s14] sm:$0xff]   ;;  %v1395_v49 = vld [vmem:[#allocation2 + $0xaf] sm:$0xff] }
  0x38   : > { %v1116_v63 = vadd.f32 %v5283_v39, %v1078_v52  ;;  %v1081_v1 = vmul.f32 %v4276_v54, %v5243_v19  ;;  %v1147_v2 = vmax.f32 %v1115_v56, 0.0  ;;  %v6247_v3 = vmov 0  ;;  %v1261_v54 = vld [vmem:[%s5557_s14 + $0x8] sm:$0xf] }
  0x39   : > { %vm5559_vm15 = vcmp.le.s32.totalorder %v689_v57, 16  ;;  %v1117_v6 = vadd.f32 %v5283_v39, %v1079_v37  ;;  %vm5565_vm0 = vcmp.ge.s32.totalorder %v703_v0, 1  ;;  %v6249_v11 = vmov 0 }
  0x3a   : > { %v6248_v3 = vsel %vm5559_vm15, 4294967295, %v6247_v3  ;;  %v1148_v10 = vmax.f32 %v1116_v63, 0.0  ;;  %v6250_v11 = vsel %vm5565_vm0, 4294967295, %v6249_v11  ;;  %v1082_v12 = vmul.f32 %v4277_v58, %v5243_v19  ;;  %4457 = vmatmul.mubr.msk.bf16.gmra.mrb[8].mxu1 %vm6213_vm1, %v5492_v13 }
  0x3b   : > { %v1119_v29 = vadd.f32 %v5283_v39, %v1081_v1  ;;  %4593 = vmatmul.mubr.msk.bf16.gmra.mrb[8].mxu0 %vm6213_vm1, %v5512_v14  ;;  %v1243_v27 = vsel %vm5526_vm14, %v1147_v2, 0.0  ;;  %v1149_v28 = vmax.f32 %v1117_v6, 0.0  ;;  %v501_v16 = vadd.s32 240, %v5190_v5  ;;  %4460 = vmatprep.mubr.msk.bf16.mxu1 %vm6213_vm1, %v5524_v38  ;;  %v4283_v6 = vld [vmem:[%s443_s19] sm:$0xff]  }
  0x3c   : > { %v1045_v44 = vunpack.c.h.bf16 %v5500_v30  ;;  %4596 = vmatprep.mubr.msk.bf16.mxu0 %vm6213_vm1, %v5550_v62  ;;  %1361 = vst.msk [vmem:[#allocation2 + $0xe8] sm:$0xff] %vm6213_vm1, %v1243_v27  ;;  %1362 = vst.msk [vmem:[#allocation2 + $0xf0] sm:$0xff] %vm6213_vm1, %v1148_v10  ;;  %v1120_v5 = vadd.f32 %v5283_v39, %v1082_v12  ;;  %v1253_v53 = vstv %s5548_s12  ;;  %v5599_v56 = vpack.c.bf16 %v1393_v26, %v1392_v32  ;;  %v1301_v32 = vld [vmem:[%s443_s19 + $0x8] sm:$0xf] }
  0x3d   : > { %v1151_v50 = vmax.f32 %v1119_v29, 0.0  ;;  %v1245_v30 = vsel %vm5559_vm15, %v1149_v28, 0.0  ;;  %v717_v51 = vand.u32 31, %v501_v16  ;;  %v4280_v58 = vunpack.c.l.bf16 %v4279_v46 }
  0x3e   : > { %v1083_v52 = vmul.f32 %v5243_v19, %v1045_v44  ;;  %1363 = vst.msk [vmem:[#allocation2 + $0xf8] sm:$0xff] %vm6213_vm1, %v1245_v30  ;;  %v1152_v57 = vmax.f32 %v1120_v5, 0.0  ;;  %v5604_v63 = vpack.c.bf16 %v2043_v9, %v2042_v47  ;;  %v5606_v0 = vpack.c.bf16 %v1395_v49, %v1394_v48  ;;  %v1396_v47 = vld [vmem:[#allocation2 + $0xb7] sm:$0xff]  ;;  %v1397_v48 = vld [vmem:[#allocation2 + $0xbf] sm:$0xff] }
  0x3f   : > { %v1247_v37 = vsel %vm5565_vm0, %v1151_v50, 0.0  ;;  %v4281_v2 = vunpack.c.h.bf16 %v4279_v46  ;;  %vm5611_vm14 = vcmp.le.s32.totalorder %v717_v51, 16  ;;  %v6251_v10 = vmov 0 }
  0x40   : > { %1365 = vst.msk [vmem:[#allocation2 + $0x108] sm:$0xff] %vm6213_vm1, %v1247_v37  ;;  %v1121_v1 = vadd.f32 %v5283_v39, %v1083_v52  ;;  %1366 = vst.msk [vmem:[#allocation2 + $0x110] sm:$0xff] %vm6213_vm1, %v1152_v57  ;;  %v6252_v10 = vsel %vm5611_vm14, 4294967295, %v6251_v10  ;;  %vm5615_vm15 = vcmp.eq.s32.totalorder %v1253_v53, 1  ;;  %v1265_v9 = vunpack.c.l.bf16 %v1261_v54  ;;  %v1398_v57 = vld [vmem:[#allocation2 + $0xc7] sm:$0xff]  ;;  %v1399_v37 = vld [vmem:[#allocation2 + $0xcf] sm:$0xff] }
  0x41   : > { %v1267_v29 = vmul.f32 %v4280_v58, %v5243_v19  ;;  %v1268_v27 = vmul.f32 %v4281_v2, %v5243_v19  ;;  %v1293_v28 = vstv %s5597_s21  ;;  %v4284_v46 = vunpack.c.l.bf16 %v4283_v6  ;;  %vm1257_vm0 = vmand %vm5258_vm3, %vm5615_vm15 }
  0x42   : > { %v1153_v26 = vmax.f32 %v1121_v1, 0.0  ;;  %v1269_v16 = vmul.f32 %v5243_v19, %v1265_v9  ;;  %4461 = vmatmul.mubr.msk.bf16.gmra.mrb[12].mxu1 %vm6213_vm1, %v5599_v56  ;;  %v4285_v50 = vunpack.c.h.bf16 %v4283_v6  ;;  %v1305_v30 = vunpack.c.l.bf16 %v1301_v32 }
  0x43   : > { %v1271_v44 = vadd.f32 %v5283_v39, %v1267_v29  ;;  %4597 = vmatmul.mubr.msk.bf16.gmra.mrb[12].mxu0 %vm6213_vm1, %v5604_v63  ;;  %v1272_v5 = vadd.f32 %v5283_v39, %v1268_v27  ;;  %4464 = vmatprep.mubr.msk.bf16.mxu1 %vm6213_vm1, %v5606_v0  ;;  %v1307_v54 = vmul.f32 %v4284_v46, %v5243_v19  ;;  %vm6258_vm12 = vcmask 31744  }
  0x44   : > { %v1249_v49 = vsel %vm5611_vm14, %v1153_v26, 0.0  ;;  %4618 = vmatprep.mubr.msk.bf16.mxu0 %vm6213_vm1, %v5429_v34  ;;  %v1273_v51 = vadd.f32 %v5283_v39, %v1269_v16  ;;  %vm5641_vm14 = vcmp.eq.s32.totalorder %v1293_v28, 1  ;;  %v1308_v1 = vmul.f32 %v4285_v50, %v5243_v19  ;;  %v1401_v50 = vld [vmem:[#allocation2 + $0xdf] sm:$0xff] }
  0x45   : > { %1367 = vst.msk [vmem:[#allocation2 + $0x118] sm:$0xff] %vm6213_vm1, %v1249_v49  ;;  %v1275_v52 = vmax.f32 %v1271_v44, 0.0  ;;  %v1276_v58 = vmax.f32 %v1272_v5, 0.0  ;;  %v1309_v2 = vmul.f32 %v5243_v19, %v1305_v30  ;;  %v5652_v6 = vpack.c.bf16 %v1397_v48, %v1396_v47  ;;  %vm6257_vm1 = vmand %vm5245_vm2, %vm5615_vm15  ;;  %v1400_v5 = vld [vmem:[#allocation2 + $0xd7] sm:$0xff]  ;;  %v1402_v30 = vld [vmem:[#allocation2 + $0xe7] sm:$0xff] }
  0x46   : > { %v1277_v9 = vmax.f32 %v1273_v51, 0.0  ;;  %v1311_v19 = vadd.f32 %v5283_v39, %v1307_v54  ;;  %v1312_v26 = vadd.f32 %v5283_v39, %v1308_v1  ;;  %v5669_v28 = vpack.c.bf16 %v1399_v37, %v1398_v57  ;;  %v1403_v51 = vld [vmem:[#allocation2 + $0xef] sm:$0xff]  ;;  %v1404_v54 = vld [vmem:[#allocation2 + $0xf7] sm:$0xff]  ;;  %v1405_v57 = vld [vmem:[#allocation2 + $0xff] sm:$0xff] }
  0x47   : > { %v1287_v29 = vsel %vm6257_vm1, %v1275_v52, 0.0  ;;  %v1288_v32 = vsel %vm5615_vm15, %v1276_v58, 0.0  ;;  %v1313_v27 = vadd.f32 %v5283_v39, %v1309_v2  ;;  %vm6259_vm1 = vmmov %vm6258_vm12  ;;  %vm6260_vm15 = vcmask 1041408   ;;  %v5682_v39 = vld [vmem:[%s6205_s5 + $0xa] sm:$0x3]  ;;  %v1407_v1 = vld [vmem:[#allocation2 + $0x10f] sm:$0xff] }
  0x48   : > { %1333 = vst.msk [vmem:[#allocation2 + $0x8] sm:$0xff] %vm6258_vm12, %v1287_v29  ;;  %v1289_v16 = vsel %vm1257_vm0, %v1277_v9, 0.0  ;;  %vm1297_vm12 = vmand %vm5258_vm3, %vm5641_vm14  ;;  %v2849_v12 = vsel %vm6260_vm15, %v5407_v15, 0  ;;  %v1315_v44 = vmax.f32 %v1311_v19, 0.0  ;;  %v1316_v46 = vmax.f32 %v1312_v26, 0.0  ;;  %v2044_v37 = vld [vmem:[#allocation2 + $0xa8] sm:$0xff] }
  0x49   : > { %1334 = vst.msk [vmem:[#allocation2 + $0x10] sm:$0xff] %vm6259_vm1, %v1288_v32  ;;  %vm6261_vm13 = vmmov %vm6259_vm1  ;;  %v1317_v47 = vmax.f32 %v1313_v27, 0.0  ;;  %v5704_v52 = vpack.c.bf16 %v1401_v50, %v1400_v5  ;;  %v5706_v53 = vpack.c.bf16 %v1403_v51, %v1402_v30  ;;  %v1406_v58 = vld [vmem:[#allocation2 + $0x107] sm:$0xff]  ;;  %v2045_v2 = vld [vmem:[#allocation2 + $0xb0] sm:$0xff]  ;;  %v5716_v9 = vpack.c.bf16 %v1405_v57, %v1404_v54 }
  0x4a   : > { %1335 = vst.msk [vmem:[#allocation2 + $0x18] sm:$0xff] %vm6261_vm13, %v1289_v16  ;;  %vm6262_vm0 = vmmov %vm6259_vm1  ;;  %v1328_v48 = vsel %vm5641_vm14, %v1316_v46, 0.0  ;;  %v5718_v29 = vpack.c.bf16 %v1407_v1, %v1406_v58  ;;  %v5720_v32 = vpack.c.bf16 %v2045_v2, %v2044_v37  ;;  %v2046_v19 = vld [vmem:[#allocation2 + $0xb8] sm:$0xff]  ;;  %v2047_v26 = vld [vmem:[#allocation2 + $0xc0] sm:$0xff] }
  0x4b   : > { %4465 = vmatmul.mubr.msk.bf16.gmra.mrb[16].mxu1 %vm6262_vm0, %v5652_v6  ;;  %vm6263_vm1 = vmmov %vm6262_vm0  ;;  %v1329_v49 = vsel %vm1297_vm12, %v1317_v47, 0.0  ;;  %v2048_v47 = vld [vmem:[#allocation2 + $0xc8] sm:$0xff]  ;;  %v2051_v50 = vld [vmem:[#allocation2 + $0xe0] sm:$0xff] }
  0x4c   : > { %4619 = vmatmul.mubr.msk.bf16.vlgmr.msra.gmra.mrb[0].mxu0 %vm6263_vm1, %v5456_v17  ;;  %vm6264_vm15 = vmand %vm5245_vm2, %vm5641_vm14  ;;  %vm6269_vm14 = vcmask 1041408   ;;  %v1408_v27 = vld [vmem:[#allocation2 + $0x117] sm:$0xff]  ;;  %v1409_v16 = vld [vmem:[#allocation2 + $0x11f] sm:$0xff] }
  0x4d   : > { %v1327_v15 = vsel %vm6264_vm15, %v1315_v44, 0.0  ;;  %4651 = vmatpush3.bf16.msra.mxu0 %v2849_v12  ;;  %vm6265_vm13 = vmmov %vm6262_vm0  ;;  %v2049_v12 = vld [vmem:[#allocation2 + $0xd0] sm:$0xff]  ;;  %v2050_v54 = vld [vmem:[#allocation2 + $0xd8] sm:$0xff] }
  0x4e   : > { %4468 = vmatprep.mubr.msk.bf16.mxu1 %vm6265_vm13, %v5669_v28  ;;  %1369 = vst.msk [vmem:[#allocation2 + $0x128] sm:$0xff] %vm6262_vm0, %v1327_v15  ;;  %vm6266_vm10 = vmmov %vm6262_vm0  ;;  %5010 = vmatprep.subr.msk.bf16.mxu0 %vm6269_vm14, %v5682_v39  ;;  %v5730_v15 = vpack.c.bf16 %v1409_v16, %v1408_v27  ;;  %v5734_v5 = vpack.c.bf16 %v2049_v12, %v2048_v47  ;;  %v2052_v57 = vld [vmem:[#allocation2 + $0xe8] sm:$0xff]  ;;  %v2053_v37 = vld [vmem:[#allocation2 + $0xf0] sm:$0xff] }
  0x4f   : > { %1370 = vst.msk [vmem:[#allocation2 + $0x130] sm:$0xff] %vm6266_vm10, %v1328_v48  ;;  %vm6267_vm1 = vmmov %vm6262_vm0  ;;  %v1374_v44 = vld [vmem:[#allocation2 + $0x7] sm:$0xff]  ;;  %v5732_v48 = vpack.c.bf16 %v2047_v26, %v2046_v19  ;;  %v5743_v1 = vpack.c.bf16 %v2051_v50, %v2050_v54  ;;  %v5747_v19 = vpack.c.bf16 %v2053_v37, %v2052_v57  ;;  %v5752_v26 = vld [vmem:[%s6205_s5 + $0x2] sm:$0x3] }
  0x50   : > { %1371 = vst.msk [vmem:[#allocation2 + $0x138] sm:$0xff] %vm6267_vm1, %v1329_v49  ;;  %vm6268_vm11 = vmmov %vm6262_vm0  ;;  %v1375_v46 = vld [vmem:[#allocation2 + $0xf] sm:$0xff]  ;;  %v2054_v27 = vld [vmem:[#allocation2 + $0xf8] sm:$0xff] }
  0x51   : > { %4622 = vmatprep.mubr.msk.bf16.mxu0 %vm6268_vm11, %v5482_v59  ;;  %vm6270_vm12 = vmmov %vm6262_vm0  ;;  %v1414_v49 = vpack.c.bf16 %v1375_v46, %v1374_v44  ;;  %v1376_v30 = vld [vmem:[#allocation2 + $0x17] sm:$0xff]  ;;  %v1377_v51 = vld [vmem:[#allocation2 + $0x1f] sm:$0xff] }
  0x52   : > { %vm6271_vm15 = vmmov %vm6262_vm0  ;;  %v1415_v58 = vpack.c.bf16 %v1377_v51, %v1376_v30  ;;  %v2055_v16 = vld [vmem:[#allocation2 + $0x100] sm:$0xff]  ;;  %v2057_v12 = vld [vmem:[#allocation2 + $0x110] sm:$0xff] }
  0x53   : > { %4469 = vmatmul.mubr.msk.bf16.gmra.mrb[20].mxu1 %vm6270_vm12, %v5704_v52  ;;  %vm6272_vm10 = vmmov %vm6262_vm0  ;;  %v5763_v44 = vpack.c.bf16 %v2055_v16, %v2054_v27  ;;  %v2059_v47 = vld [vmem:[#allocation2 + $0x120] sm:$0xff]  ;;  %v2738_v57 = vld [vmem:[#allocation2 + $0x9] sm:$0xff] }
  0x54   : > { %4623 = vmatmul.mubr.msk.bf16.gmra.mrb[4].mxu0 %vm6271_vm15, %v5512_v14  ;;  %4472 = vmatprep.mubr.msk.bf16.mxu1 %vm6272_vm10, %v5706_v53  ;;  %vm6273_vm11 = vmmov %vm6262_vm0  ;;  %v2063_v54 = vld [vmem:[#allocation2 + $0x140] sm:$0xff]  ;;  %v2739_v37 = vld [vmem:[#allocation2 + $0x11] sm:$0xff] }
  0x55   : > { %4626 = vmatprep.mubr.msk.bf16.mxu0 %vm6273_vm11, %v5550_v62  ;;  %vm6274_vm13 = vmmov %vm6262_vm0  ;;  %v2740_v27 = vld [vmem:[#allocation2 + $0x19] sm:$0xff]  ;;  %v2741_v16 = vld [vmem:[#allocation2 + $0x21] sm:$0xff] }
  0x56   : > { %vm6275_vm1 = vmmov %vm6262_vm0  ;;  %v2061_v50 = vld [vmem:[#allocation2 + $0x130] sm:$0xff] }
  0x57   : > { %vm6276_vm14 = vmmov %vm6262_vm0 }
  0x58   : > { %vm6277_vm12 = vmmov %vm6262_vm0 }
  0x59   : > { %vm6278_vm15 = vmmov %vm6262_vm0 }
  0x5a   : > { %vm6279_vm10 = vmmov %vm6262_vm0 }
  0x5b   : > { %4473 = vmatmul.mubr.msk.bf16.gmra.mrb[24].mxu1 %vm6274_vm13, %v5716_v9  ;;  %vm6280_vm11 = vmmov %vm6262_vm0  ;;  %vm6281_vm13 = vcmask 1041408  }
  0x5c   : > { %4627 = vmatmul.mubr.msk.bf16.gmra.mrb[8].mxu0 %vm6262_vm0, %v5604_v63  ;;  %4476 = vmatprep.mubr.msk.bf16.mxu1 %vm6275_vm1, %v5718_v29  ;;  %v1829_v2 = vsel %vm6281_vm13, %v5437_v35, 0  ;;  %vm6282_vm1 = vmmov %vm6262_vm0  ;;  %v2056_v35 = vld [vmem:[#allocation2 + $0x108] sm:$0xff] }
  0x5d   : > { %4630 = vmatprep.mubr.msk.bf16.mxu0 %vm6276_vm14, %v5720_v32  ;;  %vm6283_vm14 = vmmov %vm6262_vm0  ;;  %v5765_v46 = vpack.c.bf16 %v2057_v12, %v2056_v35  ;;  %v2742_v35 = vld [vmem:[#allocation2 + $0x29] sm:$0xff]  ;;  %v2743_v12 = vld [vmem:[#allocation2 + $0x31] sm:$0xff] }
  0x63   : > { %4477 = vmatmul.mubr.msk.bf16.gmra.mrb[28].mxu1 %vm6277_vm12, %v5730_v15  ;;  %vm6284_vm12 = vmmov %vm6262_vm0 }
  0x64   : > { %4631 = vmatmul.mubr.msk.bf16.gmra.mrb[12].mxu0 %vm6278_vm15, %v5732_v48  ;;  %4482 = vmatprep.mubr.msk.bf16.mxu1 %vm6279_vm10, %v1414_v49  ;;  %vm6285_vm15 = vmmov %vm6281_vm13  ;;  %v2060_v49 = vld [vmem:[#allocation2 + $0x128] sm:$0xff] }
  0x65   : > { %4634 = vmatprep.mubr.msk.bf16.mxu0 %vm6280_vm11, %v5734_v5  ;;  %vm6286_vm10 = vmmov %vm6262_vm0  ;;  %v2082_v51 = vpack.c.bf16 %v2061_v50, %v2060_v49  ;;  %v5792_v49 = vpack.c.bf16 %v2743_v12, %v2742_v35  ;;  %v5797_v50 = vld [vmem:[%s6205_s5 + $0x10] sm:$0x3] }
  0x66   : > { %vm6287_vm11 = vmmov %vm6262_vm0 }
  0x67   : > { %vm6288_vm13 = vmmov %vm6262_vm0 }
  0x6b   : > { %4483 = vmatmul.mubr.msk.bf16.vlgmr.msra.gmra.mrb[0].mxu1 %vm6262_vm0, %v1415_v58 }
  0x6c   : > { %4635 = vmatmul.mubr.msk.bf16.gmra.mrb[16].mxu0 %vm6282_vm1, %v5743_v1  ;;  %4515 = vmatpush3.bf16.msra.mxu1 %v1829_v2  ;;  %vm6289_vm1 = vmmov %vm6262_vm0  ;;  %v2778_v2 = vpack.c.bf16 %v2739_v37, %v2738_v57 }
  0x6d   : > { %4486 = vmatprep.mubr.msk.bf16.mxu1 %vm6283_vm14, %v5389_v60  ;;  %4638 = vmatprep.mubr.msk.bf16.mxu0 %vm6284_vm12, %v5747_v19  ;;  %v2058_v60 = vld [vmem:[#allocation2 + $0x118] sm:$0xff]  ;;  %vm6290_vm14 = vmmov %vm6262_vm0 }
  0x6e   : > { %5005 = vmatprep.subr.msk.bf16.mxu1 %vm6285_vm15, %v5752_v26  ;;  %v5775_v30 = vpack.c.bf16 %v2059_v47, %v2058_v60  ;;  %vm6291_vm12 = vmmov %vm6262_vm0  ;;  %v2779_v60 = vpack.c.bf16 %v2741_v16, %v2740_v27  ;;  %v2750_v27 = vld [vmem:[#allocation2 + $0x69] sm:$0xff]  ;;  %v2751_v16 = vld [vmem:[#allocation2 + $0x71] sm:$0xff] }
  0x6f   : > { %vm6292_vm15 = vmmov %vm6262_vm0  ;;  %v5822_v12 = vpack.c.bf16 %v2751_v16, %v2750_v27  ;;  %v2758_v27 = vld [vmem:[#allocation2 + $0xa9] sm:$0xff]  ;;  %v2759_v16 = vld [vmem:[#allocation2 + $0xb1] sm:$0xff] }
  0x73   : > { %4487 = vmatmul.mubr.msk.bf16.gmra.mrb[4].mxu1 %vm6286_vm10, %v5396_v7  ;;  %v2062_v7 = vld [vmem:[#allocation2 + $0x138] sm:$0xff]  ;;  %vm6293_vm10 = vmmov %vm6262_vm0 }
  0x74   : > { %4639 = vmatmul.mubr.msk.bf16.gmra.mrb[20].mxu0 %vm6287_vm11, %v5763_v44  ;;  %4490 = vmatprep.mubr.msk.bf16.mxu1 %vm6288_vm13, %v5419_v21  ;;  %v2083_v58 = vpack.c.bf16 %v2063_v54, %v2062_v7  ;;  %vm6294_vm11 = vmmov %vm6262_vm0  ;;  %v2745_v7 = vld [vmem:[#allocation2 + $0x41] sm:$0xff]  ;;  %v2747_v54 = vld [vmem:[#allocation2 + $0x51] sm:$0xff] }
  0x75   : > { %4642 = vmatprep.mubr.msk.bf16.mxu0 %vm6262_vm0, %v5765_v46  ;;  %vm6295_vm13 = vmmov %vm6262_vm0 }
  0x7b   : > { %4491 = vmatmul.mubr.msk.bf16.gmra.mrb[8].mxu1 %vm6289_vm1, %v5442_v36  ;;  %vm6296_vm1 = vcmask 1041408  }
  0x7c   : > { %4643 = vmatmul.mubr.msk.bf16.gmra.mrb[24].mxu0 %vm6290_vm14, %v5775_v30  ;;  %4494 = vmatprep.mubr.msk.bf16.mxu1 %vm6291_vm12, %v5478_v55  ;;  %v3053_v47 = vsel %vm6296_vm1, %v5682_v39, 0  ;;  %vm6297_vm14 = vmmov %vm6262_vm0  ;;  %v2746_v39 = vld [vmem:[#allocation2 + $0x49] sm:$0xff] }
  0x7d   : > { %4646 = vmatprep.mubr.msk.bf16.mxu0 %vm6292_vm15, %v2082_v51  ;;  %vm6298_vm12 = vmmov %vm6262_vm0  ;;  %v2744_v51 = vld [vmem:[#allocation2 + $0x39] sm:$0xff]  ;;  %v5810_v37 = vpack.c.bf16 %v2747_v54, %v2746_v39 }
  0x7e   : > { %vm6299_vm15 = vmmov %vm6262_vm0  ;;  %v5808_v57 = vpack.c.bf16 %v2745_v7, %v2744_v51  ;;  %v2754_v51 = vld [vmem:[#allocation2 + $0x89] sm:$0xff]  ;;  %v2755_v7 = vld [vmem:[#allocation2 + $0x91] sm:$0xff] }
  0x7f   : > { %v5834_v54 = vpack.c.bf16 %v2755_v7, %v2754_v51  ;;  %v5848_v51 = vpack.c.bf16 %v2759_v16, %v2758_v27  ;;  %v2761_v7 = vld [vmem:[#allocation2 + $0xc1] sm:$0xff] }
  0x80   : > { %v2765_v16 = vld [vmem:[#allocation2 + $0xe1] sm:$0xff] }
  0x83   : > { %4495 = vmatmul.mubr.msk.bf16.gmra.mrb[12].mxu1 %vm6293_vm10, %v5492_v13  ;;  %vm6300_vm10 = vmmov %vm6262_vm0 }
  0x84   : > { %4647 = vmatmul.mubr.msk.bf16.gmra.mrb[28].mxu0 %vm6294_vm11, %v2083_v58  ;;  %4498 = vmatprep.mubr.msk.bf16.mxu1 %vm6295_vm13, %v5524_v38  ;;  %vm6301_vm11 = vmmov %vm6296_vm1  ;;  %v2748_v58 = vld [vmem:[#allocation2 + $0x59] sm:$0xff] }
  0x85   : > { %4652 = vmatprep.mubr.msk.bf16.mxu0 %vm6262_vm0, %v2778_v2  ;;  %vm6302_vm13 = vmmov %vm6262_vm0  ;;  %v2749_v2 = vld [vmem:[#allocation2 + $0x61] sm:$0xff] }
  0x86   : > { %vm6303_vm1 = vmmov %vm6262_vm0  ;;  %v5820_v35 = vpack.c.bf16 %v2749_v2, %v2748_v58  ;;  %v2756_v58 = vld [vmem:[#allocation2 + $0x99] sm:$0xff]  ;;  %v2757_v2 = vld [vmem:[#allocation2 + $0xa1] sm:$0xff] }
  0x8b   : > { %4499 = vmatmul.mubr.msk.bf16.gmra.mrb[16].mxu1 %vm6297_vm14, %v5599_v56  ;;  %vm6304_vm14 = vmmov %vm6262_vm0 }
  0x8c   : > { %4653 = vmatmul.mubr.msk.bf16.vlgmr.msra.gmra.mrb[0].mxu0 %vm6298_vm12, %v2779_v60  ;;  %4502 = vmatprep.mubr.msk.bf16.mxu1 %vm6299_vm15, %v5606_v0  ;;  %vm6305_vm12 = vmmov %vm6262_vm0  ;;  %v2752_v60 = vld [vmem:[#allocation2 + $0x79] sm:$0xff] }
  0x8d   : > { %4685 = vmatpush3.bf16.msra.mxu0 %v3053_v47  ;;  %4656 = vmatprep.mubr.msk.bf16.mxu0 %vm6300_vm10, %v5792_v49  ;;  %vm6306_vm15 = vmmov %vm6262_vm0  ;;  %v2753_v47 = vld [vmem:[#allocation2 + $0x81] sm:$0xff] }
  0x8e   : > { %5011 = vmatprep.subr.msk.bf16.mxu0 %vm6301_vm11, %v5797_v50  ;;  %vm6307_vm10 = vmmov %vm6262_vm0  ;;  %v5832_v39 = vpack.c.bf16 %v2753_v47, %v2752_v60  ;;  %v5844_v60 = vpack.c.bf16 %v2757_v2, %v2756_v58  ;;  %v2762_v58 = vld [vmem:[#allocation2 + $0xc9] sm:$0xff]  ;;  %v2763_v2 = vld [vmem:[#allocation2 + $0xd1] sm:$0xff] }
  0x8f   : > { %vm6308_vm11 = vmmov %vm6262_vm0  ;;  %v5864_v27 = vpack.c.bf16 %v2763_v2, %v2762_v58 }
  0x93   : > { %4503 = vmatmul.mubr.msk.bf16.gmra.mrb[20].mxu1 %vm6302_vm13, %v5652_v6  ;;  %vm6309_vm13 = vmmov %vm6262_vm0 }
  0x94   : > { %4657 = vmatmul.mubr.msk.bf16.gmra.mrb[4].mxu0 %vm6262_vm0, %v5808_v57  ;;  %4506 = vmatprep.mubr.msk.bf16.mxu1 %vm6303_vm1, %v5669_v28  ;;  %vm6310_vm1 = vmmov %vm6262_vm0 }
  0x95   : > { %4660 = vmatprep.mubr.msk.bf16.mxu0 %vm6304_vm14, %v5810_v37  ;;  %vm6311_vm14 = vmmov %vm6262_vm0 }
  0x9b   : > { %4507 = vmatmul.mubr.msk.bf16.gmra.mrb[24].mxu1 %vm6305_vm12, %v5704_v52  ;;  %vm6312_vm12 = vcmask 1041408  }
  0x9c   : > { %4661 = vmatmul.mubr.msk.bf16.gmra.mrb[8].mxu0 %vm6306_vm15, %v5820_v35  ;;  %4510 = vmatprep.mubr.msk.bf16.mxu1 %vm6307_vm10, %v5706_v53  ;;  %v2135_v47 = vsel %vm6312_vm12, %v5752_v26, 0  ;;  %vm6313_vm15 = vmmov %vm6262_vm0  ;;  %v5054_v26 = vld [vmem:[%s6205_s5 + $0x8] sm:$0x3] }
  0x9d   : > { %4664 = vmatprep.mubr.msk.bf16.mxu0 %vm6308_vm11, %v5822_v12  ;;  %vm6314_vm10 = vmmov %vm6262_vm0 }
  0x9e   : > { %vm6315_vm11 = vmmov %vm6262_vm0 }
  0xa3   : > { %4511 = vmatmul.mubr.msk.bf16.gmra.mrb[28].mxu1 %vm6309_vm13, %v5716_v9  ;;  %vm6316_vm13 = vmmov %vm6262_vm0 }
  0xa4   : > { %4665 = vmatmul.mubr.msk.bf16.gmra.mrb[12].mxu0 %vm6262_vm0, %v5832_v39  ;;  %4516 = vmatprep.mubr.msk.bf16.mxu1 %vm6310_vm1, %v5419_v21  ;;  %v2760_v21 = vld [vmem:[#allocation2 + $0xb9] sm:$0xff]  ;;  %vm6317_vm0 = vmmov %vm6312_vm12 }
  0xa5   : > { %4668 = vmatprep.mubr.msk.bf16.mxu0 %vm6311_vm14, %v5834_v54  ;;  %vm6318_vm14 = vmmov %vm6310_vm1 }
  0xa6   : > { %vm6319_vm12 = vmmov %vm6310_vm1 }
  0xab   : > { %4517 = vmatmul.mubr.msk.bf16.vlgmr.msra.gmra.mrb[0].mxu1 %vm6313_vm15, %v5442_v36  ;;  %v5862_v36 = vpack.c.bf16 %v2761_v7, %v2760_v21  ;;  %vm6320_vm15 = vmmov %vm6310_vm1 }
  0xac   : > { %4669 = vmatmul.mubr.msk.bf16.gmra.mrb[16].mxu0 %vm6314_vm10, %v5844_v60  ;;  %4549 = vmatpush3.bf16.msra.mxu1 %v2135_v47  ;;  %v2766_v47 = vld [vmem:[#allocation2 + $0xe9] sm:$0xff]  ;;  %vm6321_vm10 = vmmov %vm6310_vm1 }
  0xad   : > { %4520 = vmatprep.mubr.msk.bf16.mxu1 %vm6315_vm11, %v5478_v55  ;;  %4672 = vmatprep.mubr.msk.bf16.mxu0 %vm6316_vm13, %v5848_v51  ;;  %v2764_v55 = vld [vmem:[#allocation2 + $0xd9] sm:$0xff]  ;;  %vm6322_vm11 = vmmov %vm6310_vm1 }
  0xae   : > { %5007 = vmatprep.subr.msk.bf16.mxu1 %vm6317_vm0, %v5054_v26  ;;  %v2767_v26 = vld [vmem:[#allocation2 + $0xf1] sm:$0xff]  ;;  %v5874_v21 = vpack.c.bf16 %v2765_v16, %v2764_v55  ;;  %vm6323_vm13 = vmmov %vm6310_vm1  ;;  %v2770_v55 = vld [vmem:[#allocation2 + $0x109] sm:$0xff] }
  0xaf   : > { %v5876_v7 = vpack.c.bf16 %v2767_v26, %v2766_v47  ;;  %vm6324_vm0 = vmmov %vm6310_vm1 }
  0xb3   : > { %4521 = vmatmul.mubr.msk.bf16.gmra.mrb[4].mxu1 %vm6310_vm1, %v5492_v13  ;;  %v2768_v13 = vld [vmem:[#allocation2 + $0xf9] sm:$0xff]  ;;  %vm6325_vm1 = vmmov %vm6324_vm0 }
  0xb4   : > { %4673 = vmatmul.mubr.msk.bf16.gmra.mrb[20].mxu0 %vm6318_vm14, %v5862_v36  ;;  %4524 = vmatprep.mubr.msk.bf16.mxu1 %vm6319_vm12, %v5524_v38  ;;  %v2769_v38 = vld [vmem:[#allocation2 + $0x101] sm:$0xff]  ;;  %vm6326_vm14 = vmmov %vm6324_vm0 }
  0xb5   : > { %4676 = vmatprep.mubr.msk.bf16.mxu0 %vm6320_vm15, %v5864_v27  ;;  %v5886_v58 = vpack.c.bf16 %v2769_v38, %v2768_v13  ;;  %vm6327_vm12 = vmmov %vm6324_vm0 }
  0xb6   : > { %vm6328_vm15 = vmmov %vm6324_vm0 }
  0xbb   : > { %4525 = vmatmul.mubr.msk.bf16.gmra.mrb[8].mxu1 %vm6321_vm10, %v5599_v56  ;;  %vm6329_vm10 = vcmask 1041408  }
  0xbc   : > { %4677 = vmatmul.mubr.msk.bf16.gmra.mrb[24].mxu0 %vm6322_vm11, %v5874_v21  ;;  %4528 = vmatprep.mubr.msk.bf16.mxu1 %vm6323_vm13, %v5606_v0  ;;  %v3257_v56 = vsel %vm6329_vm10, %v5797_v50, 0  ;;  %vm6330_vm11 = vmmov %vm6324_vm0  ;;  %v1410_v0 = vld [vmem:[#allocation2 + $0x127] sm:$0xff] }
  0xbd   : > { %4680 = vmatprep.mubr.msk.bf16.mxu0 %vm6324_vm0, %v5876_v7  ;;  %vm6331_vm13 = vmmov %vm6324_vm0 }
  0xbe   : > { %vm6336_vm10 = vmmov %vm6324_vm0 }
  0xc3   : > { %4529 = vmatmul.mubr.msk.bf16.gmra.mrb[12].mxu1 %vm6325_vm1, %v5652_v6  ;;  %vm6332_vm1 = vmmov %vm6324_vm0  ;;  %v1411_v6 = vld [vmem:[#allocation2 + $0x12f] sm:$0xff] }
  0xc4   : > { %4681 = vmatmul.mubr.msk.bf16.gmra.mrb[28].mxu0 %vm6326_vm14, %v5886_v58  ;;  %4532 = vmatprep.mubr.msk.bf16.mxu1 %vm6327_vm12, %v5669_v28  ;;  %vm6333_vm14 = vmmov %vm6324_vm0  ;;  %v1432_v28 = vpack.c.bf16 %v1411_v6, %v1410_v0 }
  0xc5   : > { %4686 = vmatprep.mubr.msk.bf16.mxu0 %vm6328_vm15, %v5792_v49  ;;  %vm6334_vm12 = vmmov %vm6324_vm0 }
  0xc6   : > { %vm6335_vm15 = vmmov %vm6324_vm0 }
  0xcb   : > { %4533 = vmatmul.mubr.msk.bf16.gmra.mrb[16].mxu1 %vm6330_vm11, %v5704_v52  ;;  %vm6337_vm11 = vmmov %vm6324_vm0  ;;  %v1412_v52 = vld [vmem:[#allocation2 + $0x137] sm:$0xff] }
  0xcc   : > { %4687 = vmatmul.mubr.msk.bf16.vlgmr.msra.gmra.mrb[0].mxu0 %vm6331_vm13, %v5808_v57  ;;  %4536 = vmatprep.mubr.msk.bf16.mxu1 %vm6324_vm0, %v5706_v53  ;;  %vm6338_vm13 = vmmov %vm6324_vm0  ;;  %v1413_v53 = vld [vmem:[#allocation2 + $0x13f] sm:$0xff] }
  0xcd   : > { %4719 = vmatpush3.bf16.msra.mxu0 %v3257_v56  ;;  %4690 = vmatprep.mubr.msk.bf16.mxu0 %vm6332_vm1, %v5810_v37  ;;  %vm6339_vm1 = vmmov %vm6324_vm0  ;;  %v1433_v49 = vpack.c.bf16 %v1413_v53, %v1412_v52  ;;  %v2027_v57 = vld [vmem:[#allocation2 + $0x20] sm:$0xff] }
  0xd3   : > { %4537 = vmatmul.mubr.msk.bf16.gmra.mrb[20].mxu1 %vm6333_vm14, %v5716_v9  ;;  %v2024_v9 = vld [vmem:[#allocation2 + $0x8] sm:$0xff]  ;;  %vm6340_vm14 = vmmov %vm6324_vm0 }
  0xd4   : > { %4691 = vmatmul.mubr.msk.bf16.gmra.mrb[4].mxu0 %vm6334_vm12, %v5820_v35  ;;  %4540 = vmatprep.mubr.msk.bf16.mxu1 %vm6335_vm15, %v5718_v29  ;;  %v2025_v29 = vld [vmem:[#allocation2 + $0x10] sm:$0xff]  ;;  %vm6341_vm12 = vmmov %vm6324_vm0 }
  0xd5   : > { %4694 = vmatprep.mubr.msk.bf16.mxu0 %vm6336_vm10, %v5822_v12  ;;  %v2064_v50 = vpack.c.bf16 %v2025_v29, %v2024_v9  ;;  %vm6342_vm15 = vmmov %vm6324_vm0 }
  0xd6   : > { %vm6343_vm10 = vmmov %vm6324_vm0 }
  0xdb   : > { %4541 = vmatmul.mubr.msk.bf16.gmra.mrb[24].mxu1 %vm6337_vm11, %v5730_v15  ;;  %v2026_v15 = vld [vmem:[#allocation2 + $0x18] sm:$0xff]  ;;  %vm6344_vm11 = vmmov %vm6324_vm0 }
  0xdc   : > { %4695 = vmatmul.mubr.msk.bf16.gmra.mrb[8].mxu0 %vm6338_vm13, %v5832_v39  ;;  %4544 = vmatprep.mubr.msk.bf16.mxu1 %vm6324_vm0, %v1432_v28  ;;  %v2065_v2 = vpack.c.bf16 %v2027_v57, %v2026_v15  ;;  %vm6345_vm13 = vmmov %vm6324_vm0 }
  0xdd   : > { %4698 = vmatprep.mubr.msk.bf16.mxu0 %vm6339_vm1, %v5834_v54  ;;  %vm6346_vm1 = vmmov %vm6324_vm0 }
  0xe3   : > { %4545 = vmatmul.mubr.msk.bf16.gmra.mrb[28].mxu1 %vm6340_vm14, %v1433_v49  ;;  %vm6347_vm14 = vmmov %vm6324_vm0 }
  0xe4   : > { %4699 = vmatmul.mubr.msk.bf16.gmra.mrb[12].mxu0 %vm6341_vm12, %v5844_v60  ;;  %4550 = vmatprep.mubr.msk.bf16.mxu1 %vm6342_vm15, %v2064_v50  ;;  %vm6348_vm12 = vmmov %vm6324_vm0 }
  0xe5   : > { %4702 = vmatprep.mubr.msk.bf16.mxu0 %vm6343_vm10, %v5848_v51  ;;  %vm6349_vm15 = vmmov %vm6324_vm0 }
  0xe6   : > { %vm6350_vm10 = vmmov %vm6324_vm0 }
  0xeb   : > { %4551 = vmatmul.mubr.msk.bf16.vlgmr.msra.gmra.mrb[0].mxu1 %vm6344_vm11, %v2065_v2  ;;  %vm6351_vm11 = vmmov %vm6324_vm0 }
  0xec   : > { %4703 = vmatmul.mubr.msk.bf16.gmra.mrb[16].mxu0 %vm6345_vm13, %v5862_v36  ;;  %4753 = vmatpush3.bf16.msra.mxu1 %v5182_v4  ;;  %v2771_v4 = vld [vmem:[#allocation2 + $0x111] sm:$0xff]  ;;  %vm6352_vm13 = vmmov %vm6324_vm0 }
  0xed   : > { %4554 = vmatprep.mubr.msk.bf16.mxu1 %vm6324_vm0, %v5391_v61  ;;  %4706 = vmatprep.mubr.msk.bf16.mxu0 %vm6346_vm1, %v5864_v27  ;;  %v2794_v16 = vpack.c.bf16 %v2771_v4, %v2770_v55  ;;  %vm6353_vm1 = vmmov %vm6324_vm0  ;;  %v2772_v61 = vld [vmem:[#allocation2 + $0x119] sm:$0xff] }
  0xf3   : > { %4555 = vmatmul.mubr.msk.bf16.gmra.mrb[4].mxu1 %vm6347_vm14, %v5398_v8  ;;  %v2773_v8 = vld [vmem:[#allocation2 + $0x121] sm:$0xff]  ;;  %vm6354_vm14 = vmmov %vm6324_vm0 }
  0xf4   : > { %4707 = vmatmul.mubr.msk.bf16.gmra.mrb[20].mxu0 %vm6348_vm12, %v5874_v21  ;;  %4558 = vmatprep.mubr.msk.bf16.mxu1 %vm6349_vm15, %v5429_v34  ;;  %v2795_v34 = vpack.c.bf16 %v2773_v8, %v2772_v61  ;;  %vm6355_vm12 = vmmov %vm6324_vm0 }
  0xf5   : > { %4710 = vmatprep.mubr.msk.bf16.mxu0 %vm6350_vm10, %v5876_v7  ;;  %vm6356_vm15 = vmmov %vm6324_vm0 }
  0xf6   : > { %vm6357_vm10 = vmmov %vm6324_vm0 }
  0xfb   : > { %4559 = vmatmul.mubr.msk.bf16.gmra.mrb[8].mxu1 %vm6351_vm11, %v5456_v17  ;;  %vm6358_vm11 = vmmov %vm6324_vm0  ;;  %v2774_v17 = vld [vmem:[#allocation2 + $0x129] sm:$0xff] }
  0xfc   : > { %4711 = vmatmul.mubr.msk.bf16.gmra.mrb[24].mxu0 %vm6352_vm13, %v5886_v58  ;;  %4562 = vmatprep.mubr.msk.bf16.mxu1 %vm6324_vm0, %v5482_v59  ;;  %vm6359_vm13 = vmmov %vm6324_vm0  ;;  %v2775_v59 = vld [vmem:[#allocation2 + $0x131] sm:$0xff] }
  0xfd   : > { %4714 = vmatprep.mubr.msk.bf16.mxu0 %vm6353_vm1, %v2794_v16  ;;  %vm6360_vm1 = vmmov %vm6324_vm0 }
 0x103   : > { %4563 = vmatmul.mubr.msk.bf16.gmra.mrb[12].mxu1 %vm6354_vm14, %v5512_v14  ;;  %vm6361_vm14 = vmmov %vm6324_vm0  ;;  %v2796_v14 = vpack.c.bf16 %v2775_v59, %v2774_v17 }
 0x104   : > { %4715 = vmatmul.mubr.msk.bf16.gmra.mrb[28].mxu0 %vm6355_vm12, %v2795_v34  ;;  %4566 = vmatprep.mubr.msk.bf16.mxu1 %vm6356_vm15, %v5550_v62  ;;  %vm6362_vm12 = vmmov %vm6324_vm0  ;;  %v2776_v62 = vld [vmem:[#allocation2 + $0x139] sm:$0xff] }
 0x105   : > { %4720 = vmatprep.mubr.msk.bf16.mxu0 %vm6357_vm10, %v5810_v37  ;;  %vm6363_vm15 = vmmov %vm6324_vm0 }
 0x106   : > { %vm6364_vm10 = vmmov %vm6324_vm0 }
 0x10b   : > { %4567 = vmatmul.mubr.msk.bf16.gmra.mrb[16].mxu1 %vm6358_vm11, %v5604_v63  ;;  %vm6365_vm11 = vmmov %vm6324_vm0  ;;  %v2777_v63 = vld [vmem:[#allocation2 + $0x141] sm:$0xff] }
 0x10c   : > { %4721 = vmatmul.mubr.msk.bf16.vlgmr.msra.gmra.mrb[0].mxu0 %vm6359_vm13, %v5820_v35  ;;  %4570 = vmatprep.mubr.msk.bf16.mxu1 %vm6324_vm0, %v5720_v32  ;;  %vm6366_vm13 = vmmov %vm6324_vm0 }
 0x10d   : > { %4724 = vmatprep.mubr.msk.bf16.mxu0 %vm6360_vm1, %v5822_v12  ;;  %vm6367_vm1 = vmmov %vm6324_vm0 }
 0x113   : > { %4571 = vmatmul.mubr.msk.bf16.gmra.mrb[20].mxu1 %vm6361_vm14, %v5732_v48  ;;  %vm6368_vm14 = vmmov %vm6324_vm0 }
 0x114   : > { %4725 = vmatmul.mubr.msk.bf16.gmra.mrb[4].mxu0 %vm6362_vm12, %v5832_v39  ;;  %4574 = vmatprep.mubr.msk.bf16.mxu1 %vm6363_vm15, %v5734_v5  ;;  %vm6369_vm12 = vmmov %vm6324_vm0 }
 0x115   : > { %4728 = vmatprep.mubr.msk.bf16.mxu0 %vm6364_vm10, %v5834_v54  ;;  %vm6370_vm15 = vmmov %vm6324_vm0 }
 0x116   : > { %vm6371_vm10 = vmmov %vm6324_vm0 }
 0x11b   : > { %4575 = vmatmul.mubr.msk.bf16.gmra.mrb[24].mxu1 %vm6365_vm11, %v5743_v1  ;;  %vm6372_vm11 = vmmov %vm6324_vm0 }
 0x11c   : > { %4729 = vmatmul.mubr.msk.bf16.gmra.mrb[8].mxu0 %vm6366_vm13, %v5844_v60  ;;  %4578 = vmatprep.mubr.msk.bf16.mxu1 %vm6324_vm0, %v5747_v19  ;;  %vm6373_vm13 = vmmov %vm6324_vm0 }
 0x11d   : > { %4732 = vmatprep.mubr.msk.bf16.mxu0 %vm6367_vm1, %v5848_v51  ;;  %vm6374_vm1 = vmmov %vm6324_vm0 }
 0x123   : > { %4579 = vmatmul.mubr.msk.bf16.gmra.mrb[28].mxu1 %vm6368_vm14, %v5763_v44  ;;  %vm6375_vm14 = vmmov %vm6324_vm0 }
 0x124   : > { %4733 = vmatmul.mubr.msk.bf16.gmra.mrb[12].mxu0 %vm6369_vm12, %v5862_v36  ;;  %4600 = vmatprep.mubr.msk.bf16.mxu1 %vm6370_vm15, %v5720_v32  ;;  %vm6376_vm12 = vmmov %vm6324_vm0  ;;  %v2797_v32 = vpack.c.bf16 %v2777_v63, %v2776_v62 }
 0x125   : > { %4736 = vmatprep.mubr.msk.bf16.mxu0 %vm6371_vm10, %v5864_v27  ;;  %vm6377_vm15 = vmmov %vm6324_vm0 }
 0x126   : > { %vm6378_vm10 = vmmov %vm6324_vm0 }
 0x12b   : > { %4601 = vmatmul.mubr.msk.bf16.vlgmr.msra.gmra.mrb[16].mxu1 %vm6372_vm11, %v5732_v48  ;;  %vm6379_vm11 = vmmov %vm6324_vm0  ;;  %v5096_v48 = vmov 0.0|0.0  }
 0x12c   : > { %4737 = vmatmul.mubr.msk.bf16.gmra.mrb[16].mxu0 %vm6373_vm13, %v5874_v21  ;;  %4604 = vmatprep.mubr.msk.bf16.mxu1 %vm6324_vm0, %v5734_v5  ;;  %vm6380_vm13 = vmmov %vm6324_vm0 }
 0x12d   : > { %4740 = vmatprep.mubr.msk.bf16.mxu0 %vm6374_vm1, %v5876_v7  ;;  %vm6381_vm1 = vmmov %vm6324_vm0 }
 0x133   : > { %4605 = vmatmul.mubr.msk.bf16.gmra.mrb[20].mxu1 %vm6375_vm14, %v5743_v1  ;;  %vm6382_vm14 = vmmov %vm6324_vm0 }
 0x134   : > { %4741 = vmatmul.mubr.msk.bf16.gmra.mrb[20].mxu0 %vm6376_vm12, %v5886_v58  ;;  %4608 = vmatprep.mubr.msk.bf16.mxu1 %vm6377_vm15, %v5747_v19  ;;  %vm6383_vm12 = vmmov %vm6324_vm0  ;;  %vm3612_vm15 = vcmask 27648  }
 0x135   : > { %4744 = vmatprep.mubr.msk.bf16.mxu0 %vm6378_vm10, %v2794_v16  ;;  %3616 = vst.msk [vmem:[%s6017_s15 + $0xc] sm:$0xf] %vm3612_vm15, %v5096_v48  ;;  %3620 = vst.msk [vmem:[%s6017_s15 + $0x1c] sm:$0xf] %vm3612_vm15, %v5096_v48 }
 0x136   : > { %3624 = vst.msk [vmem:[%s6017_s15 + $0x2c] sm:$0xf] %vm3612_vm15, %v5096_v48  ;;  %3628 = vst.msk [vmem:[%s6017_s15 + $0x3c] sm:$0xf] %vm3612_vm15, %v5096_v48 }
 0x137   : > { %3632 = vst.msk [vmem:[%s6017_s15 + $0x4c] sm:$0xf] %vm3612_vm15, %v5096_v48  ;;  %3636 = vst.msk [vmem:[%s6017_s15 + $0x5c] sm:$0xf] %vm3612_vm15, %v5096_v48 }
 0x138   : > { %3640 = vst.msk [vmem:[%s6017_s15 + $0x6c] sm:$0xf] %vm3612_vm15, %v5096_v48  ;;  %3644 = vst.msk [vmem:[%s6017_s15 + $0x7c] sm:$0xf] %vm3612_vm15, %v5096_v48 }
 0x139   : > { %vm6384_vm10 = vmmov %vm6324_vm0 }
 0x13b   : > { %4609 = vmatmul.mubr.msk.bf16.gmra.mrb[24].mxu1 %vm6379_vm11, %v5763_v44  ;;  %vm6385_vm11 = vmmov %vm6324_vm0 }
 0x13c   : > { %4745 = vmatmul.mubr.msk.bf16.gmra.mrb[24].mxu0 %vm6380_vm13, %v2795_v34  ;;  %4612 = vmatprep.mubr.msk.bf16.mxu1 %vm6324_vm0, %v5765_v46  ;;  %vm6386_vm13 = vmmov %vm6324_vm0 }
 0x13d   : > { %4748 = vmatprep.mubr.msk.bf16.mxu0 %vm6381_vm1, %v2796_v14  ;;  %vm6389_vm1 = vmmov %vm6324_vm0 }
 0x143   : > { %4613 = vmatmul.mubr.msk.bf16.gmra.mrb[28].mxu1 %vm6382_vm14, %v5775_v30  ;;  %vm6391_vm14 = vmmov %vm6324_vm0 }
 0x144   : > { %4749 = vmatmul.mubr.msk.bf16.gmra.mrb[28].mxu0 %vm6383_vm12, %v2797_v32  ;;  %vm6393_vm12 = vmmov %vm6324_vm0 }
 0x1be   : > { %v4552_v5 = vpop.f32.mrb[0].mxu1 }
 0x1bf   : > { %v2171_v1 = vpop.f32.mrb[1].mxu1 }
 0x1c0   : > { %v4553_v19 = vpop.f32.mrb[2].mxu1 }
 0x1c1   : > { %v2174_v44 = vpop.f32.mrb[3].mxu1 }
 0x1c6   : > { %v4556_v46 = vpop.f32.mrb[4].mxu1 }
 0x1c7   : > { %v2187_v30 = vpop.f32.mrb[5].mxu1 }
 0x1c8   : > { %v4557_v37 = vpop.f32.mrb[6].mxu1 }
 0x1c9   : > { %v2190_v35 = vpop.f32.mrb[7].mxu1 }
 0x1ce   : > { %v4560_v12 = vpop.f32.mrb[8].mxu1 }
 0x1cf   : > { %v6035_v39 = vpop.f32.mrb[9].mxu1 }
 0x1d0   : > { %v4561_v54 = vpop.f32.mrb[10].mxu1 }
 0x1d1   : > { %v6037_v60 = vpop.f32.mrb[11].mxu1 }
 0x1d6   : > { %v6039_v51 = vpop.f32.mrb[12].mxu1 }
 0x1d7   : > { %v6041_v36 = vpop.f32.mrb[13].mxu1 }
 0x1d8   : > { %v4565_v27 = vpop.f32.mrb[14].mxu1 }
 0x1d9   : > { %v6043_v47 = vpop.f32.mrb[15].mxu1 }
 0x1df   : > { %v4722_v26 = vpop.f32.mrb[0].mxu0 }
 0x1e0   : > { %v4754_v21 = vadd.f32 %v4722_v26, %v4552_v5  ;;  %v3293_v7 = vpop.f32.mrb[1].mxu0 }
 0x1e1   : > { %v4755_v13 = vadd.f32 %v3293_v7, %v2171_v1  ;;  %v4723_v38 = vpop.f32.mrb[2].mxu0 }
 0x1e2   : > { %v3454_v58 = vsel %vm5258_vm3, %v4754_v21, 0.0  ;;  %v3296_v56 = vpop.f32.mrb[3].mxu0  ;;  %vm6387_vm3 = vmmov %vm6324_vm0 }
 0x1e3   : > { %v4216_v0 = vpack.c.bf16 %v3454_v58, %v3454_v58  ;;  %v3452_v6 = vsel %vm5245_vm2, %v4755_v13, 0.0  ;;  %v4756_v9 = vadd.f32 %v3296_v56, %v2174_v44  ;;  %v3716_v15 = vmul.f32 %v3454_v58, %v3454_v58  ;;  %vm6388_vm2 = vmmov %vm6324_vm0 }
 0x1e4   : > { %v4214_v28 = vpack.c.bf16 %v3452_v6, %v3452_v6  ;;  %v3645_v52 = vsel %vm6384_vm10, %v3452_v6, 0.0  ;;  %v3714_v53 = vmul.f32 %v3452_v6, %v3452_v6  ;;  %v3648_v2 = vsel %vm6387_vm3, %v3454_v58, 0.0  ;;  %vm6394_vm10 = vmmov %vm6324_vm0 }
 0x1e5   : > { %3615 = vst.msk [vmem:[%s6017_s15 + $0x8] sm:$0xf] %vm3612_vm15, %v4216_v0  ;;  %v4215_v49 = vpack.c.bf16 %v4756_v9, %v4756_v9  ;;  %v3646_v25 = vsel %vm6386_vm13, %v4756_v9, 0.0  ;;  %v3715_v50 = vmul.f32 %v4756_v9, %v4756_v9  ;;  %v3749_v62 = vsel %vm6324_vm0, %v3716_v15, 0.0  ;;  %vm6397_vm13 = vmmov %vm6324_vm0 }
 0x1e6   : > { %3613 = vst.msk [vmem:[%s6017_s15] sm:$0xf] %vm3612_vm15, %v4214_v28  ;;  %v3746_v29 = vsel %vm6385_vm11, %v3714_v53, 0.0  ;;  %v3647_v57 = vadd.f32 %v3646_v25, %v3645_v52  ;;  %vm6395_vm11 = vmmov %vm6324_vm0 }
 0x1e7   : > { %v4726_v20 = vpop.f32.mrb[4].mxu0  ;;  %3614 = vst.msk [vmem:[%s6017_s15 + $0x4] sm:$0xf] %vm3612_vm15, %v4215_v49  ;;  %v3747_v55 = vsel %vm6388_vm2, %v3715_v50, 0.0  ;;  %vm6399_vm3 = vmmov %vm6324_vm0 }
 0x1e8   : > { %v4757_v4 = vadd.f32 %v4726_v20, %v4556_v46  ;;  %v3309_v16 = vpop.f32.mrb[5].mxu0  ;;  %v3748_v61 = vadd.f32 %v3747_v55, %v3746_v29  ;;  %v3649_v34 = vadd.f32 %v3648_v2, %v3647_v57  ;;  %vm6400_vm2 = vmmov %vm6324_vm0 }
 0x1e9   : > { %v4758_v8 = vadd.f32 %v3309_v16, %v2187_v30  ;;  %v4727_v17 = vpop.f32.mrb[6].mxu0 }
 0x1ea   : > { %v3458_v59 = vsel %vm5275_vm5, %v4757_v4, 0.0  ;;  %v3312_v14 = vpop.f32.mrb[7].mxu0  ;;  %v3750_v19 = vadd.f32 %v3749_v62, %v3748_v61  ;;  %vm6390_vm5 = vmmov %vm6324_vm0 }
 0x1eb   : > { %v4220_v63 = vpack.c.bf16 %v3458_v59, %v3458_v59  ;;  %v3456_v32 = vsel %vm5270_vm4, %v4758_v8, 0.0  ;;  %v4759_v46 = vadd.f32 %v3312_v14, %v2190_v35  ;;  %v3720_v30 = vmul.f32 %v3458_v59, %v3458_v59  ;;  %vm6392_vm4 = vmmov %vm6324_vm0 }
 0x1ec   : > { %v4218_v48 = vpack.c.bf16 %v3456_v32, %v3456_v32  ;;  %v3652_v5 = vsel %vm6389_vm1, %v3456_v32, 0.0  ;;  %v3718_v1 = vmul.f32 %v3456_v32, %v3456_v32  ;;  %v3656_v38 = vsel %vm6392_vm4, %v3458_v59, 0.0  ;;  %vm6402_vm1 = vmmov %vm6324_vm0 }
 0x1ed   : > { %3619 = vst.msk [vmem:[%s6017_s15 + $0x18] sm:$0xf] %vm3612_vm15, %v4220_v63  ;;  %v3653_v44 = vadd.f32 %v3652_v5, %v3649_v34  ;;  %v4219_v54 = vpack.c.bf16 %v4759_v46, %v4759_v46  ;;  %v3654_v31 = vsel %vm6391_vm14, %v4759_v46, 0.0  ;;  %v3719_v27 = vmul.f32 %v4759_v46, %v4759_v46  ;;  %vm6406_vm4 = vmmov %vm6324_vm0 }
 0x1ee   : > { %3617 = vst.msk [vmem:[%s6017_s15 + $0x10] sm:$0xf] %vm3612_vm15, %v4218_v48  ;;  %v3753_v33 = vsel %vm6390_vm5, %v3718_v1, 0.0  ;;  %vm6404_vm5 = vmmov %vm6324_vm0  ;;  %vm6405_vm14 = vnez %v6239_v41 }
 0x1ef   : > { %v3754_v37 = vadd.f32 %v3753_v33, %v3750_v19  ;;  %v4730_v26 = vpop.f32.mrb[8].mxu0  ;;  %v3655_v21 = vadd.f32 %v3654_v31, %v3653_v44  ;;  %3618 = vst.msk [vmem:[%s6017_s15 + $0x14] sm:$0xf] %vm3612_vm15, %v4219_v54  ;;  %v3755_v35 = vsel %vm6393_vm12, %v3719_v27, 0.0  ;;  %vm6407_vm12 = vnez %v6236_v45 }
 0x1f0   : > { %v4760_v7 = vadd.f32 %v4730_v26, %v4560_v12  ;;  %v3325_v13 = vpop.f32.mrb[9].mxu0  ;;  %v3757_v12 = vsel %vm6394_vm10, %v3720_v30, 0.0  ;;  %vm6408_vm10 = vmmov %vm6324_vm0 }
 0x1f1   : > { %v4761_v58 = vadd.f32 %v3325_v13, %v6035_v39  ;;  %v4731_v56 = vpop.f32.mrb[10].mxu0  ;;  %v3756_v0 = vadd.f32 %v3755_v35, %v3754_v37  ;;  %v3657_v28 = vadd.f32 %v3656_v38, %v3655_v21 }
 0x1f2   : > { %v3462_v6 = vsel %vm5337_vm7, %v4760_v7, 0.0  ;;  %v3328_v52 = vpop.f32.mrb[11].mxu0  ;;  %vm6396_vm7 = vmmov %vm6324_vm0 }
 0x1f3   : > { %v4224_v53 = vpack.c.bf16 %v3462_v6, %v3462_v6  ;;  %v3460_v9 = vsel %vm5285_vm6, %v4761_v58, 0.0  ;;  %v3758_v50 = vadd.f32 %v3757_v12, %v3756_v0  ;;  %v4762_v23 = vadd.f32 %v3328_v52, %v6037_v60  ;;  %vm6398_vm6 = vmmov %vm6324_vm0 }
 0x1f4   : > { %v4222_v29 = vpack.c.bf16 %v3460_v9, %v3460_v9  ;;  %v3660_v49 = vsel %vm6395_vm11, %v3460_v9, 0.0  ;;  %v3722_v25 = vmul.f32 %v3460_v9, %v3460_v9  ;;  %v3724_v15 = vmul.f32 %v3462_v6, %v3462_v6  ;;  %vm6409_vm11 = vmmov %vm6324_vm0 }
 0x1f5   : > { %3623 = vst.msk [vmem:[%s6017_s15 + $0x28] sm:$0xf] %vm3612_vm15, %v4224_v53  ;;  %v3661_v39 = vadd.f32 %v3660_v49, %v3657_v28  ;;  %v4223_v2 = vpack.c.bf16 %v4762_v23, %v4762_v23  ;;  %v3662_v42 = vsel %vm6397_vm13, %v4762_v23, 0.0  ;;  %v3723_v55 = vmul.f32 %v4762_v23, %v4762_v23  ;;  %vm6411_vm13 = vmmov %vm6324_vm0 }
 0x1f6   : > { %3621 = vst.msk [vmem:[%s6017_s15 + $0x20] sm:$0xf] %vm3612_vm15, %v4222_v29  ;;  %v3761_v57 = vsel %vm6396_vm7, %v3722_v25, 0.0  ;;  %v3664_v34 = vsel %vm6398_vm6, %v3462_v6, 0.0  ;;  %vm6410_vm7 = vmmov %vm6324_vm0 }
 0x1f7   : > { %v3762_v20 = vadd.f32 %v3761_v57, %v3758_v50  ;;  %v4734_v4 = vpop.f32.mrb[12].mxu0  ;;  %v3663_v16 = vadd.f32 %v3662_v42, %v3661_v39  ;;  %3622 = vst.msk [vmem:[%s6017_s15 + $0x24] sm:$0xf] %vm3612_vm15, %v4223_v2  ;;  %v3763_v60 = vsel %vm6399_vm3, %v3723_v55, 0.0  ;;  %vm6412_vm6 = vmmov %vm6324_vm0  ;;  %vm6413_vm3 = vnez %v6244_v18 }
 0x1f8   : > { %v4763_v61 = vadd.f32 %v4734_v4, %v6039_v51  ;;  %v3341_v8 = vpop.f32.mrb[13].mxu0  ;;  %v3765_v51 = vsel %vm6400_vm2, %v3724_v15, 0.0  ;;  %vm6414_vm2 = vmmov %vm6324_vm0 }
 0x1f9   : > { %v4764_v17 = vadd.f32 %v3341_v8, %v6041_v36  ;;  %v4735_v59 = vpop.f32.mrb[14].mxu0  ;;  %v3764_v14 = vadd.f32 %v3763_v60, %v3762_v20  ;;  %v3665_v63 = vadd.f32 %v3664_v34, %v3663_v16 }
 0x1fa   : > { %v3466_v62 = vsel %vm5365_vm9, %v4763_v61, 0.0  ;;  %v3344_v32 = vpop.f32.mrb[15].mxu0  ;;  %vm6401_vm9 = vmmov %vm6324_vm0 }
 0x1fb   : > { %v4228_v48 = vpack.c.bf16 %v3466_v62, %v3466_v62  ;;  %v3464_v5 = vsel %vm5343_vm8, %v4764_v17, 0.0  ;;  %v3766_v46 = vadd.f32 %v3765_v51, %v3764_v14  ;;  %v4765_v40 = vadd.f32 %v3344_v32, %v6043_v47  ;;  %vm6403_vm8 = vmmov %vm6324_vm0 }
 0x1fc   : > { %v4226_v1 = vpack.c.bf16 %v3464_v5, %v3464_v5  ;;  %v3668_v19 = vsel %vm6324_vm0, %v3464_v5, 0.0  ;;  %v3726_v44 = vmul.f32 %v3464_v5, %v3464_v5  ;;  %v3728_v30 = vmul.f32 %v3466_v62, %v3466_v62 }
 0x1fd   : > { %3627 = vst.msk [vmem:[%s6017_s15 + $0x38] sm:$0xf] %vm3612_vm15, %v4228_v48  ;;  %v3669_v36 = vadd.f32 %v3668_v19, %v3665_v63  ;;  %v4227_v54 = vpack.c.bf16 %v4765_v40, %v4765_v40  ;;  %v3670_v24 = vsel %vm6402_vm1, %v4765_v40, 0.0  ;;  %v3727_v31 = vmul.f32 %v4765_v40, %v4765_v40 }
 0x1fe   : > { %3625 = vst.msk [vmem:[%s6017_s15 + $0x30] sm:$0xf] %vm3612_vm15, %v4226_v1  ;;  %v3769_v33 = vsel %vm6401_vm9, %v3726_v44, 0.0  ;;  %v4602_v27 = vpop.f32.mrb[16].mxu1  ;;  %v3672_v35 = vsel %vm6403_vm8, %v3466_v62, 0.0  ;;  %v3773_v9 = vsel %vm6406_vm4, %v3728_v30, 0.0  ;;  %vm6415_vm0 = vnez %v6242_v22  ;;  %vm6416_vm9 = vmmov %vm6402_vm1 }
 0x1ff   : > { %v3770_v37 = vadd.f32 %v3769_v33, %v3766_v46  ;;  %v4738_v26 = vpop.f32.mrb[16].mxu0  ;;  %v3671_v21 = vadd.f32 %v3670_v24, %v3669_v36  ;;  %v2439_v13 = vpop.f32.mrb[17].mxu1  ;;  %3626 = vst.msk [vmem:[%s6017_s15 + $0x34] sm:$0xf] %vm3612_vm15, %v4227_v54  ;;  %v3771_v47 = vsel %vm6404_vm5, %v3727_v31, 0.0  ;;  %vm6417_vm8 = vmmov %vm6402_vm1  ;;  %vm6420_vm4 = vnez %v6248_v3 }
 0x200   : > { %v4766_v7 = vadd.f32 %v4738_v26, %v4602_v27  ;;  %v3357_v38 = vpop.f32.mrb[17].mxu0  ;;  %v4603_v56 = vpop.f32.mrb[18].mxu1  ;;  %vm6418_vm5 = vmmov %vm6402_vm1 }
 0x201   : > { %v4767_v58 = vadd.f32 %v3357_v38, %v2439_v13  ;;  %v4739_v0 = vpop.f32.mrb[18].mxu0  ;;  %v3772_v6 = vadd.f32 %v3771_v47, %v3770_v37  ;;  %v3673_v52 = vadd.f32 %v3672_v35, %v3671_v21  ;;  %v2442_v12 = vpop.f32.mrb[19].mxu1 }
 0x202   : > { %v3470_v28 = vsel %vm6405_vm14, %v4766_v7, 0.0  ;;  %v3360_v53 = vpop.f32.mrb[19].mxu0  ;;  %vm6419_vm14 = vmmov %vm6402_vm1 }
 0x203   : > { %v4232_v29 = vpack.c.bf16 %v3470_v28, %v3470_v28  ;;  %v3468_v49 = vsel %vm6407_vm12, %v4767_v58, 0.0  ;;  %v3774_v23 = vadd.f32 %v3773_v9, %v3772_v6  ;;  %v4768_v41 = vadd.f32 %v3360_v53, %v2442_v12  ;;  %vm6421_vm12 = vmmov %vm6402_vm1 }
 0x204   : > { %v4230_v25 = vpack.c.bf16 %v3468_v49, %v3468_v49  ;;  %v3676_v50 = vsel %vm6408_vm10, %v3468_v49, 0.0  ;;  %v3730_v39 = vmul.f32 %v3468_v49, %v3468_v49  ;;  %v3732_v57 = vmul.f32 %v3470_v28, %v3470_v28 }
 0x205   : > { %3631 = vst.msk [vmem:[%s6017_s15 + $0x48] sm:$0xf] %vm3612_vm15, %v4232_v29  ;;  %v3677_v15 = vadd.f32 %v3676_v50, %v3673_v52  ;;  %v4231_v42 = vpack.c.bf16 %v4768_v41, %v4768_v41  ;;  %v3678_v45 = vsel %vm6410_vm7, %v4768_v41, 0.0  ;;  %v3731_v55 = vmul.f32 %v4768_v41, %v4768_v41  ;;  %vm6424_vm7 = vmmov %vm6402_vm1 }
 0x206   : > { %3629 = vst.msk [vmem:[%s6017_s15 + $0x40] sm:$0xf] %vm3612_vm15, %v4230_v25  ;;  %v3777_v20 = vsel %vm6409_vm11, %v3730_v39, 0.0  ;;  %v4606_v4 = vpop.f32.mrb[20].mxu1  ;;  %v3680_v17 = vsel %vm6411_vm13, %v3470_v28, 0.0  ;;  %v3781_v19 = vsel %vm6414_vm2, %v3732_v57, 0.0  ;;  %vm6422_vm10 = vnez %v6246_v43  ;;  %vm6423_vm11 = vmmov %vm6402_vm1 }
 0x207   : > { %v3778_v2 = vadd.f32 %v3777_v20, %v3774_v23  ;;  %v4742_v16 = vpop.f32.mrb[20].mxu0  ;;  %v3679_v61 = vadd.f32 %v3678_v45, %v3677_v15  ;;  %v2455_v34 = vpop.f32.mrb[21].mxu1  ;;  %3630 = vst.msk [vmem:[%s6017_s15 + $0x44] sm:$0xf] %vm3612_vm15, %v4231_v42  ;;  %v3779_v59 = vsel %vm6412_vm6, %v3731_v55, 0.0  ;;  %vm6425_vm13 = vmmov %vm6402_vm1  ;;  %vm6428_vm2 = vnez %v6252_v10 }
 0x208   : > { %v4769_v8 = vadd.f32 %v4742_v16, %v4606_v4  ;;  %v3373_v60 = vpop.f32.mrb[21].mxu0  ;;  %v4607_v62 = vpop.f32.mrb[22].mxu1  ;;  %vm6426_vm6 = vmmov %vm6402_vm1 }
 0x209   : > { %v4770_v14 = vadd.f32 %v3373_v60, %v2455_v34  ;;  %v4743_v63 = vpop.f32.mrb[22].mxu0  ;;  %v3780_v32 = vadd.f32 %v3779_v59, %v3778_v2  ;;  %v3681_v48 = vadd.f32 %v3680_v17, %v3679_v61  ;;  %v2458_v5 = vpop.f32.mrb[23].mxu1 }
 0x20a   : > { %v3474_v51 = vsel %vm6413_vm3, %v4769_v8, 0.0  ;;  %v3376_v1 = vpop.f32.mrb[23].mxu0  ;;  %vm6427_vm3 = vmmov %vm6402_vm1 }
 0x20b   : > { %v4236_v44 = vpack.c.bf16 %v3474_v51, %v3474_v51  ;;  %v3472_v46 = vsel %vm6415_vm0, %v4770_v14, 0.0  ;;  %v3782_v33 = vadd.f32 %v3781_v19, %v3780_v32  ;;  %v4771_v18 = vadd.f32 %v3376_v1, %v2458_v5  ;;  %vm6429_vm0 = vmmov %vm6402_vm1 }
 0x20c   : > { %v4234_v36 = vpack.c.bf16 %v3472_v46, %v3472_v46  ;;  %v3684_v40 = vsel %vm6416_vm9, %v3472_v46, 0.0  ;;  %v3734_v30 = vmul.f32 %v3472_v46, %v3472_v46  ;;  %v3736_v54 = vmul.f32 %v3474_v51, %v3474_v51 }
 0x20d   : > { %3635 = vst.msk [vmem:[%s6017_s15 + $0x58] sm:$0xf] %vm3612_vm15, %v4236_v44  ;;  %v3685_v37 = vadd.f32 %v3684_v40, %v3681_v48  ;;  %v4235_v27 = vpack.c.bf16 %v4771_v18, %v4771_v18  ;;  %v3686_v22 = vsel %vm6417_vm8, %v4771_v18, 0.0  ;;  %v3735_v26 = vmul.f32 %v4771_v18, %v4771_v18  ;;  %vm6432_vm8 = vmmov %vm6429_vm0 }
 0x20e   : > { %3633 = vst.msk [vmem:[%s6017_s15 + $0x50] sm:$0xf] %vm3612_vm15, %v4234_v36  ;;  %v3785_v24 = vsel %vm6402_vm1, %v3734_v30, 0.0  ;;  %v4610_v21 = vpop.f32.mrb[24].mxu1  ;;  %v3688_v58 = vsel %vm6418_vm5, %v3474_v51, 0.0  ;;  %v3789_v49 = vsel %vm6421_vm12, %v3736_v54, 0.0  ;;  %vm6430_vm9 = vnez %v6250_v11  ;;  %vm6431_vm1 = vmmov %vm6429_vm0 }
 0x20f   : > { %v3786_v31 = vadd.f32 %v3785_v24, %v3782_v33  ;;  %v4746_v7 = vpop.f32.mrb[24].mxu0  ;;  %v3687_v13 = vadd.f32 %v3686_v22, %v3685_v37  ;;  %v2471_v35 = vpop.f32.mrb[25].mxu1  ;;  %3634 = vst.msk [vmem:[%s6017_s15 + $0x54] sm:$0xf] %vm3612_vm15, %v4235_v27  ;;  %v3787_v56 = vsel %vm6419_vm14, %v3735_v26, 0.0  ;;  %vm6433_vm5 = vmmov %vm6429_vm0 }
 0x210   : > { %v4772_v38 = vadd.f32 %v4746_v7, %v4610_v21  ;;  %v3389_v47 = vpop.f32.mrb[25].mxu0  ;;  %v4611_v6 = vpop.f32.mrb[26].mxu1  ;;  %vm6434_vm14 = vmmov %vm6429_vm0 }
 0x211   : > { %v4773_v0 = vadd.f32 %v3389_v47, %v2471_v35  ;;  %v4747_v28 = vpop.f32.mrb[26].mxu0  ;;  %v3788_v52 = vadd.f32 %v3787_v56, %v3786_v31  ;;  %v3689_v53 = vadd.f32 %v3688_v58, %v3687_v13  ;;  %v2474_v9 = vpop.f32.mrb[27].mxu1  ;;  %vm6436_vm12 = vmmov %vm6429_vm0 }
 0x212   : > { %v3478_v12 = vsel %vm6420_vm4, %v4772_v38, 0.0  ;;  %v3392_v29 = vpop.f32.mrb[27].mxu0  ;;  %vm6435_vm4 = vmmov %vm6429_vm0 }
 0x213   : > { %v4240_v25 = vpack.c.bf16 %v3478_v12, %v3478_v12  ;;  %v3476_v50 = vsel %vm6422_vm10, %v4773_v0, 0.0  ;;  %v3790_v41 = vadd.f32 %v3789_v49, %v3788_v52  ;;  %v4774_v3 = vadd.f32 %v3392_v29, %v2474_v9 }
 0x214   : > { %v4238_v39 = vpack.c.bf16 %v3476_v50, %v3476_v50  ;;  %v3692_v23 = vsel %vm6423_vm11, %v3476_v50, 0.0  ;;  %v3738_v15 = vmul.f32 %v3476_v50, %v3476_v50  ;;  %v3740_v20 = vmul.f32 %v3478_v12, %v3478_v12 }
 0x215   : > { %3639 = vst.msk [vmem:[%s6017_s15 + $0x68] sm:$0xf] %vm3612_vm15, %v4240_v25  ;;  %v3693_v57 = vadd.f32 %v3692_v23, %v3689_v53  ;;  %v4239_v45 = vpack.c.bf16 %v4774_v3, %v4774_v3  ;;  %v3694_v43 = vsel %vm6425_vm13, %v4774_v3, 0.0  ;;  %v3739_v55 = vmul.f32 %v4774_v3, %v4774_v3 }
 0x216   : > { %3637 = vst.msk [vmem:[%s6017_s15 + $0x60] sm:$0xf] %vm3612_vm15, %v4238_v39  ;;  %v3793_v2 = vsel %vm6424_vm7, %v3738_v15, 0.0  ;;  %v4614_v4 = vpop.f32.mrb[28].mxu1  ;;  %v3696_v17 = vsel %vm6426_vm6, %v3478_v12, 0.0  ;;  %v3797_v19 = vsel %vm6429_vm0, %v3740_v20, 0.0 }
 0x217   : > { %v3794_v42 = vadd.f32 %v3793_v2, %v3790_v41  ;;  %v4750_v16 = vpop.f32.mrb[28].mxu0  ;;  %v3695_v61 = vadd.f32 %v3694_v43, %v3693_v57  ;;  %v2487_v34 = vpop.f32.mrb[29].mxu1  ;;  %3638 = vst.msk [vmem:[%s6017_s15 + $0x64] sm:$0xf] %vm3612_vm15, %v4239_v45  ;;  %v3795_v59 = vsel %vm6427_vm3, %v3739_v55, 0.0  ;;  %vm3817_vm10 = vcmask 25600  }
 0x218   : > { %v4775_v8 = vadd.f32 %v4750_v16, %v4614_v4  ;;  %v3405_v60 = vpop.f32.mrb[29].mxu0  ;;  %v4615_v62 = vpop.f32.mrb[30].mxu1 }
 0x219   : > { %v4776_v14 = vadd.f32 %v3405_v60, %v2487_v34  ;;  %v4751_v63 = vpop.f32.mrb[30].mxu0  ;;  %v3796_v32 = vadd.f32 %v3795_v59, %v3794_v42  ;;  %v3697_v48 = vadd.f32 %v3696_v17, %v3695_v61  ;;  %v2490_v5 = vpop.f32.mrb[31].mxu1 }
 0x21a   : > { %v3482_v51 = vsel %vm6428_vm2, %v4775_v8, 0.0  ;;  %v3408_v1 = vpop.f32.mrb[31].mxu0 }
 0x21b   : > { %v4244_v44 = vpack.c.bf16 %v3482_v51, %v3482_v51  ;;  %v3480_v46 = vsel %vm6430_vm9, %v4776_v14, 0.0  ;;  %v3798_v33 = vadd.f32 %v3797_v19, %v3796_v32  ;;  %v4777_v37 = vadd.f32 %v3408_v1, %v2490_v5 }
 0x21c   : > { %v4242_v36 = vpack.c.bf16 %v3480_v46, %v3480_v46  ;;  %v3700_v40 = vsel %vm6431_vm1, %v3480_v46, 0.0  ;;  %v3742_v30 = vmul.f32 %v3480_v46, %v3480_v46  ;;  %v3744_v18 = vmul.f32 %v3482_v51, %v3482_v51 }
 0x21d   : > { %3643 = vst.msk [vmem:[%s6017_s15 + $0x78] sm:$0xf] %vm3612_vm15, %v4244_v44  ;;  %v3701_v10 = vadd.f32 %v3700_v40, %v3697_v48  ;;  %v4243_v11 = vpack.c.bf16 %v4777_v37, %v4777_v37  ;;  %v3702_v31 = vsel %vm6433_vm5, %v4777_v37, 0.0  ;;  %v3743_v27 = vmul.f32 %v4777_v37, %v4777_v37 }
 0x21e   : > { %3641 = vst.msk [vmem:[%s6017_s15 + $0x70] sm:$0xf] %vm3612_vm15, %v4242_v36  ;;  %v3801_v54 = vsel %vm6432_vm8, %v3742_v30, 0.0  ;;  %v3704_v26 = vsel %vm6434_vm14, %v3482_v51, 0.0  ;;  %v3805_v38 = vsel %vm6436_vm12, %v3744_v18, 0.0 }
 0x21f   : > { %v3802_v24 = vadd.f32 %v3801_v54, %v3798_v33  ;;  %v3703_v22 = vadd.f32 %v3702_v31, %v3701_v10  ;;  %3642 = vst.msk [vmem:[%s6017_s15 + $0x74] sm:$0xf] %vm3612_vm15, %v4243_v11  ;;  %v3803_v21 = vsel %vm6435_vm4, %v3743_v27, 0.0  ;;  %vm3815_vm15 = vcmask 1040384  }
 0x221   : > { %v3705_v7 = vadd.f32 %v3704_v26, %v3703_v22  ;;  %v3804_v13 = vadd.f32 %v3803_v21, %v3802_v24 }
 0x223   : > { %v3708_v35 = vrot.slane %v3705_v7, 4  ;;  %v3806_v47 = vadd.f32 %v3805_v38, %v3804_v13 }
 0x225   : > { %v3709_v58 = vadd.f32 %v3708_v35, %v3705_v7  ;;  %v3809_v56 = vrot.slane %v3806_v47, 4 }
 0x227   : > { %v3710_v0 = vrot.slane %v3709_v58, 2  ;;  %v3810_v6 = vadd.f32 %v3809_v56, %v3806_v47 }
 0x229   : > { %v3711_v28 = vadd.f32 %v3710_v0, %v3709_v58  ;;  %v3811_v52 = vrot.slane %v3810_v6, 2 }
 0x22b   : > { %v3712_v12 = vrot.slane %v3711_v28, 1  ;;  %v3812_v53 = vadd.f32 %v3811_v52, %v3810_v6 }
 0x22d   : > { %v3813_v9 = vrot.slane %v3812_v53, 1  ;;  %v3713_v29 = vadd.f32 %v3712_v12, %v3711_v28 }
 0x22f   : > { %v3814_v49 = vadd.f32 %v3813_v9, %v3812_v53 }
 0x231   : > { %v3816_v25 = vsel %vm3815_vm15, %v3713_v29, %v3814_v49 }
 0x232   : > { %3818 = vst.msk [vmem:[%s466_s22] sm:$0x3] %vm3817_vm10, %v3816_v25 }
 0x233 PF: > { %s18_s28 = sadd.s32 1, %s5093_s28   ;;  %s6437_s24 = smov %s5085_s26 }
 0x234   : > { %p15_p13 = scmp.ge.s32.totalorder %s18_s28, 6   ;;  %s6438_s25 = smov %s5089_s27 }
 0x235   : > { %s6439_s26 = smov %s6442_s29  ;;  %s6440_s27 = smov %s6446_s30 }
 0x236   :  { %17 = sbr.rel (!%p15_p13) target bundleno = 3 (0x3), region = 100 }

</bundles_post_ra>
